<compile_context>
chip_gen: v5e
topology: v5e:2x2
jax: 0.10.0
libtpu: 0.0.40
codegen_flags: <defaults>
</compile_context>

<pallas_src>
import jax
import jax.numpy as jnp
from jax import lax
from jax.experimental import pallas as pl
from jax.experimental.pallas import tpu as pltpu

STATE_SIZE = 16
ACTION_SIZE = 8
HID1 = 32           # lstm1 hidden
FC1 = 64
FC2 = 64
FC3 = 16
LN_EPS = 1e-5

# ---- packed parameter slab layout (all row starts are 8-sublane aligned) ----
SLAB_COLS = 128
R_WIH1 = 0      # (STATE_SIZE, 4*HID1) = (16, 128)
R_WHH1 = 16     # (HID1, 4*HID1)       = (32, 128)
R_B1 = 48       # (1, 4*HID1)          = (1, 128)
R_FC1W = 56     # (HID1, FC1)          = (32, 64)
R_FC1B = 88     # (1, FC1)             = (1, 64)
R_FC2W = 96     # (FC1, FC2)           = (64, 64)
R_FC2B = 160    # (1, FC2)             = (1, 64)
R_FC3W = 168    # (FC2, FC3)           = (64, 16)
R_FC3B = 232    # (1, FC3)             = (1, 16)
R_WIH2 = 240    # (FC3, 4*ACTION)      = (16, 32)
R_WHH2 = 256    # (ACTION, 4*ACTION)   = (8, 32)
R_B2 = 264      # (1, 4*ACTION)        = (1, 32)
SLAB_ROWS = 272


def _norm(v):
    """LayerNorm without affine (affine folded into downstream weights).

    Single-pass statistics: var = E[x^2] - mu^2 (halves cross-lane reductions).
    """
    inv_n = 1.0 / v.shape[-1]
    s1 = jnp.sum(v, axis=-1, keepdims=True)
    s2 = jnp.sum(v * v, axis=-1, keepdims=True)
    mu = s1 * inv_n
    var = s2 * inv_n - mu * mu
    return (v - mu) * lax.rsqrt(var + LN_EPS)


def _lstm_cell(gates, c, hid):
    """One LSTM cell update from pre-activation gates (B, 4*hid).

    Sigmoid / tanh are each applied once to the full gate vector (2 EUP pushes
    per step instead of 4); gate blocks are then extracted with static lane
    slices (XLU work that co-issues with VALU/EUP).
    """
    sg = jax.nn.sigmoid(gates)
    tg = jnp.tanh(gates)
    i = sg[:, 0 * hid:1 * hid]
    f = sg[:, 1 * hid:2 * hid]
    g = tg[:, 2 * hid:3 * hid]
    o = sg[:, 3 * hid:4 * hid]
    c = f * c + i * g
    h = o * jnp.tanh(c)
    return h, c


def dqn_lstm_kernel(x_ref, slab_ref, out_ref):
    T, B, S = x_ref.shape
    A = out_ref.shape[-1]          # lstm2 hidden size == action_size
    TB = T * B
    f32 = jnp.float32

    # ---- unpack parameter slab (one DMA; static 8-aligned row slices) ----
    wih1 = slab_ref[R_WIH1:R_WIH1 + S, :]
    whh1 = slab_ref[R_WHH1:R_WHH1 + HID1, :]
    b1 = slab_ref[R_B1:R_B1 + 1, :]
    fc1_w = slab_ref[R_FC1W:R_FC1W + HID1, :FC1]
    fc1_b = slab_ref[R_FC1B:R_FC1B + 1, :FC1]
    fc2_w = slab_ref[R_FC2W:R_FC2W + FC1, :FC2]
    fc2_b = slab_ref[R_FC2B:R_FC2B + 1, :FC2]
    fc3_w = slab_ref[R_FC3W:R_FC3W + FC2, :FC3]
    fc3_b = slab_ref[R_FC3B:R_FC3B + 1, :FC3]
    wih2 = slab_ref[R_WIH2:R_WIH2 + FC3, :4 * A]
    whh2 = slab_ref[R_WHH2:R_WHH2 + A, :4 * A]
    b2 = slab_ref[R_B2:R_B2 + 1, :4 * A]

    # ---- Phase 0: ln1-normalize + lstm1 input projection, batched over T*B ----
    x = x_ref[...].reshape(TB, S)
    x = _norm(x)                                            # ln1 affine folded
    xg1 = jnp.dot(x, wih1, preferred_element_type=f32) + b1  # (TB, 4*HID1)

    # ---- Phase 1: lstm1 recurrence (values only; no scratch round-trips) ----
    h = jnp.zeros((B, HID1), f32)
    c = jnp.zeros((B, HID1), f32)
    h1_steps = []
    for t in range(T):                                      # statically unrolled
        gates = xg1[t * B:(t + 1) * B, :] + jnp.dot(
            h, whh1, preferred_element_type=f32)
        h, c = _lstm_cell(gates, c, HID1)
        h1_steps.append(h)
    h1 = jnp.concatenate(h1_steps, axis=0)                  # (TB, HID1)

    # ---- Phase 2: time-independent MLP stack, batched over (T*B) ----
    z = _norm(h1)                                           # ln2 affine folded
    z = jnp.maximum(jnp.dot(z, fc1_w, preferred_element_type=f32) + fc1_b, 0.0)
    # drop1: identity (eval mode)
    z = _norm(z)                                            # ln3 affine folded
    z = jnp.maximum(jnp.dot(z, fc2_w, preferred_element_type=f32) + fc2_b, 0.0)
    # drop2: identity (eval mode)
    z = _norm(z)                                            # ln4 affine folded
    z = jnp.tanh(jnp.dot(z, fc3_w, preferred_element_type=f32) + fc3_b)
    z = _norm(z)                                            # ln5 affine folded
    xg2 = jnp.dot(z, wih2, preferred_element_type=f32) + b2  # (TB, 4*A)

    # ---- Phase 3: lstm2 recurrence; single full-block output store ----
    h = jnp.zeros((B, A), f32)
    c = jnp.zeros((B, A), f32)
    out_steps = []
    for t in range(T):
        gates = xg2[t * B:(t + 1) * B, :] + jnp.dot(
            h, whh2, preferred_element_type=f32)
        h, c = _lstm_cell(gates, c, A)
        out_steps.append(h)
    out = jnp.concatenate(out_steps, axis=0).reshape(T, B, A)
    out_ref[...] = out.astype(out_ref.dtype)


@jax.jit
def dqn_lstm_forward(state, slab):
    """state: (seq, batch, state_size) f32; slab: packed params (272, 128).

    Returns (seq, batch, action_size) f32.
    """
    T, B, S = state.shape
    A = ACTION_SIZE

    # Pad batch to a sublane multiple; use 2 batch blocks (parallel grid) only
    # when the padded batch is large enough to feed both v7x TensorCores.
    if B >= 16:
        Bp = ((B + 15) // 16) * 16
        n_blocks = 2
    else:
        Bp = max(8, ((B + 7) // 8) * 8)
        n_blocks = 1
    bblk = Bp // n_blocks

    xs = state if Bp == B else jnp.pad(state, ((0, 0), (0, Bp - B), (0, 0)))

    out = pl.pallas_call(
        dqn_lstm_kernel,
        out_shape=jax.ShapeDtypeStruct((T, Bp, A), jnp.float32),
        grid=(n_blocks,),
        in_specs=[
            pl.BlockSpec((T, bblk, S), lambda b: (0, b, 0)),
            pl.BlockSpec((SLAB_ROWS, SLAB_COLS), lambda b: (0, 0)),
        ],
        out_specs=pl.BlockSpec((T, bblk, A), lambda b: (0, b, 0)),
        compiler_params=pltpu.CompilerParams(dimension_semantics=("parallel",)),
    )(xs, slab)

    if Bp != B:
        out = out[:, :B, :]
    return out


def init_params(key, state_size=STATE_SIZE, action_size=ACTION_SIZE):
    """Deterministic synthetic parameters with PyTorch-like init (raw form)."""
    keys = iter(jax.random.split(key, 32))

    def unif(shape, k):
        return jax.random.uniform(next(keys), shape, jnp.float32, minval=-k, maxval=k)

    def ln(n):  # LayerNorm: weight=1, bias=0
        return jnp.ones((1, n), jnp.float32), jnp.zeros((1, n), jnp.float32)

    def linear(n_in, n_out):  # PyTorch stores (out, in); kernel wants (in, out)
        k = 1.0 / jnp.sqrt(n_in)
        w = unif((n_out, n_in), k).T
        b = unif((1, n_out), k)
        return w, b

    def lstm(n_in, n_hid):  # weight_ih (4H,in), weight_hh (4H,H), gate order [i,f,g,o]
        k = 1.0 / jnp.sqrt(n_hid)
        wih = unif((4 * n_hid, n_in), k).T
        whh = unif((4 * n_hid, n_hid), k).T
        bih = unif((1, 4 * n_hid), k)
        bhh = unif((1, 4 * n_hid), k)
        return wih, whh, bih + bhh

    ln1_w, ln1_b = ln(state_size)
    wih1, whh1, b1 = lstm(state_size, HID1)
    ln2_w, ln2_b = ln(HID1)
    fc1_w, fc1_b = linear(HID1, FC1)
    ln3_w, ln3_b = ln(FC1)
    fc2_w, fc2_b = linear(FC1, FC2)
    ln4_w, ln4_b = ln(FC2)
    fc3_w, fc3_b = linear(FC2, FC3)
    ln5_w, ln5_b = ln(FC3)
    wih2, whh2, b2 = lstm(FC3, action_size)

    return [ln1_w, ln1_b, wih1, whh1, b1,
            ln2_w, ln2_b, fc1_w, fc1_b,
            ln3_w, ln3_b, fc2_w, fc2_b,
            ln4_w, ln4_b, fc3_w, fc3_b,
            ln5_w, ln5_b, wih2, whh2, b2]


def prepare_params(params):
    """One-time prep: fold LayerNorm affines into downstream weights and pack
    everything into a single (272, 128) f32 slab (one kernel-entry DMA)."""
    (ln1_w, ln1_b, wih1, whh1, b1,
     ln2_w, ln2_b, fc1_w, fc1_b,
     ln3_w, ln3_b, fc2_w, fc2_b,
     ln4_w, ln4_b, fc3_w, fc3_b,
     ln5_w, ln5_b, wih2, whh2, b2) = params

    def fold(ln_w, ln_b, w, b):
        # (norm(x)*ln_w + ln_b) @ w + b == norm(x) @ (ln_w^T * w) + (ln_b @ w + b)
        return w * ln_w.reshape(-1, 1), ln_b @ w + b

    wih1, b1 = fold(ln1_w, ln1_b, wih1, b1)
    fc1_w, fc1_b = fold(ln2_w, ln2_b, fc1_w, fc1_b)
    fc2_w, fc2_b = fold(ln3_w, ln3_b, fc2_w, fc2_b)
    fc3_w, fc3_b = fold(ln4_w, ln4_b, fc3_w, fc3_b)
    wih2, b2 = fold(ln5_w, ln5_b, wih2, b2)

    slab = jnp.zeros((SLAB_ROWS, SLAB_COLS), jnp.float32)

    def put(s, row, a):
        return s.at[row:row + a.shape[0], :a.shape[1]].set(a)

    slab = put(slab, R_WIH1, wih1)
    slab = put(slab, R_WHH1, whh1)
    slab = put(slab, R_B1, b1)
    slab = put(slab, R_FC1W, fc1_w)
    slab = put(slab, R_FC1B, fc1_b)
    slab = put(slab, R_FC2W, fc2_w)
    slab = put(slab, R_FC2B, fc2_b)
    slab = put(slab, R_FC3W, fc3_w)
    slab = put(slab, R_FC3B, fc3_b)
    slab = put(slab, R_WIH2, wih2)
    slab = put(slab, R_WHH2, whh2)
    slab = put(slab, R_B2, b2)
    return slab


def reference_forward(state, params):
    """Pure-JAX reference mirroring the PyTorch module (unfolded LayerNorms)."""
    (ln1_w, ln1_b, wih1, whh1, b1,
     ln2_w, ln2_b, fc1_w, fc1_b,
     ln3_w, ln3_b, fc2_w, fc2_b,
     ln4_w, ln4_b, fc3_w, fc3_b,
     ln5_w, ln5_b, wih2, whh2, b2) = params

    def ln(v, w, b):
        mu = jnp.mean(v, -1, keepdims=True)
        var = jnp.mean(jnp.square(v - mu), -1, keepdims=True)
        return (v - mu) * lax.rsqrt(var + LN_EPS) * w + b

    def lstm(x_seq, wih, whh, b, hid):
        T, B, _ = x_seq.shape
        h = jnp.zeros((B, hid), jnp.float32)
        c = jnp.zeros((B, hid), jnp.float32)
        hs = []
        for t in range(T):
            g = x_seq[t] @ wih + h @ whh + b
            i = jax.nn.sigmoid(g[:, :hid])
            f = jax.nn.sigmoid(g[:, hid:2 * hid])
            gg = jnp.tanh(g[:, 2 * hid:3 * hid])
            o = jax.nn.sigmoid(g[:, 3 * hid:])
            c = f * c + i * gg
            h = o * jnp.tanh(c)
            hs.append(h)
        return jnp.stack(hs, 0)

    x = ln(state, ln1_w, ln1_b)
    x = lstm(x, wih1, whh1, b1, HID1)
    x = ln(x, ln2_w, ln2_b)
    x = jax.nn.relu(x @ fc1_w + fc1_b)
    x = ln(x, ln3_w, ln3_b)
    x = jax.nn.relu(x @ fc2_w + fc2_b)
    x = ln(x, ln4_w, ln4_b)
    x = jnp.tanh(x @ fc3_w + fc3_b)
    x = ln(x, ln5_w, ln5_b)
    x = lstm(x, wih2, whh2, b2, ACTION_SIZE)
    return x


if __name__ == "__main__":
    key = jax.random.PRNGKey(0)
    k_params, k_state = jax.random.split(key)

    seq, batch = 8, 4
    state = jax.random.normal(k_state, (seq, batch, STATE_SIZE), jnp.float32)

    params = init_params(k_params)
    slab = prepare_params(params)        # one-time fold + pack

    actions = dqn_lstm_forward(state, slab)
    actions = jax.block_until_ready(actions)

    assert actions.shape == (seq, batch, ACTION_SIZE)
    assert actions.dtype == jnp.float32
    assert bool(jnp.all(jnp.isfinite(actions)))

    ref = reference_forward(state, params)
    assert bool(jnp.allclose(actions, ref, atol=1e-2, rtol=1e-2))

    print("KERNEL_OK")
</pallas_src>

<mosaic_0001>
module attributes {stable_mosaic.version = 11 : i64} {
  func.func @dqn_lstm_kernel(%arg0: i32, %arg1: memref<8x8x16xf32, #tpu.memory_space<vmem>>, %arg2: memref<272x128xf32, #tpu.memory_space<vmem>>, %arg3: memref<8x8x8xf32, #tpu.memory_space<vmem>>) attributes {dimension_semantics = [#tpu.dimension_semantics<parallel>], iteration_bounds = array<i64: 1>, scalar_prefetch = 0 : i64, scratch_operands = 0 : i64, tpu.core_type = #tpu.core_type<tc>, window_params = [{transform_indices = @transform_0, window_bounds = array<i64: 8, 8, 16>}, {pipeline_mode = #tpu.pipeline_mode<synchronous>, transform_indices = @transform_1, window_bounds = array<i64: 272, 128>}, {transform_indices = @transform_2, window_bounds = array<i64: 8, 8, 8>}]} {
    %c0 = arith.constant 0 : index
    %c0_0 = arith.constant 0 : index
    %0 = vector.load %arg2[%c0, %c0_0] : memref<272x128xf32, #tpu.memory_space<vmem>>, vector<16x128xf32>
    %c16 = arith.constant 16 : index
    %c0_1 = arith.constant 0 : index
    %1 = vector.load %arg2[%c16, %c0_1] : memref<272x128xf32, #tpu.memory_space<vmem>>, vector<32x128xf32>
    %c48 = arith.constant 48 : index
    %c0_2 = arith.constant 0 : index
    %2 = vector.load %arg2[%c48, %c0_2] : memref<272x128xf32, #tpu.memory_space<vmem>>, vector<1x128xf32>
    %c56 = arith.constant 56 : index
    %c0_3 = arith.constant 0 : index
    %3 = vector.load %arg2[%c56, %c0_3] : memref<272x128xf32, #tpu.memory_space<vmem>>, vector<32x64xf32>
    %c88 = arith.constant 88 : index
    %c0_4 = arith.constant 0 : index
    %4 = vector.load %arg2[%c88, %c0_4] : memref<272x128xf32, #tpu.memory_space<vmem>>, vector<1x64xf32>
    %c96 = arith.constant 96 : index
    %c0_5 = arith.constant 0 : index
    %5 = vector.load %arg2[%c96, %c0_5] : memref<272x128xf32, #tpu.memory_space<vmem>>, vector<64x64xf32>
    %c160 = arith.constant 160 : index
    %c0_6 = arith.constant 0 : index
    %6 = vector.load %arg2[%c160, %c0_6] : memref<272x128xf32, #tpu.memory_space<vmem>>, vector<1x64xf32>
    %c168 = arith.constant 168 : index
    %c0_7 = arith.constant 0 : index
    %7 = vector.load %arg2[%c168, %c0_7] : memref<272x128xf32, #tpu.memory_space<vmem>>, vector<64x16xf32>
    %c232 = arith.constant 232 : index
    %c0_8 = arith.constant 0 : index
    %8 = vector.load %arg2[%c232, %c0_8] : memref<272x128xf32, #tpu.memory_space<vmem>>, vector<1x16xf32>
    %c240 = arith.constant 240 : index
    %c0_9 = arith.constant 0 : index
    %9 = vector.load %arg2[%c240, %c0_9] : memref<272x128xf32, #tpu.memory_space<vmem>>, vector<16x32xf32>
    %c256 = arith.constant 256 : index
    %c0_10 = arith.constant 0 : index
    %10 = vector.load %arg2[%c256, %c0_10] : memref<272x128xf32, #tpu.memory_space<vmem>>, vector<8x32xf32>
    %c264 = arith.constant 264 : index
    %c0_11 = arith.constant 0 : index
    %11 = vector.load %arg2[%c264, %c0_11] : memref<272x128xf32, #tpu.memory_space<vmem>>, vector<1x32xf32>
    %c0_12 = arith.constant 0 : index
    %c0_13 = arith.constant 0 : index
    %c0_14 = arith.constant 0 : index
    %12 = vector.load %arg1[%c0_12, %c0_13, %c0_14] : memref<8x8x16xf32, #tpu.memory_space<vmem>>, vector<8x8x16xf32>
    %13 = vector.shape_cast %12 : vector<8x8x16xf32> to vector<64x16xf32>
    %cst = arith.constant dense<0.000000e+00> : vector<64xf32>
    %14 = vector.multi_reduction <add>, %13, %cst [1] : vector<64x16xf32> to vector<64xf32>
    %15 = vector.shape_cast %14 : vector<64xf32> to vector<64x1xf32>
    %16 = arith.mulf %13, %13 : vector<64x16xf32>
    %cst_15 = arith.constant dense<0.000000e+00> : vector<64xf32>
    %17 = vector.multi_reduction <add>, %16, %cst_15 [1] : vector<64x16xf32> to vector<64xf32>
    %18 = vector.shape_cast %17 : vector<64xf32> to vector<64x1xf32>
    %cst_16 = arith.constant 6.250000e-02 : f32
    %19 = vector.broadcast %cst_16 : f32 to vector<64x1xf32>
    %20 = arith.mulf %15, %19 : vector<64x1xf32>
    %cst_17 = arith.constant 6.250000e-02 : f32
    %21 = vector.broadcast %cst_17 : f32 to vector<64x1xf32>
    %22 = arith.mulf %18, %21 : vector<64x1xf32>
    %23 = arith.mulf %20, %20 : vector<64x1xf32>
    %24 = arith.subf %22, %23 : vector<64x1xf32>
    %25 = vector.broadcast %20 : vector<64x1xf32> to vector<64x16xf32>
    %26 = arith.subf %13, %25 : vector<64x16xf32>
    %cst_18 = arith.constant 9.99999974E-6 : f32
    %27 = vector.broadcast %cst_18 : f32 to vector<64x1xf32>
    %28 = arith.addf %24, %27 : vector<64x1xf32>
    %29 = math.rsqrt %28 : vector<64x1xf32>
    %30 = vector.broadcast %29 : vector<64x1xf32> to vector<64x16xf32>
    %31 = arith.mulf %26, %30 : vector<64x16xf32>
    %cst_19 = arith.constant dense<0.000000e+00> : vector<64x128xf32>
    %32 = tpu.matmul %31, %0, %cst_19 {dimension_numbers = #tpu.dot_dimension_numbers<[1], [0], [0], [1], [0, 0, 1, 1], [], []>} : vector<64x16xf32>, vector<16x128xf32>, vector<64x128xf32> -> vector<64x128xf32>
    %33 = vector.broadcast %2 : vector<1x128xf32> to vector<64x128xf32>
    %34 = arith.addf %32, %33 : vector<64x128xf32>
    %cst_20 = arith.constant 0.000000e+00 : f32
    %35 = vector.broadcast %cst_20 : f32 to vector<8x32xf32>
    %cst_21 = arith.constant 0.000000e+00 : f32
    %36 = vector.broadcast %cst_21 : f32 to vector<8x32xf32>
    %37 = vector.extract_strided_slice %34 {offsets = [0, 0], sizes = [8, 128], strides = [1, 1]} : vector<64x128xf32> to vector<8x128xf32>
    %cst_22 = arith.constant dense<0.000000e+00> : vector<8x128xf32>
    %38 = tpu.matmul %35, %1, %cst_22 {dimension_numbers = #tpu.dot_dimension_numbers<[1], [0], [0], [1], [0, 0, 1, 1], [], []>} : vector<8x32xf32>, vector<32x128xf32>, vector<8x128xf32> -> vector<8x128xf32>
    %39 = arith.addf %37, %38 : vector<8x128xf32>
    %40 = arith.negf %39 : vector<8x128xf32>
    %41 = math.exp %40 : vector<8x128xf32>
    %cst_23 = arith.constant 1.000000e+00 : f32
    %42 = vector.broadcast %cst_23 : f32 to vector<8x128xf32>
    %43 = arith.addf %42, %41 : vector<8x128xf32>
    %44 = arith.divf %42, %43 : vector<8x128xf32>
    %45 = math.tanh %39 : vector<8x128xf32>
    %46 = vector.extract_strided_slice %44 {offsets = [0, 0], sizes = [8, 32], strides = [1, 1]} : vector<8x128xf32> to vector<8x32xf32>
    %47 = vector.extract_strided_slice %44 {offsets = [0, 32], sizes = [8, 32], strides = [1, 1]} : vector<8x128xf32> to vector<8x32xf32>
    %48 = vector.extract_strided_slice %45 {offsets = [0, 64], sizes = [8, 32], strides = [1, 1]} : vector<8x128xf32> to vector<8x32xf32>
    %49 = vector.extract_strided_slice %44 {offsets = [0, 96], sizes = [8, 32], strides = [1, 1]} : vector<8x128xf32> to vector<8x32xf32>
    %50 = arith.mulf %47, %36 : vector<8x32xf32>
    %51 = arith.mulf %46, %48 : vector<8x32xf32>
    %52 = arith.addf %50, %51 : vector<8x32xf32>
    %53 = math.tanh %52 : vector<8x32xf32>
    %54 = arith.mulf %49, %53 : vector<8x32xf32>
    %55 = vector.extract_strided_slice %34 {offsets = [8, 0], sizes = [8, 128], strides = [1, 1]} : vector<64x128xf32> to vector<8x128xf32>
    %cst_24 = arith.constant dense<0.000000e+00> : vector<8x128xf32>
    %56 = tpu.matmul %54, %1, %cst_24 {dimension_numbers = #tpu.dot_dimension_numbers<[1], [0], [0], [1], [0, 0, 1, 1], [], []>} : vector<8x32xf32>, vector<32x128xf32>, vector<8x128xf32> -> vector<8x128xf32>
    %57 = arith.addf %55, %56 : vector<8x128xf32>
    %58 = arith.negf %57 : vector<8x128xf32>
    %59 = math.exp %58 : vector<8x128xf32>
    %cst_25 = arith.constant 1.000000e+00 : f32
    %60 = vector.broadcast %cst_25 : f32 to vector<8x128xf32>
    %61 = arith.addf %60, %59 : vector<8x128xf32>
    %62 = arith.divf %60, %61 : vector<8x128xf32>
    %63 = math.tanh %57 : vector<8x128xf32>
    %64 = vector.extract_strided_slice %62 {offsets = [0, 0], sizes = [8, 32], strides = [1, 1]} : vector<8x128xf32> to vector<8x32xf32>
    %65 = vector.extract_strided_slice %62 {offsets = [0, 32], sizes = [8, 32], strides = [1, 1]} : vector<8x128xf32> to vector<8x32xf32>
    %66 = vector.extract_strided_slice %63 {offsets = [0, 64], sizes = [8, 32], strides = [1, 1]} : vector<8x128xf32> to vector<8x32xf32>
    %67 = vector.extract_strided_slice %62 {offsets = [0, 96], sizes = [8, 32], strides = [1, 1]} : vector<8x128xf32> to vector<8x32xf32>
    %68 = arith.mulf %65, %52 : vector<8x32xf32>
    %69 = arith.mulf %64, %66 : vector<8x32xf32>
    %70 = arith.addf %68, %69 : vector<8x32xf32>
    %71 = math.tanh %70 : vector<8x32xf32>
    %72 = arith.mulf %67, %71 : vector<8x32xf32>
    %73 = vector.extract_strided_slice %34 {offsets = [16, 0], sizes = [8, 128], strides = [1, 1]} : vector<64x128xf32> to vector<8x128xf32>
    %cst_26 = arith.constant dense<0.000000e+00> : vector<8x128xf32>
    %74 = tpu.matmul %72, %1, %cst_26 {dimension_numbers = #tpu.dot_dimension_numbers<[1], [0], [0], [1], [0, 0, 1, 1], [], []>} : vector<8x32xf32>, vector<32x128xf32>, vector<8x128xf32> -> vector<8x128xf32>
    %75 = arith.addf %73, %74 : vector<8x128xf32>
    %76 = arith.negf %75 : vector<8x128xf32>
    %77 = math.exp %76 : vector<8x128xf32>
    %cst_27 = arith.constant 1.000000e+00 : f32
    %78 = vector.broadcast %cst_27 : f32 to vector<8x128xf32>
    %79 = arith.addf %78, %77 : vector<8x128xf32>
    %80 = arith.divf %78, %79 : vector<8x128xf32>
    %81 = math.tanh %75 : vector<8x128xf32>
    %82 = vector.extract_strided_slice %80 {offsets = [0, 0], sizes = [8, 32], strides = [1, 1]} : vector<8x128xf32> to vector<8x32xf32>
    %83 = vector.extract_strided_slice %80 {offsets = [0, 32], sizes = [8, 32], strides = [1, 1]} : vector<8x128xf32> to vector<8x32xf32>
    %84 = vector.extract_strided_slice %81 {offsets = [0, 64], sizes = [8, 32], strides = [1, 1]} : vector<8x128xf32> to vector<8x32xf32>
    %85 = vector.extract_strided_slice %80 {offsets = [0, 96], sizes = [8, 32], strides = [1, 1]} : vector<8x128xf32> to vector<8x32xf32>
    %86 = arith.mulf %83, %70 : vector<8x32xf32>
    %87 = arith.mulf %82, %84 : vector<8x32xf32>
    %88 = arith.addf %86, %87 : vector<8x32xf32>
    %89 = math.tanh %88 : vector<8x32xf32>
    %90 = arith.mulf %85, %89 : vector<8x32xf32>
    %91 = vector.extract_strided_slice %34 {offsets = [24, 0], sizes = [8, 128], strides = [1, 1]} : vector<64x128xf32> to vector<8x128xf32>
    %cst_28 = arith.constant dense<0.000000e+00> : vector<8x128xf32>
    %92 = tpu.matmul %90, %1, %cst_28 {dimension_numbers = #tpu.dot_dimension_numbers<[1], [0], [0], [1], [0, 0, 1, 1], [], []>} : vector<8x32xf32>, vector<32x128xf32>, vector<8x128xf32> -> vector<8x128xf32>
    %93 = arith.addf %91, %92 : vector<8x128xf32>
    %94 = arith.negf %93 : vector<8x128xf32>
    %95 = math.exp %94 : vector<8x128xf32>
    %cst_29 = arith.constant 1.000000e+00 : f32
    %96 = vector.broadcast %cst_29 : f32 to vector<8x128xf32>
    %97 = arith.addf %96, %95 : vector<8x128xf32>
    %98 = arith.divf %96, %97 : vector<8x128xf32>
    %99 = math.tanh %93 : vector<8x128xf32>
    %100 = vector.extract_strided_slice %98 {offsets = [0, 0], sizes = [8, 32], strides = [1, 1]} : vector<8x128xf32> to vector<8x32xf32>
    %101 = vector.extract_strided_slice %98 {offsets = [0, 32], sizes = [8, 32], strides = [1, 1]} : vector<8x128xf32> to vector<8x32xf32>
    %102 = vector.extract_strided_slice %99 {offsets = [0, 64], sizes = [8, 32], strides = [1, 1]} : vector<8x128xf32> to vector<8x32xf32>
    %103 = vector.extract_strided_slice %98 {offsets = [0, 96], sizes = [8, 32], strides = [1, 1]} : vector<8x128xf32> to vector<8x32xf32>
    %104 = arith.mulf %101, %88 : vector<8x32xf32>
    %105 = arith.mulf %100, %102 : vector<8x32xf32>
    %106 = arith.addf %104, %105 : vector<8x32xf32>
    %107 = math.tanh %106 : vector<8x32xf32>
    %108 = arith.mulf %103, %107 : vector<8x32xf32>
    %109 = vector.extract_strided_slice %34 {offsets = [32, 0], sizes = [8, 128], strides = [1, 1]} : vector<64x128xf32> to vector<8x128xf32>
    %cst_30 = arith.constant dense<0.000000e+00> : vector<8x128xf32>
    %110 = tpu.matmul %108, %1, %cst_30 {dimension_numbers = #tpu.dot_dimension_numbers<[1], [0], [0], [1], [0, 0, 1, 1], [], []>} : vector<8x32xf32>, vector<32x128xf32>, vector<8x128xf32> -> vector<8x128xf32>
    %111 = arith.addf %109, %110 : vector<8x128xf32>
    %112 = arith.negf %111 : vector<8x128xf32>
    %113 = math.exp %112 : vector<8x128xf32>
    %cst_31 = arith.constant 1.000000e+00 : f32
    %114 = vector.broadcast %cst_31 : f32 to vector<8x128xf32>
    %115 = arith.addf %114, %113 : vector<8x128xf32>
    %116 = arith.divf %114, %115 : vector<8x128xf32>
    %117 = math.tanh %111 : vector<8x128xf32>
    %118 = vector.extract_strided_slice %116 {offsets = [0, 0], sizes = [8, 32], strides = [1, 1]} : vector<8x128xf32> to vector<8x32xf32>
    %119 = vector.extract_strided_slice %116 {offsets = [0, 32], sizes = [8, 32], strides = [1, 1]} : vector<8x128xf32> to vector<8x32xf32>
    %120 = vector.extract_strided_slice %117 {offsets = [0, 64], sizes = [8, 32], strides = [1, 1]} : vector<8x128xf32> to vector<8x32xf32>
    %121 = vector.extract_strided_slice %116 {offsets = [0, 96], sizes = [8, 32], strides = [1, 1]} : vector<8x128xf32> to vector<8x32xf32>
    %122 = arith.mulf %119, %106 : vector<8x32xf32>
    %123 = arith.mulf %118, %120 : vector<8x32xf32>
    %124 = arith.addf %122, %123 : vector<8x32xf32>
    %125 = math.tanh %124 : vector<8x32xf32>
    %126 = arith.mulf %121, %125 : vector<8x32xf32>
    %127 = vector.extract_strided_slice %34 {offsets = [40, 0], sizes = [8, 128], strides = [1, 1]} : vector<64x128xf32> to vector<8x128xf32>
    %cst_32 = arith.constant dense<0.000000e+00> : vector<8x128xf32>
    %128 = tpu.matmul %126, %1, %cst_32 {dimension_numbers = #tpu.dot_dimension_numbers<[1], [0], [0], [1], [0, 0, 1, 1], [], []>} : vector<8x32xf32>, vector<32x128xf32>, vector<8x128xf32> -> vector<8x128xf32>
    %129 = arith.addf %127, %128 : vector<8x128xf32>
    %130 = arith.negf %129 : vector<8x128xf32>
    %131 = math.exp %130 : vector<8x128xf32>
    %cst_33 = arith.constant 1.000000e+00 : f32
    %132 = vector.broadcast %cst_33 : f32 to vector<8x128xf32>
    %133 = arith.addf %132, %131 : vector<8x128xf32>
    %134 = arith.divf %132, %133 : vector<8x128xf32>
    %135 = math.tanh %129 : vector<8x128xf32>
    %136 = vector.extract_strided_slice %134 {offsets = [0, 0], sizes = [8, 32], strides = [1, 1]} : vector<8x128xf32> to vector<8x32xf32>
    %137 = vector.extract_strided_slice %134 {offsets = [0, 32], sizes = [8, 32], strides = [1, 1]} : vector<8x128xf32> to vector<8x32xf32>
    %138 = vector.extract_strided_slice %135 {offsets = [0, 64], sizes = [8, 32], strides = [1, 1]} : vector<8x128xf32> to vector<8x32xf32>
    %139 = vector.extract_strided_slice %134 {offsets = [0, 96], sizes = [8, 32], strides = [1, 1]} : vector<8x128xf32> to vector<8x32xf32>
    %140 = arith.mulf %137, %124 : vector<8x32xf32>
    %141 = arith.mulf %136, %138 : vector<8x32xf32>
    %142 = arith.addf %140, %141 : vector<8x32xf32>
    %143 = math.tanh %142 : vector<8x32xf32>
    %144 = arith.mulf %139, %143 : vector<8x32xf32>
    %145 = vector.extract_strided_slice %34 {offsets = [48, 0], sizes = [8, 128], strides = [1, 1]} : vector<64x128xf32> to vector<8x128xf32>
    %cst_34 = arith.constant dense<0.000000e+00> : vector<8x128xf32>
    %146 = tpu.matmul %144, %1, %cst_34 {dimension_numbers = #tpu.dot_dimension_numbers<[1], [0], [0], [1], [0, 0, 1, 1], [], []>} : vector<8x32xf32>, vector<32x128xf32>, vector<8x128xf32> -> vector<8x128xf32>
    %147 = arith.addf %145, %146 : vector<8x128xf32>
    %148 = arith.negf %147 : vector<8x128xf32>
    %149 = math.exp %148 : vector<8x128xf32>
    %cst_35 = arith.constant 1.000000e+00 : f32
    %150 = vector.broadcast %cst_35 : f32 to vector<8x128xf32>
    %151 = arith.addf %150, %149 : vector<8x128xf32>
    %152 = arith.divf %150, %151 : vector<8x128xf32>
    %153 = math.tanh %147 : vector<8x128xf32>
    %154 = vector.extract_strided_slice %152 {offsets = [0, 0], sizes = [8, 32], strides = [1, 1]} : vector<8x128xf32> to vector<8x32xf32>
    %155 = vector.extract_strided_slice %152 {offsets = [0, 32], sizes = [8, 32], strides = [1, 1]} : vector<8x128xf32> to vector<8x32xf32>
    %156 = vector.extract_strided_slice %153 {offsets = [0, 64], sizes = [8, 32], strides = [1, 1]} : vector<8x128xf32> to vector<8x32xf32>
    %157 = vector.extract_strided_slice %152 {offsets = [0, 96], sizes = [8, 32], strides = [1, 1]} : vector<8x128xf32> to vector<8x32xf32>
    %158 = arith.mulf %155, %142 : vector<8x32xf32>
    %159 = arith.mulf %154, %156 : vector<8x32xf32>
    %160 = arith.addf %158, %159 : vector<8x32xf32>
    %161 = math.tanh %160 : vector<8x32xf32>
    %162 = arith.mulf %157, %161 : vector<8x32xf32>
    %163 = vector.extract_strided_slice %34 {offsets = [56, 0], sizes = [8, 128], strides = [1, 1]} : vector<64x128xf32> to vector<8x128xf32>
    %cst_36 = arith.constant dense<0.000000e+00> : vector<8x128xf32>
    %164 = tpu.matmul %162, %1, %cst_36 {dimension_numbers = #tpu.dot_dimension_numbers<[1], [0], [0], [1], [0, 0, 1, 1], [], []>} : vector<8x32xf32>, vector<32x128xf32>, vector<8x128xf32> -> vector<8x128xf32>
    %165 = arith.addf %163, %164 : vector<8x128xf32>
    %166 = arith.negf %165 : vector<8x128xf32>
    %167 = math.exp %166 : vector<8x128xf32>
    %cst_37 = arith.constant 1.000000e+00 : f32
    %168 = vector.broadcast %cst_37 : f32 to vector<8x128xf32>
    %169 = arith.addf %168, %167 : vector<8x128xf32>
    %170 = arith.divf %168, %169 : vector<8x128xf32>
    %171 = math.tanh %165 : vector<8x128xf32>
    %172 = vector.extract_strided_slice %170 {offsets = [0, 0], sizes = [8, 32], strides = [1, 1]} : vector<8x128xf32> to vector<8x32xf32>
    %173 = vector.extract_strided_slice %170 {offsets = [0, 32], sizes = [8, 32], strides = [1, 1]} : vector<8x128xf32> to vector<8x32xf32>
    %174 = vector.extract_strided_slice %171 {offsets = [0, 64], sizes = [8, 32], strides = [1, 1]} : vector<8x128xf32> to vector<8x32xf32>
    %175 = vector.extract_strided_slice %170 {offsets = [0, 96], sizes = [8, 32], strides = [1, 1]} : vector<8x128xf32> to vector<8x32xf32>
    %176 = arith.mulf %173, %160 : vector<8x32xf32>
    %177 = arith.mulf %172, %174 : vector<8x32xf32>
    %178 = arith.addf %176, %177 : vector<8x32xf32>
    %179 = math.tanh %178 : vector<8x32xf32>
    %180 = arith.mulf %175, %179 : vector<8x32xf32>
    %181 = tpu.concatenate %54, %72, %90, %108, %126, %144, %162, %180 in 0 : vector<8x32xf32>, vector<8x32xf32>, vector<8x32xf32>, vector<8x32xf32>, vector<8x32xf32>, vector<8x32xf32>, vector<8x32xf32>, vector<8x32xf32> -> vector<64x32xf32>
    %cst_38 = arith.constant dense<0.000000e+00> : vector<64xf32>
    %182 = vector.multi_reduction <add>, %181, %cst_38 [1] : vector<64x32xf32> to vector<64xf32>
    %183 = vector.shape_cast %182 : vector<64xf32> to vector<64x1xf32>
    %184 = arith.mulf %181, %181 : vector<64x32xf32>
    %cst_39 = arith.constant dense<0.000000e+00> : vector<64xf32>
    %185 = vector.multi_reduction <add>, %184, %cst_39 [1] : vector<64x32xf32> to vector<64xf32>
    %186 = vector.shape_cast %185 : vector<64xf32> to vector<64x1xf32>
    %cst_40 = arith.constant 3.125000e-02 : f32
    %187 = vector.broadcast %cst_40 : f32 to vector<64x1xf32>
    %188 = arith.mulf %183, %187 : vector<64x1xf32>
    %cst_41 = arith.constant 3.125000e-02 : f32
    %189 = vector.broadcast %cst_41 : f32 to vector<64x1xf32>
    %190 = arith.mulf %186, %189 : vector<64x1xf32>
    %191 = arith.mulf %188, %188 : vector<64x1xf32>
    %192 = arith.subf %190, %191 : vector<64x1xf32>
    %193 = vector.broadcast %188 : vector<64x1xf32> to vector<64x32xf32>
    %194 = arith.subf %181, %193 : vector<64x32xf32>
    %cst_42 = arith.constant 9.99999974E-6 : f32
    %195 = vector.broadcast %cst_42 : f32 to vector<64x1xf32>
    %196 = arith.addf %192, %195 : vector<64x1xf32>
    %197 = math.rsqrt %196 : vector<64x1xf32>
    %198 = vector.broadcast %197 : vector<64x1xf32> to vector<64x32xf32>
    %199 = arith.mulf %194, %198 : vector<64x32xf32>
    %cst_43 = arith.constant dense<0.000000e+00> : vector<64x64xf32>
    %200 = tpu.matmul %199, %3, %cst_43 {dimension_numbers = #tpu.dot_dimension_numbers<[1], [0], [0], [1], [0, 0, 1, 1], [], []>} : vector<64x32xf32>, vector<32x64xf32>, vector<64x64xf32> -> vector<64x64xf32>
    %201 = vector.broadcast %4 : vector<1x64xf32> to vector<64x64xf32>
    %202 = arith.addf %200, %201 : vector<64x64xf32>
    %cst_44 = arith.constant 0.000000e+00 : f32
    %203 = vector.broadcast %cst_44 : f32 to vector<64x64xf32>
    %204 = arith.maximumf %202, %203 : vector<64x64xf32>
    %cst_45 = arith.constant dense<0.000000e+00> : vector<64xf32>
    %205 = vector.multi_reduction <add>, %204, %cst_45 [1] : vector<64x64xf32> to vector<64xf32>
    %206 = vector.shape_cast %205 : vector<64xf32> to vector<64x1xf32>
    %207 = arith.mulf %204, %204 : vector<64x64xf32>
    %cst_46 = arith.constant dense<0.000000e+00> : vector<64xf32>
    %208 = vector.multi_reduction <add>, %207, %cst_46 [1] : vector<64x64xf32> to vector<64xf32>
    %209 = vector.shape_cast %208 : vector<64xf32> to vector<64x1xf32>
    %cst_47 = arith.constant 1.562500e-02 : f32
    %210 = vector.broadcast %cst_47 : f32 to vector<64x1xf32>
    %211 = arith.mulf %206, %210 : vector<64x1xf32>
    %cst_48 = arith.constant 1.562500e-02 : f32
    %212 = vector.broadcast %cst_48 : f32 to vector<64x1xf32>
    %213 = arith.mulf %209, %212 : vector<64x1xf32>
    %214 = arith.mulf %211, %211 : vector<64x1xf32>
    %215 = arith.subf %213, %214 : vector<64x1xf32>
    %216 = vector.broadcast %211 : vector<64x1xf32> to vector<64x64xf32>
    %217 = arith.subf %204, %216 : vector<64x64xf32>
    %cst_49 = arith.constant 9.99999974E-6 : f32
    %218 = vector.broadcast %cst_49 : f32 to vector<64x1xf32>
    %219 = arith.addf %215, %218 : vector<64x1xf32>
    %220 = math.rsqrt %219 : vector<64x1xf32>
    %221 = vector.broadcast %220 : vector<64x1xf32> to vector<64x64xf32>
    %222 = arith.mulf %217, %221 : vector<64x64xf32>
    %cst_50 = arith.constant dense<0.000000e+00> : vector<64x64xf32>
    %223 = tpu.matmul %222, %5, %cst_50 {dimension_numbers = #tpu.dot_dimension_numbers<[1], [0], [0], [1], [0, 0, 1, 1], [], []>} : vector<64x64xf32>, vector<64x64xf32>, vector<64x64xf32> -> vector<64x64xf32>
    %224 = vector.broadcast %6 : vector<1x64xf32> to vector<64x64xf32>
    %225 = arith.addf %223, %224 : vector<64x64xf32>
    %cst_51 = arith.constant 0.000000e+00 : f32
    %226 = vector.broadcast %cst_51 : f32 to vector<64x64xf32>
    %227 = arith.maximumf %225, %226 : vector<64x64xf32>
    %cst_52 = arith.constant dense<0.000000e+00> : vector<64xf32>
    %228 = vector.multi_reduction <add>, %227, %cst_52 [1] : vector<64x64xf32> to vector<64xf32>
    %229 = vector.shape_cast %228 : vector<64xf32> to vector<64x1xf32>
    %230 = arith.mulf %227, %227 : vector<64x64xf32>
    %cst_53 = arith.constant dense<0.000000e+00> : vector<64xf32>
    %231 = vector.multi_reduction <add>, %230, %cst_53 [1] : vector<64x64xf32> to vector<64xf32>
    %232 = vector.shape_cast %231 : vector<64xf32> to vector<64x1xf32>
    %cst_54 = arith.constant 1.562500e-02 : f32
    %233 = vector.broadcast %cst_54 : f32 to vector<64x1xf32>
    %234 = arith.mulf %229, %233 : vector<64x1xf32>
    %cst_55 = arith.constant 1.562500e-02 : f32
    %235 = vector.broadcast %cst_55 : f32 to vector<64x1xf32>
    %236 = arith.mulf %232, %235 : vector<64x1xf32>
    %237 = arith.mulf %234, %234 : vector<64x1xf32>
    %238 = arith.subf %236, %237 : vector<64x1xf32>
    %239 = vector.broadcast %234 : vector<64x1xf32> to vector<64x64xf32>
    %240 = arith.subf %227, %239 : vector<64x64xf32>
    %cst_56 = arith.constant 9.99999974E-6 : f32
    %241 = vector.broadcast %cst_56 : f32 to vector<64x1xf32>
    %242 = arith.addf %238, %241 : vector<64x1xf32>
    %243 = math.rsqrt %242 : vector<64x1xf32>
    %244 = vector.broadcast %243 : vector<64x1xf32> to vector<64x64xf32>
    %245 = arith.mulf %240, %244 : vector<64x64xf32>
    %cst_57 = arith.constant dense<0.000000e+00> : vector<64x16xf32>
    %246 = tpu.matmul %245, %7, %cst_57 {dimension_numbers = #tpu.dot_dimension_numbers<[1], [0], [0], [1], [0, 0, 1, 1], [], []>} : vector<64x64xf32>, vector<64x16xf32>, vector<64x16xf32> -> vector<64x16xf32>
    %247 = vector.broadcast %8 : vector<1x16xf32> to vector<64x16xf32>
    %248 = arith.addf %246, %247 : vector<64x16xf32>
    %249 = math.tanh %248 : vector<64x16xf32>
    %cst_58 = arith.constant dense<0.000000e+00> : vector<64xf32>
    %250 = vector.multi_reduction <add>, %249, %cst_58 [1] : vector<64x16xf32> to vector<64xf32>
    %251 = vector.shape_cast %250 : vector<64xf32> to vector<64x1xf32>
    %252 = arith.mulf %249, %249 : vector<64x16xf32>
    %cst_59 = arith.constant dense<0.000000e+00> : vector<64xf32>
    %253 = vector.multi_reduction <add>, %252, %cst_59 [1] : vector<64x16xf32> to vector<64xf32>
    %254 = vector.shape_cast %253 : vector<64xf32> to vector<64x1xf32>
    %cst_60 = arith.constant 6.250000e-02 : f32
    %255 = vector.broadcast %cst_60 : f32 to vector<64x1xf32>
    %256 = arith.mulf %251, %255 : vector<64x1xf32>
    %cst_61 = arith.constant 6.250000e-02 : f32
    %257 = vector.broadcast %cst_61 : f32 to vector<64x1xf32>
    %258 = arith.mulf %254, %257 : vector<64x1xf32>
    %259 = arith.mulf %256, %256 : vector<64x1xf32>
    %260 = arith.subf %258, %259 : vector<64x1xf32>
    %261 = vector.broadcast %256 : vector<64x1xf32> to vector<64x16xf32>
    %262 = arith.subf %249, %261 : vector<64x16xf32>
    %cst_62 = arith.constant 9.99999974E-6 : f32
    %263 = vector.broadcast %cst_62 : f32 to vector<64x1xf32>
    %264 = arith.addf %260, %263 : vector<64x1xf32>
    %265 = math.rsqrt %264 : vector<64x1xf32>
    %266 = vector.broadcast %265 : vector<64x1xf32> to vector<64x16xf32>
    %267 = arith.mulf %262, %266 : vector<64x16xf32>
    %cst_63 = arith.constant dense<0.000000e+00> : vector<64x32xf32>
    %268 = tpu.matmul %267, %9, %cst_63 {dimension_numbers = #tpu.dot_dimension_numbers<[1], [0], [0], [1], [0, 0, 1, 1], [], []>} : vector<64x16xf32>, vector<16x32xf32>, vector<64x32xf32> -> vector<64x32xf32>
    %269 = vector.broadcast %11 : vector<1x32xf32> to vector<64x32xf32>
    %270 = arith.addf %268, %269 : vector<64x32xf32>
    %cst_64 = arith.constant 0.000000e+00 : f32
    %271 = vector.broadcast %cst_64 : f32 to vector<8x8xf32>
    %cst_65 = arith.constant 0.000000e+00 : f32
    %272 = vector.broadcast %cst_65 : f32 to vector<8x8xf32>
    %273 = vector.extract_strided_slice %270 {offsets = [0, 0], sizes = [8, 32], strides = [1, 1]} : vector<64x32xf32> to vector<8x32xf32>
    %cst_66 = arith.constant dense<0.000000e+00> : vector<8x32xf32>
    %274 = tpu.matmul %271, %10, %cst_66 {dimension_numbers = #tpu.dot_dimension_numbers<[1], [0], [0], [1], [0, 0, 1, 1], [], []>} : vector<8x8xf32>, vector<8x32xf32>, vector<8x32xf32> -> vector<8x32xf32>
    %275 = arith.addf %273, %274 : vector<8x32xf32>
    %276 = arith.negf %275 : vector<8x32xf32>
    %277 = math.exp %276 : vector<8x32xf32>
    %cst_67 = arith.constant 1.000000e+00 : f32
    %278 = vector.broadcast %cst_67 : f32 to vector<8x32xf32>
    %279 = arith.addf %278, %277 : vector<8x32xf32>
    %280 = arith.divf %278, %279 : vector<8x32xf32>
    %281 = math.tanh %275 : vector<8x32xf32>
    %282 = vector.extract_strided_slice %280 {offsets = [0, 0], sizes = [8, 8], strides = [1, 1]} : vector<8x32xf32> to vector<8x8xf32>
    %283 = vector.extract_strided_slice %280 {offsets = [0, 8], sizes = [8, 8], strides = [1, 1]} : vector<8x32xf32> to vector<8x8xf32>
    %284 = vector.extract_strided_slice %281 {offsets = [0, 16], sizes = [8, 8], strides = [1, 1]} : vector<8x32xf32> to vector<8x8xf32>
    %285 = vector.extract_strided_slice %280 {offsets = [0, 24], sizes = [8, 8], strides = [1, 1]} : vector<8x32xf32> to vector<8x8xf32>
    %286 = arith.mulf %283, %272 : vector<8x8xf32>
    %287 = arith.mulf %282, %284 : vector<8x8xf32>
    %288 = arith.addf %286, %287 : vector<8x8xf32>
    %289 = math.tanh %288 : vector<8x8xf32>
    %290 = arith.mulf %285, %289 : vector<8x8xf32>
    %291 = vector.extract_strided_slice %270 {offsets = [8, 0], sizes = [8, 32], strides = [1, 1]} : vector<64x32xf32> to vector<8x32xf32>
    %cst_68 = arith.constant dense<0.000000e+00> : vector<8x32xf32>
    %292 = tpu.matmul %290, %10, %cst_68 {dimension_numbers = #tpu.dot_dimension_numbers<[1], [0], [0], [1], [0, 0, 1, 1], [], []>} : vector<8x8xf32>, vector<8x32xf32>, vector<8x32xf32> -> vector<8x32xf32>
    %293 = arith.addf %291, %292 : vector<8x32xf32>
    %294 = arith.negf %293 : vector<8x32xf32>
    %295 = math.exp %294 : vector<8x32xf32>
    %cst_69 = arith.constant 1.000000e+00 : f32
    %296 = vector.broadcast %cst_69 : f32 to vector<8x32xf32>
    %297 = arith.addf %296, %295 : vector<8x32xf32>
    %298 = arith.divf %296, %297 : vector<8x32xf32>
    %299 = math.tanh %293 : vector<8x32xf32>
    %300 = vector.extract_strided_slice %298 {offsets = [0, 0], sizes = [8, 8], strides = [1, 1]} : vector<8x32xf32> to vector<8x8xf32>
    %301 = vector.extract_strided_slice %298 {offsets = [0, 8], sizes = [8, 8], strides = [1, 1]} : vector<8x32xf32> to vector<8x8xf32>
    %302 = vector.extract_strided_slice %299 {offsets = [0, 16], sizes = [8, 8], strides = [1, 1]} : vector<8x32xf32> to vector<8x8xf32>
    %303 = vector.extract_strided_slice %298 {offsets = [0, 24], sizes = [8, 8], strides = [1, 1]} : vector<8x32xf32> to vector<8x8xf32>
    %304 = arith.mulf %301, %288 : vector<8x8xf32>
    %305 = arith.mulf %300, %302 : vector<8x8xf32>
    %306 = arith.addf %304, %305 : vector<8x8xf32>
    %307 = math.tanh %306 : vector<8x8xf32>
    %308 = arith.mulf %303, %307 : vector<8x8xf32>
    %309 = vector.extract_strided_slice %270 {offsets = [16, 0], sizes = [8, 32], strides = [1, 1]} : vector<64x32xf32> to vector<8x32xf32>
    %cst_70 = arith.constant dense<0.000000e+00> : vector<8x32xf32>
    %310 = tpu.matmul %308, %10, %cst_70 {dimension_numbers = #tpu.dot_dimension_numbers<[1], [0], [0], [1], [0, 0, 1, 1], [], []>} : vector<8x8xf32>, vector<8x32xf32>, vector<8x32xf32> -> vector<8x32xf32>
    %311 = arith.addf %309, %310 : vector<8x32xf32>
    %312 = arith.negf %311 : vector<8x32xf32>
    %313 = math.exp %312 : vector<8x32xf32>
    %cst_71 = arith.constant 1.000000e+00 : f32
    %314 = vector.broadcast %cst_71 : f32 to vector<8x32xf32>
    %315 = arith.addf %314, %313 : vector<8x32xf32>
    %316 = arith.divf %314, %315 : vector<8x32xf32>
    %317 = math.tanh %311 : vector<8x32xf32>
    %318 = vector.extract_strided_slice %316 {offsets = [0, 0], sizes = [8, 8], strides = [1, 1]} : vector<8x32xf32> to vector<8x8xf32>
    %319 = vector.extract_strided_slice %316 {offsets = [0, 8], sizes = [8, 8], strides = [1, 1]} : vector<8x32xf32> to vector<8x8xf32>
    %320 = vector.extract_strided_slice %317 {offsets = [0, 16], sizes = [8, 8], strides = [1, 1]} : vector<8x32xf32> to vector<8x8xf32>
    %321 = vector.extract_strided_slice %316 {offsets = [0, 24], sizes = [8, 8], strides = [1, 1]} : vector<8x32xf32> to vector<8x8xf32>
    %322 = arith.mulf %319, %306 : vector<8x8xf32>
    %323 = arith.mulf %318, %320 : vector<8x8xf32>
    %324 = arith.addf %322, %323 : vector<8x8xf32>
    %325 = math.tanh %324 : vector<8x8xf32>
    %326 = arith.mulf %321, %325 : vector<8x8xf32>
    %327 = vector.extract_strided_slice %270 {offsets = [24, 0], sizes = [8, 32], strides = [1, 1]} : vector<64x32xf32> to vector<8x32xf32>
    %cst_72 = arith.constant dense<0.000000e+00> : vector<8x32xf32>
    %328 = tpu.matmul %326, %10, %cst_72 {dimension_numbers = #tpu.dot_dimension_numbers<[1], [0], [0], [1], [0, 0, 1, 1], [], []>} : vector<8x8xf32>, vector<8x32xf32>, vector<8x32xf32> -> vector<8x32xf32>
    %329 = arith.addf %327, %328 : vector<8x32xf32>
    %330 = arith.negf %329 : vector<8x32xf32>
    %331 = math.exp %330 : vector<8x32xf32>
    %cst_73 = arith.constant 1.000000e+00 : f32
    %332 = vector.broadcast %cst_73 : f32 to vector<8x32xf32>
    %333 = arith.addf %332, %331 : vector<8x32xf32>
    %334 = arith.divf %332, %333 : vector<8x32xf32>
    %335 = math.tanh %329 : vector<8x32xf32>
    %336 = vector.extract_strided_slice %334 {offsets = [0, 0], sizes = [8, 8], strides = [1, 1]} : vector<8x32xf32> to vector<8x8xf32>
    %337 = vector.extract_strided_slice %334 {offsets = [0, 8], sizes = [8, 8], strides = [1, 1]} : vector<8x32xf32> to vector<8x8xf32>
    %338 = vector.extract_strided_slice %335 {offsets = [0, 16], sizes = [8, 8], strides = [1, 1]} : vector<8x32xf32> to vector<8x8xf32>
    %339 = vector.extract_strided_slice %334 {offsets = [0, 24], sizes = [8, 8], strides = [1, 1]} : vector<8x32xf32> to vector<8x8xf32>
    %340 = arith.mulf %337, %324 : vector<8x8xf32>
    %341 = arith.mulf %336, %338 : vector<8x8xf32>
    %342 = arith.addf %340, %341 : vector<8x8xf32>
    %343 = math.tanh %342 : vector<8x8xf32>
    %344 = arith.mulf %339, %343 : vector<8x8xf32>
    %345 = vector.extract_strided_slice %270 {offsets = [32, 0], sizes = [8, 32], strides = [1, 1]} : vector<64x32xf32> to vector<8x32xf32>
    %cst_74 = arith.constant dense<0.000000e+00> : vector<8x32xf32>
    %346 = tpu.matmul %344, %10, %cst_74 {dimension_numbers = #tpu.dot_dimension_numbers<[1], [0], [0], [1], [0, 0, 1, 1], [], []>} : vector<8x8xf32>, vector<8x32xf32>, vector<8x32xf32> -> vector<8x32xf32>
    %347 = arith.addf %345, %346 : vector<8x32xf32>
    %348 = arith.negf %347 : vector<8x32xf32>
    %349 = math.exp %348 : vector<8x32xf32>
    %cst_75 = arith.constant 1.000000e+00 : f32
    %350 = vector.broadcast %cst_75 : f32 to vector<8x32xf32>
    %351 = arith.addf %350, %349 : vector<8x32xf32>
    %352 = arith.divf %350, %351 : vector<8x32xf32>
    %353 = math.tanh %347 : vector<8x32xf32>
    %354 = vector.extract_strided_slice %352 {offsets = [0, 0], sizes = [8, 8], strides = [1, 1]} : vector<8x32xf32> to vector<8x8xf32>
    %355 = vector.extract_strided_slice %352 {offsets = [0, 8], sizes = [8, 8], strides = [1, 1]} : vector<8x32xf32> to vector<8x8xf32>
    %356 = vector.extract_strided_slice %353 {offsets = [0, 16], sizes = [8, 8], strides = [1, 1]} : vector<8x32xf32> to vector<8x8xf32>
    %357 = vector.extract_strided_slice %352 {offsets = [0, 24], sizes = [8, 8], strides = [1, 1]} : vector<8x32xf32> to vector<8x8xf32>
    %358 = arith.mulf %355, %342 : vector<8x8xf32>
    %359 = arith.mulf %354, %356 : vector<8x8xf32>
    %360 = arith.addf %358, %359 : vector<8x8xf32>
    %361 = math.tanh %360 : vector<8x8xf32>
    %362 = arith.mulf %357, %361 : vector<8x8xf32>
    %363 = vector.extract_strided_slice %270 {offsets = [40, 0], sizes = [8, 32], strides = [1, 1]} : vector<64x32xf32> to vector<8x32xf32>
    %cst_76 = arith.constant dense<0.000000e+00> : vector<8x32xf32>
    %364 = tpu.matmul %362, %10, %cst_76 {dimension_numbers = #tpu.dot_dimension_numbers<[1], [0], [0], [1], [0, 0, 1, 1], [], []>} : vector<8x8xf32>, vector<8x32xf32>, vector<8x32xf32> -> vector<8x32xf32>
    %365 = arith.addf %363, %364 : vector<8x32xf32>
    %366 = arith.negf %365 : vector<8x32xf32>
    %367 = math.exp %366 : vector<8x32xf32>
    %cst_77 = arith.constant 1.000000e+00 : f32
    %368 = vector.broadcast %cst_77 : f32 to vector<8x32xf32>
    %369 = arith.addf %368, %367 : vector<8x32xf32>
    %370 = arith.divf %368, %369 : vector<8x32xf32>
    %371 = math.tanh %365 : vector<8x32xf32>
    %372 = vector.extract_strided_slice %370 {offsets = [0, 0], sizes = [8, 8], strides = [1, 1]} : vector<8x32xf32> to vector<8x8xf32>
    %373 = vector.extract_strided_slice %370 {offsets = [0, 8], sizes = [8, 8], strides = [1, 1]} : vector<8x32xf32> to vector<8x8xf32>
    %374 = vector.extract_strided_slice %371 {offsets = [0, 16], sizes = [8, 8], strides = [1, 1]} : vector<8x32xf32> to vector<8x8xf32>
    %375 = vector.extract_strided_slice %370 {offsets = [0, 24], sizes = [8, 8], strides = [1, 1]} : vector<8x32xf32> to vector<8x8xf32>
    %376 = arith.mulf %373, %360 : vector<8x8xf32>
    %377 = arith.mulf %372, %374 : vector<8x8xf32>
    %378 = arith.addf %376, %377 : vector<8x8xf32>
    %379 = math.tanh %378 : vector<8x8xf32>
    %380 = arith.mulf %375, %379 : vector<8x8xf32>
    %381 = vector.extract_strided_slice %270 {offsets = [48, 0], sizes = [8, 32], strides = [1, 1]} : vector<64x32xf32> to vector<8x32xf32>
    %cst_78 = arith.constant dense<0.000000e+00> : vector<8x32xf32>
    %382 = tpu.matmul %380, %10, %cst_78 {dimension_numbers = #tpu.dot_dimension_numbers<[1], [0], [0], [1], [0, 0, 1, 1], [], []>} : vector<8x8xf32>, vector<8x32xf32>, vector<8x32xf32> -> vector<8x32xf32>
    %383 = arith.addf %381, %382 : vector<8x32xf32>
    %384 = arith.negf %383 : vector<8x32xf32>
    %385 = math.exp %384 : vector<8x32xf32>
    %cst_79 = arith.constant 1.000000e+00 : f32
    %386 = vector.broadcast %cst_79 : f32 to vector<8x32xf32>
    %387 = arith.addf %386, %385 : vector<8x32xf32>
    %388 = arith.divf %386, %387 : vector<8x32xf32>
    %389 = math.tanh %383 : vector<8x32xf32>
    %390 = vector.extract_strided_slice %388 {offsets = [0, 0], sizes = [8, 8], strides = [1, 1]} : vector<8x32xf32> to vector<8x8xf32>
    %391 = vector.extract_strided_slice %388 {offsets = [0, 8], sizes = [8, 8], strides = [1, 1]} : vector<8x32xf32> to vector<8x8xf32>
    %392 = vector.extract_strided_slice %389 {offsets = [0, 16], sizes = [8, 8], strides = [1, 1]} : vector<8x32xf32> to vector<8x8xf32>
    %393 = vector.extract_strided_slice %388 {offsets = [0, 24], sizes = [8, 8], strides = [1, 1]} : vector<8x32xf32> to vector<8x8xf32>
    %394 = arith.mulf %391, %378 : vector<8x8xf32>
    %395 = arith.mulf %390, %392 : vector<8x8xf32>
    %396 = arith.addf %394, %395 : vector<8x8xf32>
    %397 = math.tanh %396 : vector<8x8xf32>
    %398 = arith.mulf %393, %397 : vector<8x8xf32>
    %399 = vector.extract_strided_slice %270 {offsets = [56, 0], sizes = [8, 32], strides = [1, 1]} : vector<64x32xf32> to vector<8x32xf32>
    %cst_80 = arith.constant dense<0.000000e+00> : vector<8x32xf32>
    %400 = tpu.matmul %398, %10, %cst_80 {dimension_numbers = #tpu.dot_dimension_numbers<[1], [0], [0], [1], [0, 0, 1, 1], [], []>} : vector<8x8xf32>, vector<8x32xf32>, vector<8x32xf32> -> vector<8x32xf32>
    %401 = arith.addf %399, %400 : vector<8x32xf32>
    %402 = arith.negf %401 : vector<8x32xf32>
    %403 = math.exp %402 : vector<8x32xf32>
    %cst_81 = arith.constant 1.000000e+00 : f32
    %404 = vector.broadcast %cst_81 : f32 to vector<8x32xf32>
    %405 = arith.addf %404, %403 : vector<8x32xf32>
    %406 = arith.divf %404, %405 : vector<8x32xf32>
    %407 = math.tanh %401 : vector<8x32xf32>
    %408 = vector.extract_strided_slice %406 {offsets = [0, 0], sizes = [8, 8], strides = [1, 1]} : vector<8x32xf32> to vector<8x8xf32>
    %409 = vector.extract_strided_slice %406 {offsets = [0, 8], sizes = [8, 8], strides = [1, 1]} : vector<8x32xf32> to vector<8x8xf32>
    %410 = vector.extract_strided_slice %407 {offsets = [0, 16], sizes = [8, 8], strides = [1, 1]} : vector<8x32xf32> to vector<8x8xf32>
    %411 = vector.extract_strided_slice %406 {offsets = [0, 24], sizes = [8, 8], strides = [1, 1]} : vector<8x32xf32> to vector<8x8xf32>
    %412 = arith.mulf %409, %396 : vector<8x8xf32>
    %413 = arith.mulf %408, %410 : vector<8x8xf32>
    %414 = arith.addf %412, %413 : vector<8x8xf32>
    %415 = math.tanh %414 : vector<8x8xf32>
    %416 = arith.mulf %411, %415 : vector<8x8xf32>
    %417 = tpu.concatenate %290, %308, %326, %344, %362, %380, %398, %416 in 0 : vector<8x8xf32>, vector<8x8xf32>, vector<8x8xf32>, vector<8x8xf32>, vector<8x8xf32>, vector<8x8xf32>, vector<8x8xf32>, vector<8x8xf32> -> vector<64x8xf32>
    %418 = vector.shape_cast %417 : vector<64x8xf32> to vector<8x8x8xf32>
    %c0_82 = arith.constant 0 : index
    %c0_83 = arith.constant 0 : index
    %c0_84 = arith.constant 0 : index
    %419 = vector.load %arg3[%c0_82, %c0_83, %c0_84] : memref<8x8x8xf32, #tpu.memory_space<vmem>>, vector<8x8x8xf32>
    tpu.vector_store %arg3[%c0_82, %c0_83, %c0_84], %418 {strides = array<i32>} : memref<8x8x8xf32, #tpu.memory_space<vmem>>, vector<8x8x8xf32>,
    return
  }
  func.func @transform_0(%arg0: i32) -> (i32, i32, i32) {
    %c0_i32 = arith.constant 0 : i32
    %c0_i32_0 = arith.constant 0 : i32
    %c0_i32_1 = arith.constant 0 : i32
    return %c0_i32, %arg0, %c0_i32_0 : i32, i32, i32
  }
  func.func @transform_1(%arg0: i32) -> (i32, i32) {
    %c0_i32 = arith.constant 0 : i32
    %c0_i32_0 = arith.constant 0 : i32
    %c0_i32_1 = arith.constant 0 : i32
    return %c0_i32, %c0_i32_0 : i32, i32
  }
  func.func @transform_2(%arg0: i32) -> (i32, i32, i32) {
    %c0_i32 = arith.constant 0 : i32
    %c0_i32_0 = arith.constant 0 : i32
    %c0_i32_1 = arith.constant 0 : i32
    return %c0_i32, %arg0, %c0_i32_0 : i32, i32, i32
  }
}

</mosaic_0001>

<bundles_post_ra>
// kernel: dqn_lstm_forward.1
= control target key start
LH: loop header
LB: loop body
LE: loop exit
PB: predicated region body
PF: predicated region fallthrough
CT: control target
= control target key end

     0   :  { %7 = vsyncpa [#allocation3], 0  ;;  %s2814_s12 = smov [#allocation2]   ;;  %s2815_s14 = smov 128   ;;  %s3529_s0 = inlined_call_operand.vmem [shape: f32[8,8,16], index: 0, kind: input, shape index: {}]   ;;  %s3530_s1 = inlined_call_operand.hbm [shape: f32[272,128], index: 1, kind: input, shape index: {}]   ;;  %s3531_s2 = inlined_call_operand.vmem [shape: f32[8,8,8], index: 2, kind: output, shape index: {}]  }
   0x1   :  { %s14_s11 = sshll.u32 %s3530_s1, 4  ;;  %s16_s13 = sshll.u32 %s2814_s12, 4  ;;  %s15_s11 = int_to_ptr.hbm [resolvable:$true] %s14_s11  ;;  %s17_s13 = int_to_ptr.vmem [resolvable:$true] %s16_s13 }
   0x2   :  { %s2816_s15 = smov 8  }
   0x3   :  { %22 = dma.hbm_to_vmem [thread:$0]  %s15_s11, 4352, %s17_s13, [#allocation3], %s2815_s14, %s2815_s14, %s2816_s15  }
   0x4   :  { %2812 = dma.done.wait [#allocation3], 4352  }
   0x5   :  { %2813 = vsyncadd [#allocation3], 4294962944  ;;  %vm69_vm0 = vcmask 130048   ;;  %v2845_v0 = vld [vmem:[%s3529_s0 + $0x38] sm:$0xff]  ;;  %v2850_v1 = vld [vmem:[%s3529_s0] sm:$0xff]  ;;  %v2817_v46 = vmov 0.0  }
   0x6   :  { %v91_v2 = vsel %vm69_vm0, %v2845_v0, 0.0  ;;  %v70_v3 = vsel %vm69_vm0, %v2850_v1, 0.0  ;;  %v101_v4 = vmul.f32 %v2845_v0, %v2845_v0  ;;  %v94_v5 = vmul.f32 %v2850_v1, %v2850_v1  ;;  %v28_v8 = vld [vmem:[#allocation2 + $0x8] sm:$0xff]  ;;  %v27_v9 = vld [vmem:[#allocation2] sm:$0xff]  ;;  %v2868_v16 = vld [vmem:[#allocation2 + $0x18] sm:$0xff]  ;;  %s2818_s1 = smov 64  }
   0x7   :  { %92 = vadd.xlane.f32.xlu0 %v91_v2  ;;  %71 = vadd.xlane.f32.xlu1 %v70_v3  ;;  %v2862_v13 = vld [vmem:[#allocation2 + $0x28] sm:$0xff]  ;;  %v2864_v14 = vld [vmem:[#allocation2 + $0x20] sm:$0xff]  ;;  %v2873_v20 = vld [vmem:[#allocation2 + $0x10] sm:$0xff]  ;;  %s2819_s20 = smov 32   ;;  %vm328_vm14 = vcmask 261120   ;;  %s2821_s5 = smov 16  }
   0x8   :  { %v123_v6 = vsel %vm69_vm0, %v101_v4, 0.0  ;;  %v102_v7 = vsel %vm69_vm0, %v94_v5, 0.0  ;;  %301 = vmatpush.msra.mxu0 %v28_v8  ;;  %2543 = vmatpush.msra.mxu1 %v28_v8  ;;  %v2905_v48 = vld [vmem:[#allocation2 + $0x30] ss:$0 sm:$0xff]  ;;  %v62_v5 = vld [vmem:[%s3529_s0 + $0x8] sm:$0xff]  ;;  %s2822_s6 = smov 104  }
   0x9   :  { %407 = vmatpush.msra.mxu2 %v2862_v13  ;;  %470 = vmatpush.msra.mxu3 %v2862_v13 }
   0xa   :  { %302 = vmatpush.msra.mxu0 %v27_v9  ;;  %2544 = vmatpush.msra.mxu1 %v27_v9 }
   0xb   :  { %408 = vmatpush.msra.mxu2 %v2864_v14  ;;  %471 = vmatpush.msra.mxu3 %v2864_v14 }
   0xc   :  { %344 = vmatpush.msrb.mxu1 %v2862_v13 }
   0xd   :  { %409 = vmatpush.msra.mxu2 %v2868_v16  ;;  %472 = vmatpush.msra.mxu3 %v2868_v16 }
   0xe   :  { %345 = vmatpush.msrb.mxu1 %v2864_v14 }
   0xf   :  { %124 = vadd.xlane.f32.xlu0 %v123_v6  ;;  %103 = vadd.xlane.f32.xlu1 %v102_v7  ;;  %v73_v6 = vsel %vm69_vm0, %v62_v5, 0.0  ;;  %v95_v7 = vmul.f32 %v62_v5, %v62_v5 }
  0x10   :  { %346 = vmatpush.msrb.mxu1 %v2868_v16  ;;  %410 = vmatpush.msra.mxu2 %v2873_v20 }
  0x11   :  { %473 = vmatpush.msra.mxu3 %v2873_v20  ;;  %v105_v8 = vsel %vm69_vm0, %v95_v7, 0.0 }
  0x12   :  { %347 = vmatpush.msrb.mxu1 %v2873_v20  ;;  %596 = vmatpush.msrb.mxu2 %v2862_v13 }
  0x13   :  { %659 = vmatpush.msrb.mxu3 %v2862_v13 }
  0x14   :  { %597 = vmatpush.msrb.mxu2 %v2864_v14 }
  0x15   :  { %660 = vmatpush.msrb.mxu3 %v2864_v14 }
  0x16   :  { %598 = vmatpush.msrb.mxu2 %v2868_v16 }
  0x17   :  { %661 = vmatpush.msrb.mxu3 %v2868_v16  ;;  %74 = vadd.xlane.f32.xlu1 %v73_v6 }
  0x18   :  { %599 = vmatpush.msrb.mxu2 %v2873_v20 }
  0x19   :  { %662 = vmatpush.msrb.mxu3 %v2873_v20 }
  0x7a   :  { %v93_v10 = vpop.xlane.xlu0 %92  ;;  %v72_v11 = vpop.xlane.xlu1 %71 }
  0x7b   :  { %v126_v12 = vmul.f32 0.0625, %v72_v11  ;;  %v133_v15 = vmul.f32 0.0625, %v93_v10 }
  0x7d   :  { %v142_v17 = vmul.f32 %v126_v12, %v126_v12  ;;  %v149_v21 = vmul.f32 %v133_v15, %v133_v15  ;;  %v165_v39 = vsub.f32 %v2845_v0, %v133_v15  ;;  %v158_v41 = vsub.f32 %v2850_v1, %v126_v12 }
  0x82   :  { %v125_v18 = vpop.xlane.xlu0 %124  ;;  %v104_v19 = vpop.xlane.xlu1 %103 }
  0x83   :  { %v141_v22 = vmul.f32 0.0625, %v125_v18  ;;  %v134_v23 = vmul.f32 0.0625, %v104_v19 }
  0x85   :  { %v157_v24 = vsub.f32 %v141_v22, %v149_v21  ;;  %v150_v25 = vsub.f32 %v134_v23, %v142_v17 }
  0x87   :  { %v173_v26 = vadd.f32 1e-05, %v157_v24  ;;  %v166_v27 = vadd.f32 1e-05, %v150_v25 }
  0x89   :  { %2559 = vrsqrt.f32 %v173_v26  ;;  %vm250_vm3 = vweird.f32 %v173_v26  ;;  %vm180_vm4 = vweird.f32 %v166_v27 }
  0x8a   :  { %2561 = vrsqrt.f32 %v166_v27  ;;  %v75_v15 = vpop.xlane.xlu1 %74 }
  0x8b   :  { %v127_v17 = vmul.f32 0.0625, %v75_v15 }
  0x8d   :  { %v143_v19 = vmul.f32 %v127_v17, %v127_v17 }
  0x8f   :  { %v2560_v28 = vpop.eup %2559 }
  0x90   :  { %v2562_v29 = vpop.eup %2561  ;;  %v245_v30 = vmul.f32 %v2560_v28, %v173_v26  ;;  %vm251_vm1 = vweird.f32 %v2560_v28 }
  0x91   :  { %v175_v31 = vmul.f32 %v2562_v29, %v166_v27  ;;  %vm181_vm2 = vweird.f32 %v2562_v29  ;;  %vm252_vm5 = vmor %vm250_vm3, %vm251_vm1 }
  0x92   :  { %v246_v32 = vmul.f32 %v2560_v28, %v245_v30  ;;  %vm182_vm6 = vmor %vm180_vm4, %vm181_vm2 }
  0x93   :  { %v176_v33 = vmul.f32 %v2562_v29, %v175_v31 }
  0x94   :  { %v247_v34 = vmul.f32 0.5, %v246_v32 }
  0x95   :  { %v177_v35 = vmul.f32 0.5, %v176_v33 }
  0x96   :  { %v248_v36 = vsub.f32 1.5, %v247_v34 }
  0x97   :  { %v178_v37 = vsub.f32 1.5, %v177_v35 }
  0x98   :  { %v249_v38 = vmul.f32 %v2560_v28, %v248_v36 }
  0x99   :  { %v179_v40 = vmul.f32 %v2562_v29, %v178_v37 }
  0x9a   :  { %v253_v42 = vsel %vm252_vm5, %v2560_v28, %v249_v38 }
  0x9b   :  { %v183_v43 = vsel %vm182_vm6, %v2562_v29, %v179_v40  ;;  %v261_v44 = vmul.f32 %v253_v42, %v165_v39  ;;  %v159_v29 = vsub.f32 %v62_v5, %v127_v17 }
  0x9c   :  { %v254_v45 = vmul.f32 %v183_v43, %v158_v41 }
  0x9d   :  { %2480 = vmatmul.msk.f32.vlgmr.msra.gmra.mxu1 %vm69_vm0, %v261_v44 }
  0x9e   :  { %2473 = vmatmul.msk.f32.vlgmr.msra.gmra.mxu0 %vm69_vm0, %v254_v45  ;;  %533 = vmatpush.msra.mxu1 %v2862_v13 }
  0xa0   :  { %534 = vmatpush.msra.mxu1 %v2864_v14 }
  0xa2   :  { %535 = vmatpush.msra.mxu1 %v2868_v16 }
  0xa4   :  { %536 = vmatpush.msra.mxu1 %v2873_v20 }
  0xa5   :  { %348 = vmatmul.f32.vlgmr.msrb.gmra.mxu1 %v2817_v46 }
  0xa6   :  { %722 = vmatpush.msrb.mxu1 %v2862_v13 }
  0xa8   :  { %723 = vmatpush.msrb.mxu1 %v2864_v14 }
  0xaa   :  { %724 = vmatpush.msrb.mxu1 %v2868_v16 }
  0xac   :  { %725 = vmatpush.msrb.mxu1 %v2873_v20 }
 0x11a   :  { %v2903_v47 = vpop.f32.mrf.mxu1 }
 0x11b   :  { %v304_v49 = vpop.f32.mrf.mxu0 }
 0x11c   :  { %v305_v50 = vadd.f32 %v2905_v48, %v304_v49 }
 0x122   :  { %v349_v51 = vpop.f32.mrf.mxu1 }
 0x123   :  { %v352_v52 = vadd.f32 %v349_v51, %v305_v50 }
 0x125   :  { %2563 = vtanh.f32 %v352_v52  ;;  %v2481_v54 = vmul.f32 -1.442695, %v352_v52 }
 0x127   :  { %2565 = vpow2.f32 %v2481_v54 }
 0x12b   :  { %v2564_v53 = vpop.eup %2563 }
 0x12c   :  { %375 = vrot.lane.b32.xlu2 %v2564_v53, %s2818_s1 }
 0x12d   :  { %v2566_v55 = vpop.eup %2565 }
 0x12e   :  { %v356_v56 = vadd.f32 1.0, %v2566_v55  ;;  %v63_v55 = vld [vmem:[%s3529_s0 + $0x10] sm:$0xff] }
 0x130   :  { %2567 = vrcp.f32 %v356_v56  ;;  %v368_v62 = vand.u32 2147483648, %v356_v56  ;;  %vm362_vm8 = vweird.f32 %v356_v56  ;;  %v366_v63 = vand.u32 2147483647, %v356_v56 }
 0x132   :  { %v369_v1 = vor.u32 1.1754944e-38, %v368_v62  ;;  %vm367_vm10 = vcmp.eq.f32.partialorder %v366_v63, 8.507059e+37 }
 0x136   :  { %v2568_v57 = vpop.eup %2567 }
 0x137   :  { %v358_v58 = vmul.f32 %v2568_v57, %v356_v56  ;;  %vm363_vm7 = vweird.f32 %v2568_v57  ;;  %v76_v56 = vsel %vm69_vm0, %v63_v55, 0.0 }
 0x138   :  { %vm364_vm9 = vmor %vm362_vm8, %vm363_vm7 }
 0x139   :  { %v359_v59 = vsub.f32 1.0, %v358_v58 }
 0x13b   :  { %v360_v60 = vmul.f32 %v2568_v57, %v359_v59 }
 0x13d   :  { %v361_v61 = vadd.f32 %v2568_v57, %v360_v60 }
 0x13f   :  { %v365_v0 = vsel %vm364_vm9, %v2568_v57, %v361_v61  ;;  %v96_v61 = vmul.f32 %v63_v55, %v63_v55 }
 0x140   :  { %v370_v3 = vsel %vm367_vm10, %v369_v1, %v365_v0 }
 0x141   :  { %v373_v9 = vmul.f32 0.0, %v370_v3  ;;  %v108_v62 = vsel %vm69_vm0, %v96_v61, 0.0 }
 0x186   :  { %v376_v2 = vpop.permute.xlu2 %375 }
 0x187   :  { %v378_v4 = vmul.f32 %v376_v2, %v370_v3 }
 0x189   :  { %380 = vrot.lane.b32.xlu2 %v378_v4, %s2819_s20 }
 0x1b2   :  { %106 = vadd.xlane.f32.xlu2 %v105_v8 }
 0x1e3   :  { %v381_v10 = vpop.permute.xlu2 %380 }
 0x1e4   :  { %v2915_v11 = vadd.f32 %v381_v10, %v373_v9 }
 0x1e6   :  { %2569 = vtanh.f32 %v2915_v11 }
 0x1ec   :  { %v2570_v12 = vpop.eup %2569 }
 0x1ed   :  { %386 = vrot.lane.b32.xlu0 %v2570_v12, %s2818_s1 }
 0x225   :  { %v107_v18 = vpop.xlane.xlu2 %106 }
 0x226   :  { %v135_v21 = vmul.f32 0.0625, %v107_v18 }
 0x228   :  { %v151_v22 = vsub.f32 %v135_v21, %v143_v19 }
 0x22a   :  { %v167_v23 = vadd.f32 1e-05, %v151_v22 }
 0x22c   :  { %2571 = vrsqrt.f32 %v167_v23  ;;  %vm190_vm11 = vweird.f32 %v167_v23 }
 0x232   :  { %v2572_v24 = vpop.eup %2571 }
 0x233   :  { %v185_v25 = vmul.f32 %v2572_v24, %v167_v23  ;;  %vm191_vm12 = vweird.f32 %v2572_v24 }
 0x234   :  { %vm192_vm13 = vmor %vm190_vm11, %vm191_vm12 }
 0x235   :  { %v186_v26 = vmul.f32 %v2572_v24, %v185_v25 }
 0x237   :  { %v187_v27 = vmul.f32 0.5, %v186_v26 }
 0x239   :  { %v188_v28 = vsub.f32 1.5, %v187_v27 }
 0x23b   :  { %v189_v30 = vmul.f32 %v2572_v24, %v188_v28 }
 0x23d   :  { %v193_v31 = vsel %vm192_vm13, %v2572_v24, %v189_v30 }
 0x23e   :  { %v255_v32 = vmul.f32 %v193_v31, %v159_v29 }
 0x240   :  { %2474 = vmatmul.msk.f32.gmra.mxu0 %vm69_vm0, %v255_v32 }
 0x25f   :  { %v387_v33 = vpop.permute.xlu0 %386 }
 0x260   :  { %v2920_v34 = vmul.f32 %v387_v33, %v370_v3 }
 0x262   :  { %391 = vrot.lane.b32.xlu1 %v2920_v34, %s2819_s20 }
 0x2bd   :  { %v307_v36 = vpop.f32.mrf.mxu0 }
 0x2be   :  { %v308_v37 = vadd.f32 %v2905_v48, %v307_v36 }
 0x2d4   :  { %v2924_v35 = vpop.permute.xlu1 %391 }
 0x2d5   :  { %2482 = vmatmul.msk.f32.vlgmr.msra.gmra.mxu2 %vm328_vm14, %v2924_v35 }
 0x2d6   :  { %785 = vmatpush.msra.mxu2 %v2862_v13 }
 0x2d8   :  { %786 = vmatpush.msra.mxu2 %v2864_v14 }
 0x2da   :  { %787 = vmatpush.msra.mxu2 %v2868_v16 }
 0x2dc   :  { %788 = vmatpush.msra.mxu2 %v2873_v20 }
 0x358   :  { %v412_v38 = vpop.f32.mrf.mxu2 }
 0x359   :  { %v415_v39 = vadd.f32 %v412_v38, %v308_v37 }
 0x35b   :  { %2573 = vtanh.f32 %v415_v39  ;;  %v2483_v41 = vmul.f32 -1.442695, %v415_v39 }
 0x35d   :  { %2575 = vpow2.f32 %v2483_v41 }
 0x361   :  { %v2574_v40 = vpop.eup %2573 }
 0x362   :  { %438 = vrot.lane.b32.xlu0 %v2574_v40, %s2818_s1 }
 0x363   :  { %v2576_v42 = vpop.eup %2575 }
 0x364   :  { %v419_v43 = vadd.f32 1.0, %v2576_v42 }
 0x366   :  { %2577 = vrcp.f32 %v419_v43  ;;  %v431_v20 = vand.u32 2147483648, %v419_v43  ;;  %vm425_vm1 = vweird.f32 %v419_v43  ;;  %v429_v49 = vand.u32 2147483647, %v419_v43 }
 0x368   :  { %v432_v51 = vor.u32 1.1754944e-38, %v431_v20  ;;  %vm430_vm3 = vcmp.eq.f32.partialorder %v429_v49, 8.507059e+37 }
 0x36c   :  { %v2578_v13 = vpop.eup %2577 }
 0x36d   :  { %v421_v14 = vmul.f32 %v2578_v13, %v419_v43  ;;  %vm426_vm15 = vweird.f32 %v2578_v13 }
 0x36e   :  { %vm427_vm2 = vmor %vm425_vm1, %vm426_vm15 }
 0x36f   :  { %v422_v44 = vsub.f32 1.0, %v421_v14 }
 0x371   :  { %v423_v16 = vmul.f32 %v2578_v13, %v422_v44 }
 0x373   :  { %v424_v45 = vadd.f32 %v2578_v13, %v423_v16 }
 0x375   :  { %v428_v50 = vsel %vm427_vm2, %v2578_v13, %v424_v45  ;;  %v64_v13 = vld [vmem:[%s3529_s0 + $0x18] sm:$0xff] }
 0x376   :  { %v433_v53 = vsel %vm430_vm3, %v432_v51, %v428_v50  ;;  %v79_v14 = vsel %vm69_vm0, %v64_v13, 0.0  ;;  %v97_v44 = vmul.f32 %v64_v13, %v64_v13 }
 0x377   :  { %v436_v57 = vmul.f32 %v433_v53, %v2915_v11 }
 0x378   :  { %v111_v16 = vsel %vm69_vm0, %v97_v44, 0.0 }
 0x3d4   :  { %v439_v52 = vpop.permute.xlu0 %438 }
 0x3d5   :  { %v441_v54 = vmul.f32 %v439_v52, %v433_v53 }
 0x3d7   :  { %443 = vrot.lane.b32.xlu0 %v441_v54, %s2819_s20 }
 0x401   :  { %77 = vadd.xlane.f32.xlu0 %v76_v56 }
 0x449   :  { %v444_v58 = vpop.permute.xlu0 %443 }
 0x44a   :  { %v2940_v59 = vadd.f32 %v444_v58, %v436_v57 }
 0x44c   :  { %2579 = vtanh.f32 %v2940_v59 }
 0x452   :  { %v2580_v60 = vpop.eup %2579 }
 0x453   :  { %449 = vrot.lane.b32.xlu1 %v2580_v60, %s2818_s1 }
 0x474   :  { %v78_v1 = vpop.xlane.xlu0 %77 }
 0x475   :  { %v128_v2 = vmul.f32 0.0625, %v78_v1 }
 0x477   :  { %v144_v3 = vmul.f32 %v128_v2, %v128_v2  ;;  %v160_v15 = vsub.f32 %v63_v55, %v128_v2 }
 0x47d   :  { %109 = vadd.xlane.f32.xlu1 %v108_v62 }
 0x485   :  { %112 = vadd.xlane.f32.xlu1 %v111_v16 }
 0x4c5   :  { %v450_v63 = vpop.permute.xlu1 %449 }
 0x4c6   :  { %v2945_v0 = vmul.f32 %v450_v63, %v433_v53 }
 0x4c8   :  { %454 = vrot.lane.b32.xlu2 %v2945_v0, %s2819_s20 }
 0x4f0   :  { %v110_v4 = vpop.xlane.xlu1 %109 }
 0x4f1   :  { %v136_v5 = vmul.f32 0.0625, %v110_v4 }
 0x4f3   :  { %v152_v6 = vsub.f32 %v136_v5, %v144_v3 }
 0x4f5   :  { %v168_v7 = vadd.f32 1e-05, %v152_v6 }
 0x4f7   :  { %2581 = vrsqrt.f32 %v168_v7  ;;  %vm200_vm4 = vweird.f32 %v168_v7 }
 0x4f8   :  { %v113_v53 = vpop.xlane.xlu1 %112 }
 0x4f9   :  { %v137_v55 = vmul.f32 0.0625, %v113_v53 }
 0x4fd   :  { %v2582_v8 = vpop.eup %2581 }
 0x4fe   :  { %v195_v9 = vmul.f32 %v2582_v8, %v168_v7  ;;  %vm201_vm5 = vweird.f32 %v2582_v8 }
 0x4ff   :  { %vm202_vm6 = vmor %vm200_vm4, %vm201_vm5 }
 0x500   :  { %v196_v10 = vmul.f32 %v2582_v8, %v195_v9 }
 0x502   :  { %v197_v11 = vmul.f32 0.5, %v196_v10 }
 0x504   :  { %v198_v12 = vsub.f32 1.5, %v197_v11 }
 0x506   :  { %v199_v17 = vmul.f32 %v2582_v8, %v198_v12 }
 0x508   :  { %v203_v18 = vsel %vm202_vm6, %v2582_v8, %v199_v17 }
 0x509   :  { %v256_v19 = vmul.f32 %v203_v18, %v160_v15 }
 0x50b   :  { %2475 = vmatmul.msk.f32.gmra.mxu0 %vm69_vm0, %v256_v19 }
 0x522   :  { %v2950_v21 = vpop.permute.xlu2 %454 }
 0x523   :  { %2484 = vmatmul.msk.f32.vlgmr.msra.gmra.mxu3 %vm328_vm14, %v2950_v21 }
 0x588   :  { %v310_v22 = vpop.f32.mrf.mxu0 }
 0x589   :  { %v311_v23 = vadd.f32 %v2905_v48, %v310_v22 }
 0x5a6   :  { %v475_v24 = vpop.f32.mrf.mxu3 }
 0x5a7   :  { %v478_v25 = vadd.f32 %v475_v24, %v311_v23 }
 0x5a9   :  { %2583 = vtanh.f32 %v478_v25  ;;  %v2485_v27 = vmul.f32 -1.442695, %v478_v25 }
 0x5ab   :  { %2585 = vpow2.f32 %v2485_v27 }
 0x5af   :  { %v2584_v26 = vpop.eup %2583 }
 0x5b0   :  { %501 = vrot.lane.b32.xlu2 %v2584_v26, %s2818_s1 }
 0x5b1   :  { %v2586_v28 = vpop.eup %2585 }
 0x5b2   :  { %v482_v29 = vadd.f32 1.0, %v2586_v28 }
 0x5b4   :  { %2587 = vrcp.f32 %v482_v29  ;;  %v494_v37 = vand.u32 2147483648, %v482_v29  ;;  %vm488_vm8 = vweird.f32 %v482_v29  ;;  %v492_v38 = vand.u32 2147483647, %v482_v29 }
 0x5b6   :  { %v495_v40 = vor.u32 1.1754944e-38, %v494_v37  ;;  %vm493_vm10 = vcmp.eq.f32.partialorder %v492_v38, 8.507059e+37 }
 0x5ba   :  { %v2588_v30 = vpop.eup %2587 }
 0x5bb   :  { %v484_v31 = vmul.f32 %v2588_v30, %v482_v29  ;;  %vm489_vm7 = vweird.f32 %v2588_v30 }
 0x5bc   :  { %vm490_vm9 = vmor %vm488_vm8, %vm489_vm7 }
 0x5bd   :  { %v485_v32 = vsub.f32 1.0, %v484_v31 }
 0x5bf   :  { %v486_v33 = vmul.f32 %v2588_v30, %v485_v32  ;;  %v65_v32 = vld [vmem:[%s3529_s0 + $0x20] sm:$0xff] }
 0x5c1   :  { %v487_v36 = vadd.f32 %v2588_v30, %v486_v33  ;;  %v82_v33 = vsel %vm69_vm0, %v65_v32, 0.0 }
 0x5c3   :  { %v491_v39 = vsel %vm490_vm9, %v2588_v30, %v487_v36 }
 0x5c4   :  { %v496_v42 = vsel %vm493_vm10, %v495_v40, %v491_v39  ;;  %v98_v40 = vmul.f32 %v65_v32, %v65_v32 }
 0x5c5   :  { %v499_v45 = vmul.f32 %v496_v42, %v2940_v59 }
 0x60a   :  { %v502_v41 = vpop.permute.xlu2 %501 }
 0x60b   :  { %v504_v43 = vmul.f32 %v502_v41, %v496_v42  ;;  %v114_v41 = vsel %vm69_vm0, %v98_v40, 0.0 }
 0x60d   :  { %506 = vrot.lane.b32.xlu2 %v504_v43, %s2819_s20 }
 0x636   :  { %80 = vadd.xlane.f32.xlu2 %v79_v14 }
 0x667   :  { %v507_v20 = vpop.permute.xlu2 %506 }
 0x668   :  { %v509_v49 = vadd.f32 %v507_v20, %v499_v45 }
 0x66a   :  { %2589 = vtanh.f32 %v509_v49 }
 0x670   :  { %v2590_v50 = vpop.eup %2589 }
 0x671   :  { %512 = vrot.lane.b32.xlu0 %v2590_v50, %s2818_s1 }
 0x6a9   :  { %v81_v51 = vpop.xlane.xlu2 %80 }
 0x6aa   :  { %v129_v52 = vmul.f32 0.0625, %v81_v51 }
 0x6ac   :  { %v145_v54 = vmul.f32 %v129_v52, %v129_v52  ;;  %v161_v63 = vsub.f32 %v64_v13, %v129_v52 }
 0x6ae   :  { %v153_v56 = vsub.f32 %v137_v55, %v145_v54 }
 0x6b0   :  { %v169_v57 = vadd.f32 1e-05, %v153_v56 }
 0x6b2   :  { %2591 = vrsqrt.f32 %v169_v57  ;;  %vm210_vm11 = vweird.f32 %v169_v57 }
 0x6b8   :  { %v2592_v58 = vpop.eup %2591 }
 0x6b9   :  { %v205_v60 = vmul.f32 %v2592_v58, %v169_v57  ;;  %vm211_vm12 = vweird.f32 %v2592_v58 }
 0x6ba   :  { %vm212_vm13 = vmor %vm210_vm11, %vm211_vm12 }
 0x6bb   :  { %v206_v61 = vmul.f32 %v2592_v58, %v205_v60 }
 0x6bd   :  { %v207_v62 = vmul.f32 0.5, %v206_v61 }
 0x6bf   :  { %v208_v59 = vsub.f32 1.5, %v207_v62 }
 0x6c1   :  { %v209_v1 = vmul.f32 %v2592_v58, %v208_v59 }
 0x6c3   :  { %v213_v2 = vsel %vm212_vm13, %v2592_v58, %v209_v1 }
 0x6c4   :  { %v257_v3 = vmul.f32 %v213_v2, %v161_v63 }
 0x6c6   :  { %2476 = vmatmul.msk.f32.gmra.mxu0 %vm69_vm0, %v257_v3 }
 0x6e3   :  { %v513_v4 = vpop.permute.xlu0 %512 }
 0x6e4   :  { %v2965_v5 = vmul.f32 %v513_v4, %v496_v42 }
 0x6e6   :  { %517 = vrot.lane.b32.xlu1 %v2965_v5, %s2819_s20 }
 0x710   :  { %83 = vadd.xlane.f32.xlu1 %v82_v33 }
 0x743   :  { %v313_v7 = vpop.f32.mrf.mxu0 }
 0x744   :  { %v314_v8 = vadd.f32 %v2905_v48, %v313_v7 }
 0x758   :  { %v2969_v6 = vpop.permute.xlu1 %517 }
 0x759   :  { %2486 = vmatmul.msk.f32.vlgmr.msra.gmra.mxu1 %vm328_vm14, %v2969_v6 }
 0x783   :  { %v84_v13 = vpop.xlane.xlu1 %83 }
 0x784   :  { %v130_v14 = vmul.f32 0.0625, %v84_v13 }
 0x786   :  { %v146_v44 = vmul.f32 %v130_v14, %v130_v14  ;;  %v162_v55 = vsub.f32 %v65_v32, %v130_v14 }
 0x7d6   :  { %v538_v9 = vpop.f32.mrf.mxu1 }
 0x7d7   :  { %v541_v10 = vadd.f32 %v538_v9, %v314_v8 }
 0x7d9   :  { %2593 = vtanh.f32 %v541_v10  ;;  %v2487_v12 = vmul.f32 -1.442695, %v541_v10 }
 0x7db   :  { %2595 = vpow2.f32 %v2487_v12 }
 0x7df   :  { %v2594_v11 = vpop.eup %2593 }
 0x7e0   :  { %564 = vrot.lane.b32.xlu0 %v2594_v11, %s2818_s1 }
 0x7e1   :  { %v2596_v15 = vpop.eup %2595 }
 0x7e2   :  { %v545_v17 = vadd.f32 1.0, %v2596_v15 }
 0x7e4   :  { %2597 = vrcp.f32 %v545_v17  ;;  %v557_v25 = vand.u32 2147483648, %v545_v17  ;;  %vm551_vm1 = vweird.f32 %v545_v17  ;;  %v555_v26 = vand.u32 2147483647, %v545_v17 }
 0x7e6   :  { %v558_v28 = vor.u32 1.1754944e-38, %v557_v25  ;;  %vm556_vm3 = vcmp.eq.f32.partialorder %v555_v26, 8.507059e+37 }
 0x7ea   :  { %v2598_v18 = vpop.eup %2597 }
 0x7eb   :  { %v547_v19 = vmul.f32 %v2598_v18, %v545_v17  ;;  %vm552_vm15 = vweird.f32 %v2598_v18 }
 0x7ec   :  { %vm553_vm2 = vmor %vm551_vm1, %vm552_vm15 }
 0x7ed   :  { %v548_v22 = vsub.f32 1.0, %v547_v19 }
 0x7ef   :  { %v549_v23 = vmul.f32 %v2598_v18, %v548_v22 }
 0x7f1   :  { %v550_v24 = vadd.f32 %v2598_v18, %v549_v23 }
 0x7f3   :  { %v554_v27 = vsel %vm553_vm2, %v2598_v18, %v550_v24  ;;  %v66_v24 = vld [vmem:[%s3529_s0 + $0x28] sm:$0xff] }
 0x7f4   :  { %v559_v30 = vsel %vm556_vm3, %v558_v28, %v554_v27  ;;  %v85_v25 = vsel %vm69_vm0, %v66_v24, 0.0  ;;  %v99_v26 = vmul.f32 %v66_v24, %v66_v24 }
 0x7f5   :  { %v562_v36 = vmul.f32 %v559_v30, %v509_v49 }
 0x7f6   :  { %v117_v27 = vsel %vm69_vm0, %v99_v26, 0.0 }
 0x852   :  { %v565_v29 = vpop.permute.xlu0 %564 }
 0x853   :  { %v567_v31 = vmul.f32 %v565_v29, %v559_v30 }
 0x855   :  { %569 = vrot.lane.b32.xlu0 %v567_v31, %s2819_s20 }
 0x8c7   :  { %v570_v37 = vpop.permute.xlu0 %569 }
 0x8c8   :  { %v2980_v38 = vadd.f32 %v570_v37, %v562_v36 }
 0x8ca   :  { %2599 = vtanh.f32 %v2980_v38 }
 0x8d0   :  { %v2600_v39 = vpop.eup %2599 }
 0x8d1   :  { %575 = vrot.lane.b32.xlu0 %v2600_v39, %s2818_s1 }
 0x8fb   :  { %115 = vadd.xlane.f32.xlu0 %v114_v41 }
 0x903   :  { %118 = vadd.xlane.f32.xlu0 %v117_v27 }
 0x943   :  { %v576_v42 = vpop.permute.xlu0 %575 }
 0x944   :  { %v2985_v43 = vmul.f32 %v576_v42, %v559_v30 }
 0x946   :  { %580 = vrot.lane.b32.xlu2 %v2985_v43, %s2819_s20 }
 0x96e   :  { %v116_v16 = vpop.xlane.xlu0 %115 }
 0x96f   :  { %v138_v45 = vmul.f32 0.0625, %v116_v16 }
 0x971   :  { %v154_v20 = vsub.f32 %v138_v45, %v146_v44 }
 0x973   :  { %v170_v49 = vadd.f32 1e-05, %v154_v20 }
 0x975   :  { %2601 = vrsqrt.f32 %v170_v49  ;;  %vm220_vm4 = vweird.f32 %v170_v49 }
 0x976   :  { %v119_v36 = vpop.xlane.xlu0 %118 }
 0x977   :  { %v139_v39 = vmul.f32 0.0625, %v119_v36 }
 0x97b   :  { %v2602_v50 = vpop.eup %2601 }
 0x97c   :  { %v215_v51 = vmul.f32 %v2602_v50, %v170_v49  ;;  %vm221_vm5 = vweird.f32 %v2602_v50 }
 0x97d   :  { %vm222_vm6 = vmor %vm220_vm4, %vm221_vm5 }
 0x97e   :  { %v216_v52 = vmul.f32 %v2602_v50, %v215_v51 }
 0x980   :  { %v217_v53 = vmul.f32 0.5, %v216_v52 }
 0x982   :  { %v218_v54 = vsub.f32 1.5, %v217_v53 }
 0x984   :  { %v219_v56 = vmul.f32 %v2602_v50, %v218_v54 }
 0x986   :  { %v223_v57 = vsel %vm222_vm6, %v2602_v50, %v219_v56 }
 0x987   :  { %v258_v58 = vmul.f32 %v223_v57, %v162_v55 }
 0x989   :  { %2477 = vmatmul.msk.f32.gmra.mxu0 %vm69_vm0, %v258_v58 }
 0x9a0   :  { %v2990_v60 = vpop.permute.xlu2 %580 }
 0x9a1   :  { %2488 = vmatmul.msk.f32.vlgmr.msrb.gmra.mxu2 %vm328_vm14, %v2990_v60 }
 0xa06   :  { %v316_v61 = vpop.f32.mrf.mxu0 }
 0xa07   :  { %v317_v62 = vadd.f32 %v2905_v48, %v316_v61 }
 0xa24   :  { %v601_v59 = vpop.f32.mrf.mxu2 }
 0xa25   :  { %v604_v63 = vadd.f32 %v601_v59, %v317_v62 }
 0xa27   :  { %2603 = vtanh.f32 %v604_v63  ;;  %v2489_v2 = vmul.f32 -1.442695, %v604_v63 }
 0xa29   :  { %2605 = vpow2.f32 %v2489_v2 }
 0xa2d   :  { %v2604_v1 = vpop.eup %2603 }
 0xa2e   :  { %627 = vrot.lane.b32.xlu2 %v2604_v1, %s2818_s1 }
 0xa2f   :  { %v2606_v3 = vpop.eup %2605 }
 0xa30   :  { %v608_v4 = vadd.f32 1.0, %v2606_v3 }
 0xa32   :  { %2607 = vrcp.f32 %v608_v4  ;;  %v620_v12 = vand.u32 2147483648, %v608_v4  ;;  %vm614_vm8 = vweird.f32 %v608_v4  ;;  %v618_v15 = vand.u32 2147483647, %v608_v4 }
 0xa34   :  { %v621_v18 = vor.u32 1.1754944e-38, %v620_v12  ;;  %vm619_vm10 = vcmp.eq.f32.partialorder %v618_v15, 8.507059e+37  ;;  %v67_v15 = vld [vmem:[%s3529_s0 + $0x30] sm:$0xff]  ;;  %s2820_s0 = smov 112  }
 0xa38   :  { %v2608_v7 = vpop.eup %2607 }
 0xa39   :  { %v610_v8 = vmul.f32 %v2608_v7, %v608_v4  ;;  %vm615_vm7 = vweird.f32 %v2608_v7 }
 0xa3a   :  { %vm616_vm9 = vmor %vm614_vm8, %vm615_vm7 }
 0xa3b   :  { %v611_v9 = vsub.f32 1.0, %v610_v8 }
 0xa3d   :  { %v612_v10 = vmul.f32 %v2608_v7, %v611_v9 }
 0xa3f   :  { %v613_v11 = vadd.f32 %v2608_v7, %v612_v10 }
 0xa41   :  { %v617_v17 = vsel %vm616_vm9, %v2608_v7, %v613_v11 }
 0xa42   :  { %v622_v22 = vsel %vm619_vm10, %v621_v18, %v617_v17  ;;  %v88_v17 = vsel %vm69_vm0, %v67_v15, 0.0 }
 0xa43   :  { %v625_v28 = vmul.f32 %v622_v22, %v2980_v38 }
 0xa88   :  { %v628_v19 = vpop.permute.xlu2 %627 }
 0xa89   :  { %v630_v23 = vmul.f32 %v628_v19, %v622_v22 }
 0xa8b   :  { %632 = vrot.lane.b32.xlu2 %v630_v23, %s2819_s20 }
 0xab4   :  { %86 = vadd.xlane.f32.xlu2 %v85_v25 }
 0xae5   :  { %v633_v29 = vpop.permute.xlu2 %632 }
 0xae6   :  { %v635_v30 = vadd.f32 %v633_v29, %v625_v28  ;;  %v866_v28 = vmul.f32 %v2920_v34, %v2920_v34 }
 0xae8   :  { %2609 = vtanh.f32 %v635_v30 }
 0xaee   :  { %v2610_v31 = vpop.eup %2609 }
 0xaef   :  { %638 = vrot.lane.b32.xlu1 %v2610_v31, %s2818_s1 }
 0xb27   :  { %v87_v32 = vpop.xlane.xlu2 %86 }
 0xb28   :  { %v131_v33 = vmul.f32 0.0625, %v87_v32 }
 0xb2a   :  { %v147_v37 = vmul.f32 %v131_v33, %v131_v33  ;;  %v163_v16 = vsub.f32 %v66_v24, %v131_v33  ;;  %v100_v24 = vmul.f32 %v67_v15, %v67_v15 }
 0xb2c   :  { %v155_v40 = vsub.f32 %v139_v39, %v147_v37  ;;  %v120_v25 = vsel %vm69_vm0, %v100_v24, 0.0  ;;  %v842_v39 = vsel %vm328_vm14, %v2924_v35, 0.0  ;;  %v34_v24 = vld [vmem:[#allocation2 + $0x38] sm:$0xff] }
 0xb2e   :  { %v171_v41 = vadd.f32 1e-05, %v155_v40 }
 0xb30   :  { %2611 = vrsqrt.f32 %v171_v41  ;;  %vm230_vm11 = vweird.f32 %v171_v41 }
 0xb36   :  { %v2612_v42 = vpop.eup %2611 }
 0xb37   :  { %v225_v13 = vmul.f32 %v2612_v42, %v171_v41  ;;  %vm231_vm12 = vweird.f32 %v2612_v42 }
 0xb38   :  { %vm232_vm13 = vmor %vm230_vm11, %vm231_vm12 }
 0xb39   :  { %v226_v14 = vmul.f32 %v2612_v42, %v225_v13 }
 0xb3b   :  { %v227_v44 = vmul.f32 0.5, %v226_v14 }
 0xb3d   :  { %v228_v38 = vsub.f32 1.5, %v227_v44 }
 0xb3f   :  { %v229_v45 = vmul.f32 %v2612_v42, %v228_v38 }
 0xb41   :  { %v233_v20 = vsel %vm232_vm13, %v2612_v42, %v229_v45 }
 0xb42   :  { %v259_v49 = vmul.f32 %v233_v20, %v163_v16 }
 0xb44   :  { %2478 = vmatmul.msk.f32.gmra.mxu0 %vm69_vm0, %v259_v49 }
 0xb61   :  { %v639_v50 = vpop.permute.xlu1 %638 }
 0xb62   :  { %v3005_v51 = vmul.f32 %v639_v50, %v622_v22 }
 0xb64   :  { %643 = vrot.lane.b32.xlu0 %v3005_v51, %s2819_s20 }
 0xbc1   :  { %v319_v53 = vpop.f32.mrf.mxu0 }
 0xbc2   :  { %v320_v54 = vadd.f32 %v2905_v48, %v319_v53 }
 0xbd6   :  { %v3009_v52 = vpop.permute.xlu0 %643 }
 0xbd7   :  { %2490 = vmatmul.msk.f32.vlgmr.msrb.gmra.mxu3 %vm328_vm14, %v3009_v52 }
 0xc5a   :  { %v664_v55 = vpop.f32.mrf.mxu3 }
 0xc5b   :  { %v667_v56 = vadd.f32 %v664_v55, %v320_v54 }
 0xc5d   :  { %2613 = vtanh.f32 %v667_v56  ;;  %v2491_v58 = vmul.f32 -1.442695, %v667_v56 }
 0xc5f   :  { %2615 = vpow2.f32 %v2491_v58 }
 0xc63   :  { %v2614_v57 = vpop.eup %2613 }
 0xc64   :  { %690 = vrot.lane.b32.xlu1 %v2614_v57, %s2818_s1 }
 0xc65   :  { %v2616_v61 = vpop.eup %2615 }
 0xc66   :  { %v671_v62 = vadd.f32 1.0, %v2616_v61 }
 0xc68   :  { %2617 = vrcp.f32 %v671_v62  ;;  %v683_v4 = vand.u32 2147483648, %v671_v62  ;;  %vm677_vm1 = vweird.f32 %v671_v62  ;;  %v681_v7 = vand.u32 2147483647, %v671_v62 }
 0xc6a   :  { %v684_v9 = vor.u32 1.1754944e-38, %v683_v4  ;;  %vm682_vm3 = vcmp.eq.f32.partialorder %v681_v7, 8.507059e+37 }
 0xc6e   :  { %v2618_v59 = vpop.eup %2617 }
 0xc6f   :  { %v673_v63 = vmul.f32 %v2618_v59, %v671_v62  ;;  %vm678_vm15 = vweird.f32 %v2618_v59 }
 0xc70   :  { %vm679_vm2 = vmor %vm677_vm1, %vm678_vm15  ;;  %vm1156_vm15 = vcmask 523264  }
 0xc71   :  { %v674_v1 = vsub.f32 1.0, %v673_v63 }
 0xc73   :  { %v675_v2 = vmul.f32 %v2618_v59, %v674_v1 }
 0xc75   :  { %v676_v3 = vadd.f32 %v2618_v59, %v675_v2 }
 0xc77   :  { %v680_v8 = vsel %vm679_vm2, %v2618_v59, %v676_v3 }
 0xc78   :  { %v685_v11 = vsel %vm682_vm3, %v684_v9, %v680_v8 }
 0xc79   :  { %v688_v18 = vmul.f32 %v685_v11, %v635_v30 }
 0xcd6   :  { %v691_v10 = vpop.permute.xlu1 %690 }
 0xcd7   :  { %v693_v12 = vmul.f32 %v691_v10, %v685_v11 }
 0xcd9   :  { %695 = vrot.lane.b32.xlu1 %v693_v12, %s2819_s20 }
 0xd03   :  { %89 = vadd.xlane.f32.xlu1 %v88_v17 }
 0xd4b   :  { %v696_v19 = vpop.permute.xlu1 %695 }
 0xd4c   :  { %v3020_v22 = vadd.f32 %v696_v19, %v688_v18  ;;  %v37_v18 = vld [vmem:[#allocation2 + $0x50] sm:$0xff]  ;;  %v36_v19 = vld [vmem:[#allocation2 + $0x48] sm:$0xff] }
 0xd4d   :  { %1119 = vmatpush.msra.mxu3 %v37_v18 }
 0xd4e   :  { %2619 = vtanh.f32 %v3020_v22 }
 0xd4f   :  { %1120 = vmatpush.msra.mxu3 %v36_v19 }
 0xd54   :  { %v2620_v23 = vpop.eup %2619 }
 0xd55   :  { %701 = vrot.lane.b32.xlu0 %v2620_v23, %s2818_s1  ;;  %v35_v23 = vld [vmem:[#allocation2 + $0x40] sm:$0xff] }
 0xd56   :  { %1121 = vmatpush.msra.mxu3 %v35_v23 }
 0xd58   :  { %1122 = vmatpush.msra.mxu3 %v34_v24 }
 0xd76   :  { %v90_v29 = vpop.xlane.xlu1 %89 }
 0xd77   :  { %v132_v30 = vmul.f32 0.0625, %v90_v29 }
 0xd79   :  { %v148_v31 = vmul.f32 %v132_v30, %v132_v30  ;;  %v164_v44 = vsub.f32 %v67_v15, %v132_v30 }
 0xd7f   :  { %121 = vadd.xlane.f32.xlu0 %v120_v25 }
 0xdc7   :  { %v702_v26 = vpop.permute.xlu0 %701 }
 0xdc8   :  { %v3025_v27 = vmul.f32 %v702_v26, %v685_v11 }
 0xdca   :  { %706 = vrot.lane.b32.xlu2 %v3025_v27, %s2819_s20 }
 0xdd2   :  { %882 = vrot.lane.b32.xlu2 %v866_v28, %s2819_s20 }
 0xdf2   :  { %v122_v32 = vpop.xlane.xlu0 %121 }
 0xdf3   :  { %v140_v33 = vmul.f32 0.0625, %v122_v32 }
 0xdf5   :  { %v156_v36 = vsub.f32 %v140_v33, %v148_v31 }
 0xdf7   :  { %v172_v37 = vadd.f32 1e-05, %v156_v36 }
 0xdf9   :  { %2621 = vrsqrt.f32 %v172_v37  ;;  %vm240_vm4 = vweird.f32 %v172_v37 }
 0xdfb   :  { %843 = vadd.xlane.f32.xlu2 %v842_v39 }
 0xdff   :  { %v2622_v40 = vpop.eup %2621 }
 0xe00   :  { %v235_v41 = vmul.f32 %v2622_v40, %v172_v37  ;;  %vm241_vm5 = vweird.f32 %v2622_v40 }
 0xe01   :  { %vm242_vm6 = vmor %vm240_vm4, %vm241_vm5 }
 0xe02   :  { %v236_v42 = vmul.f32 %v2622_v40, %v235_v41 }
 0xe04   :  { %v237_v13 = vmul.f32 0.5, %v236_v42 }
 0xe06   :  { %v238_v14 = vsub.f32 1.5, %v237_v13 }
 0xe08   :  { %v239_v38 = vmul.f32 %v2622_v40, %v238_v14 }
 0xe0a   :  { %v243_v16 = vsel %vm242_vm6, %v2622_v40, %v239_v38 }
 0xe0b   :  { %v260_v45 = vmul.f32 %v243_v16, %v164_v44  ;;  %v3051_v44 = vld [vmem:[#allocation2 + $0x58] ss:$0 sm:$0xff] }
 0xe0d   :  { %2479 = vmatmul.msk.f32.gmra.mxu0 %vm69_vm0, %v260_v45 }
 0xe24   :  { %v3035_v20 = vpop.permute.xlu2 %706 }
 0xe25   :  { %2492 = vmatmul.msk.f32.vlgmr.msrb.gmra.mxu1 %vm328_vm14, %v3035_v20 }
 0xe2c   :  { %v883_v35 = vpop.permute.xlu2 %882 }
 0xe2d   :  { %v906_v49 = vsel %vm328_vm14, %v883_v35, 0.0 }
 0xe2e   :  { %907 = vadd.xlane.f32.xlu1 %v906_v49 }
 0xe6e   :  { %v844_v50 = vpop.xlane.xlu2 %843 }
 0xe6f   :  { %v930_v53 = vmul.f32 0.03125, %v844_v50  ;;  %v867_v50 = vmul.f32 %v2945_v0, %v2945_v0 }
 0xe71   :  { %v946_v57 = vmul.f32 %v930_v53, %v930_v53  ;;  %v962_v9 = vsub.f32 %v2920_v34, %v930_v53 }
 0xe8a   :  { %v322_v54 = vpop.f32.mrf.mxu0 }
 0xe8b   :  { %v323_v55 = vadd.f32 %v2905_v48, %v322_v54 }
 0xea1   :  { %v908_v56 = vpop.xlane.xlu1 %907 }
 0xea2   :  { %v938_v58 = vmul.f32 0.03125, %v908_v56  ;;  %v727_v61 = vpop.f32.mrf.mxu1  ;;  %v45_v56 = vld [vmem:[#allocation2 + $0x90] sm:$0xff] }
 0xea3   :  { %v730_v62 = vadd.f32 %v727_v61, %v323_v55  ;;  %v46_v55 = vld [vmem:[#allocation2 + $0x98] sm:$0xff] }
 0xea4   :  { %v954_v59 = vsub.f32 %v938_v58, %v946_v57  ;;  %1382 = vmatpush.msra.mxu1 %v46_v55  ;;  %v44_v57 = vld [vmem:[#allocation2 + $0x88] sm:$0xff]  ;;  %v43_v58 = vld [vmem:[#allocation2 + $0x80] sm:$0xff]  ;;  %v42_v61 = vld [vmem:[#allocation2 + $0x78] sm:$0xff] }
 0xea5   :  { %2623 = vtanh.f32 %v730_v62  ;;  %v2493_v12 = vmul.f32 -1.442695, %v730_v62  ;;  %v41_v62 = vld [vmem:[#allocation2 + $0x70] sm:$0xff] }
 0xea6   :  { %v970_v63 = vadd.f32 1e-05, %v954_v59  ;;  %1383 = vmatpush.msra.mxu1 %v45_v56  ;;  %v40_v59 = vld [vmem:[#allocation2 + $0x68] sm:$0xff]  ;;  %v2783_v55 = vld [vmem:[#allocation2 + $0x30] ss:$0 sm:$0xff] }
 0xea7   :  { %v326_v56 = vadd.f32 %v2783_v55, %v2903_v47 }
 0xea8   :  { %2625 = vrsqrt.f32 %v970_v63  ;;  %vm984_vm8 = vweird.f32 %v970_v63  ;;  %1384 = vmatpush.msra.mxu1 %v44_v57 }
 0xea9   :  { %2627 = vpow2.f32 %v2493_v12 }
 0xeaa   :  { %1385 = vmatpush.msra.mxu1 %v43_v58  ;;  %v869_v58 = vmul.f32 %v2985_v43, %v2985_v43 }
 0xeab   :  { %v2624_v1 = vpop.eup %2623 }
 0xeac   :  { %753 = vrot.lane.b32.xlu1 %v2624_v1, %s2818_s1  ;;  %1386 = vmatpush.msra.mxu1 %v42_v61 }
 0xeae   :  { %v2626_v2 = vpop.eup %2625  ;;  %1387 = vmatpush.msra.mxu1 %v41_v62 }
 0xeaf   :  { %v979_v3 = vmul.f32 %v2626_v2, %v970_v63  ;;  %vm985_vm7 = vweird.f32 %v2626_v2  ;;  %v2628_v15 = vpop.eup %2627  ;;  %v39_v63 = vld [vmem:[#allocation2 + $0x60] sm:$0xff] }
 0xeb0   :  { %vm986_vm9 = vmor %vm984_vm8, %vm985_vm7  ;;  %v734_v17 = vadd.f32 1.0, %v2628_v15  ;;  %1388 = vmatpush.msra.mxu1 %v40_v59  ;;  %v845_v15 = vsel %vm328_vm14, %v2950_v21, 0.0 }
 0xeb1   :  { %v980_v4 = vmul.f32 %v2626_v2, %v979_v3 }
 0xeb2   :  { %2629 = vrcp.f32 %v734_v17  ;;  %v746_v30 = vand.u32 2147483648, %v734_v17  ;;  %vm740_vm11 = vweird.f32 %v734_v17  ;;  %v744_v31 = vand.u32 2147483647, %v734_v17  ;;  %1389 = vmatpush.msra.mxu1 %v39_v63 }
 0xeb3   :  { %v981_v7 = vmul.f32 0.5, %v980_v4 }
 0xeb4   :  { %v747_v33 = vor.u32 1.1754944e-38, %v746_v30  ;;  %vm745_vm13 = vcmp.eq.f32.partialorder %v744_v31, 8.507059e+37 }
 0xeb5   :  { %v982_v8 = vsub.f32 1.5, %v981_v7 }
 0xeb7   :  { %v983_v48 = vmul.f32 %v2626_v2, %v982_v8 }
 0xeb8   :  { %v2630_v25 = vpop.eup %2629 }
 0xeb9   :  { %v987_v10 = vsel %vm986_vm9, %v2626_v2, %v983_v48  ;;  %v736_v34 = vmul.f32 %v2630_v25, %v734_v17  ;;  %vm741_vm10 = vweird.f32 %v2630_v25 }
 0xeba   :  { %v1058_v11 = vmul.f32 %v987_v10, %v962_v9  ;;  %vm742_vm12 = vmor %vm740_vm11, %vm741_vm10 }
 0xebb   :  { %v737_v26 = vsub.f32 1.0, %v736_v34 }
 0xebc   :  { %1075 = vrot.lane.b32.xlu0 %v1058_v11, %s2819_s20 }
 0xebd   :  { %v738_v28 = vmul.f32 %v2630_v25, %v737_v26  ;;  %v868_v26 = vmul.f32 %v2965_v5, %v2965_v5 }
 0xebf   :  { %v739_v29 = vadd.f32 %v2630_v25, %v738_v28 }
 0xec1   :  { %v743_v32 = vsel %vm742_vm12, %v2630_v25, %v739_v29 }
 0xec2   :  { %v748_v36 = vsel %vm745_vm13, %v747_v33, %v743_v32 }
 0xec3   :  { %v751_v41 = vmul.f32 %v748_v36, %v3020_v22 }
 0xf1e   :  { %v754_v37 = vpop.permute.xlu1 %753 }
 0xf1f   :  { %v756_v39 = vmul.f32 %v754_v37, %v748_v36 }
 0xf21   :  { %758 = vrot.lane.b32.xlu0 %v756_v39, %s2819_s20 }
 0xf2e   :  { %v1076_v40 = vpop.permute.xlu0 %1075 }
 0xf2f   :  { %2496 = vmatmul.msk.f32.vlgmr.msra.gmra.mxu3 %vm328_vm14, %v1076_v40 }
 0xf93   :  { %v759_v42 = vpop.permute.xlu0 %758 }
 0xf94   :  { %v3047_v13 = vadd.f32 %v759_v42, %v751_v41 }
 0xf96   :  { %2631 = vtanh.f32 %v3047_v13 }
 0xf9c   :  { %v2632_v14 = vpop.eup %2631 }
 0xf9d   :  { %764 = vrot.lane.b32.xlu0 %v2632_v14, %s2818_s1 }
 0xfb2   :  { %v1124_v38 = vpop.f32.mrf.mxu3 }
 0xfb3   :  { %v1125_v16 = vadd.f32 %v3051_v44, %v1124_v38 }
 0xfb5   :  { %v1148_v45 = vmax.f32 %v1125_v16, 0.0 }
 0xfb7   :  { %v1157_v35 = vsel %vm1156_vm15, %v1148_v45, 0.0  ;;  %v1181_v49 = vmul.f32 %v1148_v45, %v1148_v45 }
 0xfb8   :  { %1158 = vadd.xlane.f32.xlu1 %v1157_v35  ;;  %v3076_v35 = vld [vmem:[#allocation2 + $0xa0] ss:$0 sm:$0xff] }
 0xfb9   :  { %v1189_v22 = vsel %vm1156_vm15, %v1181_v49, 0.0 }
 0xfba   :  { %1190 = vadd.xlane.f32.xlu2 %v1189_v22 }
 0xfd2   :  { %884 = vrot.lane.b32.xlu2 %v867_v50, %s2819_s20 }
0x100f   :  { %v765_v53 = vpop.permute.xlu0 %764 }
0x1010   :  { %v3059_v54 = vmul.f32 %v765_v53, %v748_v36 }
0x1012   :  { %769 = vrot.lane.b32.xlu0 %v3059_v54, %s2819_s20  ;;  %v872_v62 = vmul.f32 %v3059_v54, %v3059_v54 }
0x102b   :  { %v1159_v1 = vpop.xlane.xlu1 %1158 }
0x102c   :  { %v1213_v2 = vmul.f32 0.015625, %v1159_v1  ;;  %v848_v1 = vsel %vm328_vm14, %v2969_v6, 0.0 }
0x102d   :  { %v1191_v3 = vpop.xlane.xlu2 %1190 }
0x102e   :  { %v1229_v4 = vmul.f32 %v1213_v2, %v1213_v2  ;;  %v1221_v7 = vmul.f32 0.015625, %v1191_v3  ;;  %v1245_v24 = vsub.f32 %v1148_v45, %v1213_v2  ;;  %v871_v2 = vmul.f32 %v3025_v27, %v3025_v27 }
0x1030   :  { %v1237_v8 = vsub.f32 %v1221_v7, %v1229_v4 }
0x1032   :  { %v1253_v48 = vadd.f32 1e-05, %v1237_v8 }
0x1034   :  { %2633 = vrsqrt.f32 %v1253_v48  ;;  %vm1267_vm2 = vweird.f32 %v1253_v48 }
0x1035   :  { %v885_v9 = vpop.permute.xlu2 %884 }
0x1036   :  { %v909_v10 = vsel %vm328_vm14, %v885_v9, 0.0 }
0x1037   :  { %910 = vadd.xlane.f32.xlu2 %v909_v10 }
0x103a   :  { %v2634_v11 = vpop.eup %2633 }
0x103b   :  { %v1262_v12 = vmul.f32 %v2634_v11, %v1253_v48  ;;  %vm1268_vm1 = vweird.f32 %v2634_v11 }
0x103c   :  { %846 = vadd.xlane.f32.xlu0 %v845_v15  ;;  %vm1269_vm3 = vmor %vm1267_vm2, %vm1268_vm1 }
0x103d   :  { %v1263_v17 = vmul.f32 %v2634_v11, %v1262_v12 }
0x103f   :  { %v1264_v18 = vmul.f32 0.5, %v1263_v17 }
0x1041   :  { %v1265_v19 = vsub.f32 1.5, %v1264_v18 }
0x1043   :  { %v1266_v23 = vmul.f32 %v2634_v11, %v1265_v19 }
0x1045   :  { %v1270_v25 = vsel %vm1269_vm3, %v2634_v11, %v1266_v23 }
0x1046   :  { %v1341_v34 = vmul.f32 %v1270_v25, %v1245_v24  ;;  %v870_v24 = vmul.f32 %v3005_v51, %v3005_v51  ;;  %v55_v25 = vld [vmem:[#allocation2 + $0xe0] sm:$0xff] }
0x1047   :  { %1648 = vmatpush.msrb.mxu2 %v55_v25 }
0x1048   :  { %2504 = vmatmul.msk.f32.vlgmr.msra.gmra.mxu1 %vm1156_vm15, %v1341_v34  ;;  %v54_v34 = vld [vmem:[#allocation2 + $0xd8] sm:$0xff] }
0x1049   :  { %1649 = vmatpush.msrb.mxu2 %v54_v34 }
0x104f   :  { %886 = vrot.lane.b32.xlu2 %v868_v26, %s2819_s20  ;;  %v53_v26 = vld [vmem:[#allocation2 + $0xd0] sm:$0xff] }
0x1050   :  { %1650 = vmatpush.msrb.mxu2 %v53_v26 }
0x1084   :  { %v3070_v28 = vpop.permute.xlu0 %769 }
0x1085   :  { %2494 = vmatmul.msk.f32.vlgmr.msra.gmra.mxu2 %vm328_vm14, %v3070_v28 }
0x10aa   :  { %v911_v21 = vpop.xlane.xlu2 %910 }
0x10ab   :  { %v939_v31 = vmul.f32 0.03125, %v911_v21  ;;  %v52_v21 = vld [vmem:[#allocation2 + $0xc8] sm:$0xff] }
0x10ac   :  { %1651 = vmatpush.msrb.mxu2 %v52_v21 }
0x10af   :  { %v847_v29 = vpop.xlane.xlu0 %846 }
0x10b0   :  { %v931_v30 = vmul.f32 0.03125, %v847_v29  ;;  %v51_v29 = vld [vmem:[#allocation2 + $0xc0] sm:$0xff] }
0x10b1   :  { %1652 = vmatpush.msrb.mxu2 %v51_v29 }
0x10b2   :  { %v947_v32 = vmul.f32 %v931_v30, %v931_v30  ;;  %v963_v38 = vsub.f32 %v2945_v0, %v931_v30  ;;  %v50_v30 = vld [vmem:[#allocation2 + $0xb8] sm:$0xff] }
0x10b3   :  { %1653 = vmatpush.msrb.mxu2 %v50_v30 }
0x10b4   :  { %v955_v33 = vsub.f32 %v939_v31, %v947_v32  ;;  %v49_v31 = vld [vmem:[#allocation2 + $0xb0] sm:$0xff]  ;;  %v48_v32 = vld [vmem:[#allocation2 + $0xa8] sm:$0xff] }
0x10b5   :  { %1654 = vmatpush.msrb.mxu2 %v49_v31 }
0x10b6   :  { %v971_v36 = vadd.f32 1e-05, %v955_v33 }
0x10b7   :  { %1655 = vmatpush.msrb.mxu2 %v48_v32 }
0x10b8   :  { %2635 = vrsqrt.f32 %v971_v36  ;;  %vm994_vm5 = vweird.f32 %v971_v36 }
0x10be   :  { %v2636_v37 = vpop.eup %2635 }
0x10bf   :  { %v989_v39 = vmul.f32 %v2636_v37, %v971_v36  ;;  %vm995_vm4 = vweird.f32 %v2636_v37 }
0x10c0   :  { %vm996_vm6 = vmor %vm994_vm5, %vm995_vm4 }
0x10c1   :  { %v990_v40 = vmul.f32 %v2636_v37, %v989_v39 }
0x10c3   :  { %v991_v41 = vmul.f32 0.5, %v990_v40 }
0x10c5   :  { %v992_v42 = vsub.f32 1.5, %v991_v41  ;;  %v1391_v49 = vpop.f32.mrf.mxu1 }
0x10c6   :  { %v1392_v22 = vadd.f32 %v3076_v35, %v1391_v49 }
0x10c7   :  { %v993_v14 = vmul.f32 %v2636_v37, %v992_v42 }
0x10c8   :  { %v3079_v50 = vmax.f32 %v1392_v22, 0.0 }
0x10c9   :  { %v997_v16 = vsel %vm996_vm6, %v2636_v37, %v993_v14 }
0x10ca   :  { %v1059_v45 = vmul.f32 %v997_v16, %v963_v38  ;;  %v1423_v53 = vsel %vm1156_vm15, %v3079_v50, 0.0  ;;  %v1447_v59 = vmul.f32 %v3079_v50, %v3079_v50 }
0x10cc   :  { %1077 = vrot.lane.b32.xlu1 %v1059_v45, %s2819_s20  ;;  %v1455_v47 = vsel %vm1156_vm15, %v1447_v59, 0.0  ;;  %v887_v59 = vpop.permute.xlu2 %886 }
0x10f6   :  { %1424 = vadd.xlane.f32.xlu1 %v1423_v53 }
0x1108   :  { %v790_v0 = vpop.f32.mrf.mxu2 }
0x1109   :  { %v793_v57 = vadd.f32 %v790_v0, %v326_v56 }
0x110b   :  { %2637 = vtanh.f32 %v793_v57  ;;  %v2495_v3 = vmul.f32 -1.442695, %v793_v57 }
0x110d   :  { %2639 = vpow2.f32 %v2495_v3 }
0x110f   :  { %888 = vrot.lane.b32.xlu1 %v869_v58, %s2819_s20 }
0x1111   :  { %v2638_v61 = vpop.eup %2637 }
0x1112   :  { %816 = vrot.lane.b32.xlu0 %v2638_v61, %s2818_s1 }
0x1113   :  { %v2640_v4 = vpop.eup %2639 }
0x1114   :  { %v797_v7 = vadd.f32 1.0, %v2640_v4 }
0x1116   :  { %2641 = vrcp.f32 %v797_v7  ;;  %v809_v12 = vand.u32 2147483648, %v797_v7  ;;  %vm803_vm8 = vweird.f32 %v797_v7  ;;  %v807_v6 = vand.u32 2147483647, %v797_v7 }
0x1117   :  { %894 = vrot.lane.b32.xlu1 %v872_v62, %s2819_s20 }
0x1118   :  { %v810_v17 = vor.u32 1.1754944e-38, %v809_v12  ;;  %vm808_vm10 = vcmp.eq.f32.partialorder %v807_v6, 8.507059e+37 }
0x111c   :  { %v2642_v8 = vpop.eup %2641 }
0x111d   :  { %v799_v48 = vmul.f32 %v2642_v8, %v797_v7  ;;  %vm804_vm7 = vweird.f32 %v2642_v8 }
0x111e   :  { %vm805_vm9 = vmor %vm803_vm8, %vm804_vm7 }
0x111f   :  { %v800_v9 = vsub.f32 1.0, %v799_v48 }
0x1121   :  { %v801_v10 = vmul.f32 %v2642_v8, %v800_v9 }
0x1123   :  { %v802_v11 = vadd.f32 %v2642_v8, %v801_v10 }
0x1125   :  { %v806_v15 = vsel %vm805_vm9, %v2642_v8, %v802_v11 }
0x1126   :  { %v3100_v18 = vsel %vm808_vm10, %v810_v17, %v806_v15  ;;  %v854_v15 = vsel %vm328_vm14, %v3009_v52, 0.0 }
0x113c   :  { %1456 = vadd.xlane.f32.xlu0 %v1455_v47  ;;  %v912_v47 = vsel %vm328_vm14, %v887_v59, 0.0 }
0x113e   :  { %v1078_v63 = vpop.permute.xlu1 %1077 }
0x113f   :  { %2497 = vmatmul.msk.f32.gmra.mxu3 %vm328_vm14, %v1078_v63  ;;  %v851_v63 = vsel %vm328_vm14, %v2990_v60, 0.0 }
0x1141   :  { %849 = vadd.xlane.f32.xlu1 %v848_v1 }
0x1150   :  { %892 = vrot.lane.b32.xlu0 %v871_v2, %s2819_s20 }
0x1169   :  { %v1425_v33 = vpop.xlane.xlu1 %1424 }
0x116a   :  { %v1479_v36 = vmul.f32 0.015625, %v1425_v33 }
0x116c   :  { %v1495_v39 = vmul.f32 %v1479_v36, %v1479_v36  ;;  %v1511_v0 = vsub.f32 %v3079_v50, %v1479_v36  ;;  %v814_v50 = vmul.f32 %v3100_v18, %v3047_v13 }
0x1181   :  { %v889_v8 = vpop.permute.xlu1 %888 }
0x1182   :  { %v915_v17 = vsel %vm328_vm14, %v889_v8, 0.0 }
0x1184   :  { %v817_v19 = vpop.permute.xlu0 %816 }
0x1185   :  { %v819_v23 = vmul.f32 %v817_v19, %v3100_v18  ;;  %v857_v19 = vsel %vm328_vm14, %v3035_v20, 0.0 }
0x1187   :  { %821 = vrot.lane.b32.xlu2 %v819_v23, %s2819_s20 }
0x1189   :  { %v895_v60 = vpop.permute.xlu1 %894 }
0x118a   :  { %v924_v10 = vsel %vm328_vm14, %v895_v60, 0.0 }
0x118f   :  { %890 = vrot.lane.b32.xlu2 %v870_v24, %s2819_s20 }
0x11af   :  { %v1457_v37 = vpop.xlane.xlu0 %1456 }
0x11b0   :  { %v1487_v40 = vmul.f32 0.015625, %v1457_v37 }
0x11b2   :  { %v1503_v41 = vsub.f32 %v1487_v40, %v1495_v39 }
0x11b4   :  { %v1519_v42 = vadd.f32 1e-05, %v1503_v41  ;;  %v850_v37 = vpop.xlane.xlu1 %849 }
0x11b6   :  { %2643 = vrsqrt.f32 %v1519_v42  ;;  %vm1533_vm12 = vweird.f32 %v1519_v42 }
0x11bc   :  { %v2644_v14 = vpop.eup %2643 }
0x11bd   :  { %v1528_v38 = vmul.f32 %v2644_v14, %v1519_v42  ;;  %vm1534_vm11 = vweird.f32 %v2644_v14  ;;  %v932_v42 = vmul.f32 0.03125, %v850_v37 }
0x11be   :  { %vm1535_vm13 = vmor %vm1533_vm12, %vm1534_vm11 }
0x11bf   :  { %v1529_v16 = vmul.f32 %v2644_v14, %v1528_v38  ;;  %v964_v59 = vsub.f32 %v2965_v5, %v932_v42 }
0x11c1   :  { %v1530_v45 = vmul.f32 0.5, %v1529_v16  ;;  %v948_v16 = vmul.f32 %v932_v42, %v932_v42 }
0x11c2   :  { %v1127_v49 = vpop.f32.mrf.mxu3  ;;  %v893_v48 = vpop.permute.xlu0 %892 }
0x11c3   :  { %v1531_v22 = vsub.f32 1.5, %v1530_v45  ;;  %v1128_v53 = vadd.f32 %v3051_v44, %v1127_v49  ;;  %v921_v9 = vsel %vm328_vm14, %v893_v48, 0.0 }
0x11c5   :  { %v1532_v55 = vmul.f32 %v2644_v14, %v1531_v22  ;;  %v3108_v56 = vmax.f32 %v1128_v53, 0.0 }
0x11c7   :  { %v1536_v57 = vsel %vm1535_vm13, %v2644_v14, %v1532_v55  ;;  %v1182_v58 = vmul.f32 %v3108_v56, %v3108_v56  ;;  %v1160_v13 = vsel %vm1156_vm15, %v3108_v56, 0.0 }
0x11c8   :  { %v1607_v61 = vmul.f32 %v1536_v57, %v1511_v0 }
0x11c9   :  { %v1192_v62 = vsel %vm1156_vm15, %v1182_v58, 0.0 }
0x11ca   :  { %1193 = vadd.xlane.f32.xlu0 %v1192_v62  ;;  %2512 = vmatmul.msk.f32.vlgmr.msrb.gmra.mxu2 %vm1156_vm15, %v1607_v61 }
0x11d2   :  { %913 = vadd.xlane.f32.xlu0 %v912_v47 }
0x11da   :  { %852 = vadd.xlane.f32.xlu0 %v851_v63 }
0x11e1   :  { %v822_v1 = vpop.permute.xlu2 %821 }
0x11e2   :  { %v824_v2 = vadd.f32 %v822_v1, %v814_v50 }
0x11e4   :  { %2645 = vtanh.f32 %v824_v2 }
0x11e9   :  { %v891_v3 = vpop.permute.xlu2 %890 }
0x11ea   :  { %v2646_v4 = vpop.eup %2645  ;;  %v918_v7 = vsel %vm328_vm14, %v891_v3, 0.0 }
0x11eb   :  { %827 = vrot.lane.b32.xlu2 %v2646_v4, %s2818_s1  ;;  %919 = vadd.xlane.f32.xlu0 %v918_v7 }
0x11f3   :  { %922 = vadd.xlane.f32.xlu0 %v921_v9 }
0x11fb   :  { %925 = vadd.xlane.f32.xlu0 %v924_v10 }
0x1214   :  { %1161 = vadd.xlane.f32.xlu2 %v1160_v13 }
0x123d   :  { %v1194_v23 = vpop.xlane.xlu0 %1193 }
0x123e   :  { %v1222_v34 = vmul.f32 0.015625, %v1194_v23 }
0x1245   :  { %v828_v11 = vpop.permute.xlu2 %827  ;;  %v914_v40 = vpop.xlane.xlu0 %913 }
0x1246   :  { %v3127_v12 = vmul.f32 %v828_v11, %v3100_v18  ;;  %v860_v18 = vsel %vm328_vm14, %v3070_v28, 0.0  ;;  %v940_v38 = vmul.f32 0.03125, %v914_v40 }
0x1248   :  { %832 = vrot.lane.b32.xlu1 %v3127_v12, %s2819_s20  ;;  %v873_v6 = vmul.f32 %v3127_v12, %v3127_v12  ;;  %v956_v45 = vsub.f32 %v940_v38, %v948_v16 }
0x124a   :  { %896 = vrot.lane.b32.xlu2 %v873_v6, %s2819_s20  ;;  %v972_v49 = vadd.f32 1e-05, %v956_v45 }
0x124c   :  { %vm1004_vm5 = vweird.f32 %v972_v49 }
0x124d   :  { %v853_v63 = vpop.xlane.xlu0 %852 }
0x124e   :  { %v933_v1 = vmul.f32 0.03125, %v853_v63 }
0x1250   :  { %v949_v7 = vmul.f32 %v933_v1, %v933_v1 }
0x125e   :  { %v920_v50 = vpop.xlane.xlu0 %919 }
0x125f   :  { %v942_v48 = vmul.f32 0.03125, %v920_v50 }
0x1266   :  { %v923_v13 = vpop.xlane.xlu0 %922 }
0x1272   :  { %855 = vadd.xlane.f32.xlu1 %v854_v15 }
0x1273   :  { %916 = vadd.xlane.f32.xlu2 %v915_v17  ;;  %v943_v17 = vmul.f32 0.03125, %v923_v13 }
0x127a   :  { %858 = vadd.xlane.f32.xlu1 %v857_v19 }
0x1282   :  { %861 = vadd.xlane.f32.xlu1 %v860_v18 }
0x1287   :  { %v1162_v24 = vpop.xlane.xlu2 %1161 }
0x1288   :  { %v1214_v25 = vmul.f32 0.015625, %v1162_v24 }
0x128a   :  { %v1230_v26 = vmul.f32 %v1214_v25, %v1214_v25  ;;  %v1246_v36 = vsub.f32 %v3108_v56, %v1214_v25 }
0x128c   :  { %v1238_v21 = vsub.f32 %v1222_v34, %v1230_v26  ;;  %v926_v26 = vpop.xlane.xlu0 %925 }
0x128e   :  { %v1254_v29 = vadd.f32 1e-05, %v1238_v21 }
0x1290   :  { %2647 = vrsqrt.f32 %v1254_v29  ;;  %vm1277_vm2 = vweird.f32 %v1254_v29 }
0x1291   :  { %2649 = vrsqrt.f32 %v972_v49 }
0x1296   :  { %v2648_v52 = vpop.eup %2647 }
0x1297   :  { %v1272_v30 = vmul.f32 %v2648_v52, %v1254_v29  ;;  %vm1278_vm1 = vweird.f32 %v2648_v52  ;;  %v2650_v22 = vpop.eup %2649 }
0x1298   :  { %vm1279_vm3 = vmor %vm1277_vm2, %vm1278_vm1  ;;  %v999_v56 = vmul.f32 %v2650_v22, %v972_v49  ;;  %vm1005_vm4 = vweird.f32 %v2650_v22 }
0x1299   :  { %v1273_v31 = vmul.f32 %v2648_v52, %v1272_v30  ;;  %vm1006_vm6 = vmor %vm1004_vm5, %vm1005_vm4 }
0x129a   :  { %v1000_v0 = vmul.f32 %v2650_v22, %v999_v56 }
0x129b   :  { %v1274_v32 = vmul.f32 0.5, %v1273_v31 }
0x129c   :  { %v1001_v57 = vmul.f32 0.5, %v1000_v0 }
0x129d   :  { %v1275_v33 = vsub.f32 1.5, %v1274_v32  ;;  %v944_v32 = vmul.f32 0.03125, %v926_v26 }
0x129e   :  { %v1002_v58 = vsub.f32 1.5, %v1001_v57 }
0x129f   :  { %v1276_v20 = vmul.f32 %v2648_v52, %v1275_v33 }
0x12a0   :  { %v1003_v61 = vmul.f32 %v2650_v22, %v1002_v58 }
0x12a1   :  { %v1280_v28 = vsel %vm1279_vm3, %v2648_v52, %v1276_v20 }
0x12a2   :  { %v1342_v39 = vmul.f32 %v1280_v28, %v1246_v36  ;;  %v1007_v62 = vsel %vm1006_vm6, %v2650_v22, %v1003_v61 }
0x12a3   :  { %v1060_v47 = vmul.f32 %v1007_v62, %v964_v59 }
0x12a4   :  { %v897_v41 = vpop.permute.xlu2 %896  ;;  %2505 = vmatmul.msk.f32.gmra.mxu1 %vm1156_vm15, %v1342_v39 }
0x12a5   :  { %v927_v14 = vsel %vm328_vm14, %v897_v41, 0.0 }
0x12a6   :  { %928 = vadd.xlane.f32.xlu0 %v927_v14  ;;  %v965_v14 = vsub.f32 %v2985_v43, %v933_v1 }
0x12ba   :  { %v833_v53 = vpop.permute.xlu1 %832 }
0x12bb   :  { %v863_v55 = vsel %vm328_vm14, %v833_v53, 0.0 }
0x12bc   :  { %864 = vadd.xlane.f32.xlu1 %v863_v55 }
0x12d5   :  { %1079 = vrot.lane.b32.xlu1 %v1060_v47, %s2819_s20 }
0x12e5   :  { %v856_v2 = vpop.xlane.xlu1 %855 }
0x12e6   :  { %v934_v3 = vmul.f32 0.03125, %v856_v2  ;;  %v917_v4 = vpop.xlane.xlu2 %916 }
0x12e7   :  { %v941_v8 = vmul.f32 0.03125, %v917_v4 }
0x12e8   :  { %v950_v9 = vmul.f32 %v934_v3, %v934_v3  ;;  %v966_v45 = vsub.f32 %v3005_v51, %v934_v3 }
0x12e9   :  { %v957_v60 = vsub.f32 %v941_v8, %v949_v7  ;;  %v3155_v7 = vld [vmem:[#allocation2 + $0xe8] ss:$0 sm:$0xff] }
0x12ea   :  { %v958_v10 = vsub.f32 %v942_v48, %v950_v9 }
0x12eb   :  { %v973_v11 = vadd.f32 1e-05, %v957_v60 }
0x12ec   :  { %v974_v6 = vadd.f32 1e-05, %v958_v10 }
0x12ed   :  { %2651 = vrsqrt.f32 %v973_v11  ;;  %v859_v5 = vpop.xlane.xlu1 %858  ;;  %vm1014_vm9 = vweird.f32 %v973_v11 }
0x12ee   :  { %2653 = vrsqrt.f32 %v974_v6  ;;  %v935_v15 = vmul.f32 0.03125, %v859_v5  ;;  %vm1024_vm11 = vweird.f32 %v974_v6 }
0x12f0   :  { %v951_v19 = vmul.f32 %v935_v15, %v935_v15  ;;  %v967_v51 = vsub.f32 %v3025_v27, %v935_v15  ;;  %v1657_v27 = vpop.f32.mrf.mxu2 }
0x12f1   :  { %v1658_v8 = vadd.f32 %v3155_v7, %v1657_v27 }
0x12f2   :  { %v959_v18 = vsub.f32 %v943_v17, %v951_v19 }
0x12f3   :  { %v2652_v23 = vpop.eup %2651 }
0x12f4   :  { %v2654_v24 = vpop.eup %2653  ;;  %v1009_v25 = vmul.f32 %v2652_v23, %v973_v11  ;;  %v975_v34 = vadd.f32 1e-05, %v959_v18  ;;  %vm1015_vm7 = vweird.f32 %v2652_v23 }
0x12f5   :  { %v1019_v21 = vmul.f32 %v2654_v24, %v974_v6  ;;  %v862_v29 = vpop.xlane.xlu1 %861  ;;  %vm1025_vm8 = vweird.f32 %v2654_v24  ;;  %vm1016_vm10 = vmor %vm1014_vm9, %vm1015_vm7 }
0x12f6   :  { %v1010_v52 = vmul.f32 %v2652_v23, %v1009_v25  ;;  %2655 = vrsqrt.f32 %v975_v34  ;;  %v936_v30 = vmul.f32 0.03125, %v862_v29  ;;  %vm1026_vm12 = vmor %vm1024_vm11, %vm1025_vm8  ;;  %vm1034_vm1 = vweird.f32 %v975_v34 }
0x12f7   :  { %v1020_v31 = vmul.f32 %v2654_v24, %v1019_v21 }
0x12f8   :  { %v1011_v33 = vmul.f32 0.5, %v1010_v52  ;;  %v952_v20 = vmul.f32 %v936_v30, %v936_v30  ;;  %v968_v2 = vsub.f32 %v3059_v54, %v936_v30 }
0x12f9   :  { %v1021_v36 = vmul.f32 0.5, %v1020_v31 }
0x12fa   :  { %v1012_v28 = vsub.f32 1.5, %v1011_v33  ;;  %v960_v37 = vsub.f32 %v944_v32, %v952_v20 }
0x12fb   :  { %v1022_v39 = vsub.f32 1.5, %v1021_v36  ;;  %v3174_v36 = vld [vmem:[#allocation2 + $0x100] sm:$0xff] }
0x12fc   :  { %v2656_v40 = vpop.eup %2655  ;;  %v976_v41 = vadd.f32 1e-05, %v960_v37  ;;  %v1013_v42 = vmul.f32 %v2652_v23, %v1012_v28  ;;  %1965 = vmatpush.msrb.mxu3 %v3174_v36  ;;  %2091 = vmatpush.msrb.mxu1 %v3174_v36 }
0x12fd   :  { %v1029_v38 = vmul.f32 %v2656_v40, %v975_v34  ;;  %v1023_v16 = vmul.f32 %v2654_v24, %v1022_v39  ;;  %vm1035_vm13 = vweird.f32 %v2656_v40  ;;  %2154 = vmatpush.msra.mxu2 %v3174_v36 }
0x12fe   :  { %2657 = vrsqrt.f32 %v976_v41  ;;  %v1017_v49 = vsel %vm1016_vm10, %v2652_v23, %v1013_v42  ;;  %vm1036_vm2 = vmor %vm1034_vm1, %vm1035_vm13  ;;  %vm1044_vm4 = vweird.f32 %v976_v41  ;;  %2028 = vmatpush.msra.mxu3 %v3174_v36  ;;  %2280 = vmatpush.msra.mxu1 %v3174_v36  ;;  %v57_v42 = vld [vmem:[#allocation2 + $0xf0] sm:$0xff] }
0x12ff   :  { %v1030_v22 = vmul.f32 %v2656_v40, %v1029_v38  ;;  %v1061_v53 = vmul.f32 %v1017_v49, %v965_v14  ;;  %v1027_v55 = vsel %vm1026_vm12, %v2654_v24, %v1023_v16  ;;  %2659 = vtanh.f32 %v1658_v8  ;;  %2343 = vmatpush.msrb.mxu2 %v3174_v36 }
0x1300   :  { %v1062_v56 = vmul.f32 %v1027_v55, %v966_v45 }
0x1301   :  { %1081 = vrot.lane.b32.xlu0 %v1061_v53, %s2819_s20  ;;  %v1031_v0 = vmul.f32 0.5, %v1030_v22 }
0x1302   :  { %1083 = vrot.lane.b32.xlu2 %v1062_v56, %s2819_s20 }
0x1303   :  { %v1032_v57 = vsub.f32 1.5, %v1031_v0 }
0x1304   :  { %v2658_v43 = vpop.eup %2657 }
0x1305   :  { %v1039_v58 = vmul.f32 %v2658_v43, %v976_v41  ;;  %v1033_v61 = vmul.f32 %v2656_v40, %v1032_v57  ;;  %vm1045_vm3 = vweird.f32 %v2658_v43  ;;  %v3158_v48 = vpop.eup %2659 }
0x1306   :  { %vm1046_vm5 = vmor %vm1044_vm4, %vm1045_vm3  ;;  %v1713_v10 = vmul.f32 %v3158_v48, %v3158_v48  ;;  %v1689_v13 = vsel %vm69_vm0, %v3158_v48, 0.0 }
0x1307   :  { %v1040_v62 = vmul.f32 %v2658_v43, %v1039_v58  ;;  %v1037_v59 = vsel %vm1036_vm2, %v2656_v40, %v1033_v61 }
0x1308   :  { %v1063_v47 = vmul.f32 %v1037_v59, %v967_v51  ;;  %v1721_v11 = vsel %vm69_vm0, %v1713_v10, 0.0 }
0x1309   :  { %v1041_v63 = vmul.f32 0.5, %v1040_v62 }
0x130a   :  { %1085 = vrot.lane.b32.xlu1 %v1063_v47, %s2819_s20 }
0x130b   :  { %v1042_v50 = vsub.f32 1.5, %v1041_v63 }
0x130d   :  { %v1043_v1 = vmul.f32 %v2658_v43, %v1042_v50 }
0x130f   :  { %v1047_v3 = vsel %vm1046_vm5, %v2658_v43, %v1043_v1 }
0x1310   :  { %v1064_v4 = vmul.f32 %v1047_v3, %v968_v2 }
0x1312   :  { %1087 = vrot.lane.b32.xlu1 %v1064_v4, %s2819_s20 }
0x1319   :  { %v929_v5 = vpop.xlane.xlu0 %928 }
0x131a   :  { %v945_v19 = vmul.f32 0.03125, %v929_v5 }
0x1321   :  { %v1394_v9 = vpop.f32.mrf.mxu1 }
0x1322   :  { %v1395_v60 = vadd.f32 %v3076_v35, %v1394_v9 }
0x1324   :  { %v3163_v54 = vmax.f32 %v1395_v60, 0.0 }
0x1326   :  { %v1448_v6 = vmul.f32 %v3163_v54, %v3163_v54  ;;  %v1426_v37 = vsel %vm1156_vm15, %v3163_v54, 0.0 }
0x1328   :  { %v1458_v23 = vsel %vm1156_vm15, %v1448_v6, 0.0 }
0x132b   :  { %1690 = vadd.xlane.f32.xlu0 %v1689_v13  ;;  %1722 = vadd.xlane.f32.xlu2 %v1721_v11 }
0x132f   :  { %v865_v15 = vpop.xlane.xlu1 %864 }
0x1330   :  { %v937_v17 = vmul.f32 0.03125, %v865_v15 }
0x1332   :  { %v953_v18 = vmul.f32 %v937_v17, %v937_v17  ;;  %v969_v32 = vsub.f32 %v3127_v12, %v937_v17  ;;  %v58_v12 = vld [vmem:[#allocation2 + $0xf8] sm:$0xff] }
0x1333   :  { %1459 = vadd.xlane.f32.xlu0 %v1458_v23  ;;  %1920 = vmatpush.msrb.mxu0 %v58_v12 }
0x1334   :  { %v961_v24 = vsub.f32 %v945_v19, %v953_v18 }
0x1335   :  { %1921 = vmatpush.msrb.mxu0 %v57_v42 }
0x1336   :  { %v977_v25 = vadd.f32 1e-05, %v961_v24 }
0x1338   :  { %2661 = vrsqrt.f32 %v977_v25  ;;  %vm1054_vm7 = vweird.f32 %v977_v25 }
0x133e   :  { %v2662_v34 = vpop.eup %2661 }
0x133f   :  { %v1049_v26 = vmul.f32 %v2662_v34, %v977_v25  ;;  %vm1055_vm6 = vweird.f32 %v2662_v34 }
0x1340   :  { %vm1056_vm8 = vmor %vm1054_vm7, %vm1055_vm6 }
0x1341   :  { %v1050_v21 = vmul.f32 %v2662_v34, %v1049_v26 }
0x1343   :  { %v1051_v29 = vmul.f32 0.5, %v1050_v21  ;;  %v3208_v21 = vld [vmem:[#allocation2 + $0x108] ss:$0 sm:$0xff] }
0x1345   :  { %v1052_v52 = vsub.f32 1.5, %v1051_v29 }
0x1347   :  { %v1080_v30 = vpop.permute.xlu1 %1079  ;;  %v1053_v31 = vmul.f32 %v2662_v34, %v1052_v52 }
0x1348   :  { %2498 = vmatmul.msk.f32.gmra.mxu3 %vm328_vm14, %v1080_v30 }
0x1349   :  { %v1057_v33 = vsel %vm1056_vm8, %v2662_v34, %v1053_v31 }
0x134a   :  { %v1065_v20 = vmul.f32 %v1057_v33, %v969_v32 }
0x134c   :  { %1089 = vrot.lane.b32.xlu1 %v1065_v20, %s2819_s20 }
0x135c   :  { %v1084_v39 = vpop.permute.xlu2 %1083 }
0x1373   :  { %v1082_v28 = vpop.permute.xlu0 %1081 }
0x1374   :  { %2499 = vmatmul.msk.f32.gmra.mxu3 %vm328_vm14, %v1082_v28 }
0x1376   :  { %1427 = vadd.xlane.f32.xlu1 %v1426_v37 }
0x137c   :  { %2500 = vmatmul.msk.f32.gmra.mxu3 %vm328_vm14, %v1084_v39  ;;  %v1086_v40 = vpop.permute.xlu1 %1085 }
0x1384   :  { %2501 = vmatmul.msk.f32.gmra.mxu3 %vm328_vm14, %v1086_v40  ;;  %v1088_v41 = vpop.permute.xlu1 %1087 }
0x138c   :  { %2502 = vmatmul.msk.f32.gmra.mxu3 %vm328_vm14, %v1088_v41 }
0x139e   :  { %v1691_v14 = vpop.xlane.xlu0 %1690  ;;  %v1723_v38 = vpop.xlane.xlu2 %1722 }
0x139f   :  { %v1745_v16 = vmul.f32 0.0625, %v1691_v14  ;;  %v1753_v49 = vmul.f32 0.0625, %v1723_v38 }
0x13a1   :  { %v1761_v45 = vmul.f32 %v1745_v16, %v1745_v16  ;;  %v1777_v61 = vsub.f32 %v3158_v48, %v1745_v16 }
0x13a3   :  { %v1769_v22 = vsub.f32 %v1753_v49, %v1761_v45 }
0x13a5   :  { %v1785_v53 = vadd.f32 1e-05, %v1769_v22 }
0x13a6   :  { %v1460_v4 = vpop.xlane.xlu0 %1459 }
0x13a7   :  { %2663 = vrsqrt.f32 %v1785_v53  ;;  %vm1799_vm10 = vweird.f32 %v1785_v53  ;;  %v1488_v48 = vmul.f32 0.015625, %v1460_v4 }
0x13ad   :  { %v2664_v55 = vpop.eup %2663 }
0x13ae   :  { %v1794_v56 = vmul.f32 %v2664_v55, %v1785_v53  ;;  %vm1800_vm9 = vweird.f32 %v2664_v55 }
0x13af   :  { %vm1801_vm11 = vmor %vm1799_vm10, %vm1800_vm9 }
0x13b0   :  { %v1795_v0 = vmul.f32 %v2664_v55, %v1794_v56 }
0x13b2   :  { %v1796_v57 = vmul.f32 0.5, %v1795_v0 }
0x13b4   :  { %v1797_v43 = vsub.f32 1.5, %v1796_v57 }
0x13b6   :  { %v1798_v58 = vmul.f32 %v2664_v55, %v1797_v43 }
0x13b8   :  { %v1802_v51 = vsel %vm1801_vm11, %v2664_v55, %v1798_v58 }
0x13b9   :  { %v1873_v62 = vmul.f32 %v1802_v51, %v1777_v61 }
0x13bb   :  { %2520 = vmatmul.msk.f32.vlgmr.msrb.gmra.mxu0 %vm69_vm0, %v1873_v62 }
0x13be   :  { %v1090_v59 = vpop.permute.xlu1 %1089 }
0x13bf   :  { %2503 = vmatmul.msk.f32.gmra.mxu3 %vm328_vm14, %v1090_v59 }
0x13c7   :  { %1966 = vmatmul.f32.vlgmr.msrb.gmra.mxu3 %v2817_v46 }
0x13c8   :  { %2217 = vmatpush.msrb.mxu3 %v3174_v36 }
0x13cb   :  { %v1130_v47 = vpop.f32.mrf.mxu3 }
0x13cc   :  { %v1131_v63 = vadd.f32 %v3051_v44, %v1130_v47 }
0x13ce   :  { %v1150_v50 = vmax.f32 %v1131_v63, 0.0 }
0x13d0   :  { %v1163_v1 = vsel %vm1156_vm15, %v1150_v50, 0.0  ;;  %v1183_v2 = vmul.f32 %v1150_v50, %v1150_v50 }
0x13d1   :  { %1164 = vadd.xlane.f32.xlu2 %v1163_v1 }
0x13d2   :  { %v1195_v3 = vsel %vm1156_vm15, %v1183_v2, 0.0 }
0x13d9   :  { %1196 = vadd.xlane.f32.xlu2 %v1195_v3 }
0x13e9   :  { %v1428_v27 = vpop.xlane.xlu1 %1427 }
0x13ea   :  { %v1480_v8 = vmul.f32 0.015625, %v1428_v27 }
0x13ec   :  { %v1496_v9 = vmul.f32 %v1480_v8, %v1480_v8  ;;  %v1512_v15 = vsub.f32 %v3163_v54, %v1480_v8 }
0x13ee   :  { %v1504_v60 = vsub.f32 %v1488_v48, %v1496_v9 }
0x13f0   :  { %v1520_v46 = vadd.f32 1e-05, %v1504_v60  ;;  %v3227_v60 = vld [vmem:[#allocation2 + $0x58] ss:$0 sm:$0xff] }
0x13f2   :  { %2665 = vrsqrt.f32 %v1520_v46  ;;  %vm1543_vm12 = vweird.f32 %v1520_v46 }
0x13f7   :  { %v3198_v18 = vpop.f32.mrf.mxu3 }
0x13f8   :  { %v2666_v10 = vpop.eup %2665 }
0x13f9   :  { %v1538_v13 = vmul.f32 %v2666_v10, %v1520_v46  ;;  %vm1544_vm14 = vweird.f32 %v2666_v10  ;;  %v1134_v46 = vadd.f32 %v3227_v60, %v3198_v18 }
0x13fa   :  { %vm1545_vm13 = vmor %vm1543_vm12, %vm1544_vm14 }
0x13fb   :  { %v1539_v11 = vmul.f32 %v2666_v10, %v1538_v13 }
0x13fd   :  { %v1540_v44 = vmul.f32 0.5, %v1539_v11  ;;  %v1151_v11 = vmax.f32 %v1134_v46, 0.0 }
0x13ff   :  { %v1541_v6 = vsub.f32 1.5, %v1540_v44  ;;  %v3200_v23 = vpop.f32.mrf.mxu3 }
0x1401   :  { %v1542_v5 = vmul.f32 %v2666_v10, %v1541_v6  ;;  %v1184_v6 = vmul.f32 %v1151_v11, %v1151_v11 }
0x1403   :  { %v1546_v17 = vsel %vm1545_vm13, %v2666_v10, %v1542_v5  ;;  %v1198_v5 = vsel %vm1156_vm15, %v1184_v6, 0.0  ;;  %vm1947_vm13 = vcmask 64512  }
0x1404   :  { %v1608_v19 = vmul.f32 %v1546_v17, %v1512_v15 }
0x1406   :  { %2513 = vmatmul.msk.f32.gmra.mxu2 %vm1156_vm15, %v1608_v19 }
0x1407   :  { %v3202_v24 = vpop.f32.mrf.mxu3 }
0x140f   :  { %v3204_v25 = vpop.f32.mrf.mxu3 }
0x1438   :  { %v1923_v29 = vpop.f32.mrf.mxu0 }
0x1439   :  { %v1924_v54 = vadd.f32 %v3208_v21, %v1923_v29 }
0x1442   :  { %v3206_v34 = vpop.f32.mrf.mxu3 }
0x1444   :  { %v1165_v26 = vpop.xlane.xlu2 %1164 }
0x1445   :  { %v1215_v52 = vmul.f32 0.015625, %v1165_v26 }
0x1447   :  { %v1231_v33 = vmul.f32 %v1215_v52, %v1215_v52  ;;  %v1247_v16 = vsub.f32 %v1150_v50, %v1215_v52 }
0x144a   :  { %v1967_v30 = vpop.f32.mrf.mxu3 }
0x144b   :  { %v1970_v31 = vadd.f32 %v1967_v30, %v1924_v54 }
0x144c   :  { %v1197_v32 = vpop.xlane.xlu2 %1196 }
0x144d   :  { %2667 = vtanh.f32 %v1970_v31  ;;  %v1223_v20 = vmul.f32 0.015625, %v1197_v32  ;;  %v2528_v0 = vmul.f32 -1.442695, %v1970_v31 }
0x144f   :  { %v1239_v12 = vsub.f32 %v1223_v20, %v1231_v33 }
0x1451   :  { %v1255_v28 = vadd.f32 1e-05, %v1239_v12 }
0x1453   :  { %v2668_v37 = vpop.eup %2667  ;;  %2669 = vrsqrt.f32 %v1255_v28  ;;  %vm1287_vm2 = vweird.f32 %v1255_v28 }
0x1454   :  { %1993 = vrot.lane.b32.xlu0 %v2668_v37, %s2820_s0 }
0x1459   :  { %v2670_v39 = vpop.eup %2669 }
0x145a   :  { %v1282_v40 = vmul.f32 %v2670_v39, %v1255_v28  ;;  %vm1288_vm1 = vweird.f32 %v2670_v39 }
0x145b   :  { %vm1289_vm3 = vmor %vm1287_vm2, %vm1288_vm1 }
0x145c   :  { %v1283_v41 = vmul.f32 %v2670_v39, %v1282_v40 }
0x145e   :  { %v1284_v42 = vmul.f32 0.5, %v1283_v41 }
0x1460   :  { %v1285_v14 = vsub.f32 1.5, %v1284_v42 }
0x1462   :  { %v1286_v38 = vmul.f32 %v2670_v39, %v1285_v14 }
0x1464   :  { %v1290_v45 = vsel %vm1289_vm3, %v2670_v39, %v1286_v38 }
0x1465   :  { %v1343_v49 = vmul.f32 %v1290_v45, %v1247_v16 }
0x1467   :  { %2506 = vmatmul.msk.f32.gmra.mxu1 %vm1156_vm15, %v1343_v49 }
0x1489   :  { %v1660_v22 = vpop.f32.mrf.mxu2 }
0x148a   :  { %v1661_v53 = vadd.f32 %v3155_v7, %v1660_v22 }
0x148c   :  { %2671 = vtanh.f32 %v1661_v53 }
0x148d   :  { %2673 = vpow2.f32 %v2528_v0 }
0x1492   :  { %v3214_v55 = vpop.eup %2671 }
0x1493   :  { %v1692_v56 = vsel %vm69_vm0, %v3214_v55, 0.0  ;;  %v2674_v57 = vpop.eup %2673  ;;  %v1714_v13 = vmul.f32 %v3214_v55, %v3214_v55 }
0x1494   :  { %1693 = vadd.xlane.f32.xlu0 %v1692_v56  ;;  %v1974_v43 = vadd.f32 1.0, %v2674_v57 }
0x1495   :  { %v1724_v44 = vsel %vm69_vm0, %v1714_v13, 0.0 }
0x1496   :  { %2675 = vrcp.f32 %v1974_v43  ;;  %v1986_v47 = vand.u32 2147483648, %v1974_v43  ;;  %vm1980_vm5 = vweird.f32 %v1974_v43  ;;  %v1984_v63 = vand.u32 2147483647, %v1974_v43 }
0x1498   :  { %v1987_v1 = vor.u32 1.1754944e-38, %v1986_v47  ;;  %vm1985_vm7 = vcmp.eq.f32.partialorder %v1984_v63, 8.507059e+37 }
0x149c   :  { %v2676_v58 = vpop.eup %2675 }
0x149d   :  { %v1976_v61 = vmul.f32 %v2676_v58, %v1974_v43  ;;  %vm1981_vm4 = vweird.f32 %v2676_v58 }
0x149e   :  { %vm1982_vm6 = vmor %vm1980_vm5, %vm1981_vm4 }
0x149f   :  { %v1977_v51 = vsub.f32 1.0, %v1976_v61 }
0x14a1   :  { %v1978_v62 = vmul.f32 %v2676_v58, %v1977_v51 }
0x14a3   :  { %v1979_v59 = vadd.f32 %v2676_v58, %v1978_v62 }
0x14a5   :  { %v1983_v50 = vsel %vm1982_vm6, %v2676_v58, %v1979_v59 }
0x14a6   :  { %v3218_v3 = vsel %vm1985_vm7, %v1987_v1, %v1983_v50  ;;  %v1137_v50 = vadd.f32 %v3227_v60, %v3200_v23  ;;  %v1143_v23 = vadd.f32 %v3227_v60, %v3204_v25 }
0x14a7   :  { %v1991_v15 = vmul.f32 0.0, %v3218_v3 }
0x14a8   :  { %v3267_v46 = vmax.f32 %v1143_v23, 0.0 }
0x14c6   :  { %v1994_v2 = vpop.permute.xlu0 %1993 }
0x14c7   :  { %v1996_v4 = vmul.f32 %v1994_v2, %v3218_v3  ;;  %v3253_v2 = vmax.f32 %v1137_v50, 0.0 }
0x14c9   :  { %1998 = vrot.lane.b32.xlu2 %v1996_v4, %s2816_s15  ;;  %v1140_v4 = vadd.f32 %v3227_v60, %v3202_v24 }
0x14e4   :  { %v1397_v27 = vpop.f32.mrf.mxu1 }
0x14e5   :  { %v1398_v8 = vadd.f32 %v3076_v35, %v1397_v27  ;;  %v1166_v35 = vsel %vm1156_vm15, %v1151_v11, 0.0  ;;  %v1169_v27 = vsel %vm1156_vm15, %v3253_v2, 0.0 }
0x14e7   :  { %v3223_v48 = vmax.f32 %v1398_v8, 0.0 }
0x14e9   :  { %v1449_v9 = vmul.f32 %v3223_v48, %v3223_v48  ;;  %v1429_v1 = vsel %vm1156_vm15, %v3223_v48, 0.0 }
0x14eb   :  { %v1461_v10 = vsel %vm1156_vm15, %v1449_v9, 0.0 }
0x14ec   :  { %1462 = vadd.xlane.f32.xlu0 %v1461_v10  ;;  %v1187_v10 = vmul.f32 %v3267_v46, %v3267_v46 }
0x14ee   :  { %v1207_v13 = vsel %vm1156_vm15, %v1187_v10, 0.0 }
0x14f2   :  { %1725 = vadd.xlane.f32.xlu2 %v1724_v44 }
0x14f4   :  { %1167 = vadd.xlane.f32.xlu0 %v1166_v35 }
0x14fa   :  { %1199 = vadd.xlane.f32.xlu2 %v1198_v5 }
0x1507   :  { %v1694_v26 = vpop.xlane.xlu0 %1693 }
0x1508   :  { %v1746_v54 = vmul.f32 0.0625, %v1694_v26 }
0x150a   :  { %v1762_v30 = vmul.f32 %v1746_v54, %v1746_v54  ;;  %v1778_v56 = vsub.f32 %v3214_v55, %v1746_v54 }
0x1523   :  { %v1999_v17 = vpop.permute.xlu2 %1998 }
0x1524   :  { %v3238_v19 = vadd.f32 %v1999_v17, %v1991_v15 }
0x1526   :  { %2677 = vtanh.f32 %v3238_v19 }
0x152c   :  { %v2678_v18 = vpop.eup %2677 }
0x152d   :  { %2004 = vrot.lane.b32.xlu1 %v2678_v18, %s2821_s5 }
0x155f   :  { %v3242_v29 = vpop.xlane.xlu0 %1462 }
0x1560   :  { %v1489_v35 = vmul.f32 0.015625, %v3242_v29 }
0x1565   :  { %v1726_v52 = vpop.xlane.xlu2 %1725 }
0x1566   :  { %v1754_v31 = vmul.f32 0.0625, %v1726_v52 }
0x1567   :  { %v1168_v32 = vpop.xlane.xlu0 %1167 }
0x1568   :  { %v1770_v33 = vsub.f32 %v1754_v31, %v1762_v30  ;;  %v1216_v12 = vmul.f32 0.015625, %v1168_v32 }
0x156a   :  { %v1786_v20 = vadd.f32 1e-05, %v1770_v33  ;;  %v1232_v37 = vmul.f32 %v1216_v12, %v1216_v12  ;;  %v1248_v62 = vsub.f32 %v1151_v11, %v1216_v12 }
0x156c   :  { %2679 = vrsqrt.f32 %v1786_v20  ;;  %vm1809_vm9 = vweird.f32 %v1786_v20 }
0x156d   :  { %v1200_v28 = vpop.xlane.xlu2 %1199 }
0x156e   :  { %v1224_v39 = vmul.f32 0.015625, %v1200_v28 }
0x1570   :  { %v1240_v40 = vsub.f32 %v1224_v39, %v1232_v37  ;;  %v1185_v37 = vmul.f32 %v3253_v2, %v3253_v2 }
0x1572   :  { %v2680_v41 = vpop.eup %2679  ;;  %v1256_v42 = vadd.f32 1e-05, %v1240_v40  ;;  %v1201_v39 = vsel %vm1156_vm15, %v1185_v37, 0.0 }
0x1573   :  { %v1804_v14 = vmul.f32 %v2680_v41, %v1786_v20  ;;  %vm1810_vm8 = vweird.f32 %v2680_v41 }
0x1574   :  { %2681 = vrsqrt.f32 %v1256_v42  ;;  %vm1811_vm10 = vmor %vm1809_vm9, %vm1810_vm8  ;;  %vm1297_vm14 = vweird.f32 %v1256_v42 }
0x1575   :  { %v1805_v38 = vmul.f32 %v2680_v41, %v1804_v14 }
0x1577   :  { %v1806_v16 = vmul.f32 0.5, %v1805_v38 }
0x1579   :  { %v1807_v45 = vsub.f32 1.5, %v1806_v16 }
0x157a   :  { %v2682_v49 = vpop.eup %2681 }
0x157b   :  { %v1292_v22 = vmul.f32 %v2682_v49, %v1256_v42  ;;  %v1808_v53 = vmul.f32 %v2680_v41, %v1807_v45  ;;  %vm1298_vm11 = vweird.f32 %v2682_v49 }
0x157c   :  { %vm1299_vm12 = vmor %vm1297_vm14, %vm1298_vm11 }
0x157d   :  { %v1293_v0 = vmul.f32 %v2682_v49, %v1292_v22  ;;  %v1812_v57 = vsel %vm1811_vm10, %v2680_v41, %v1808_v53 }
0x157e   :  { %v1874_v43 = vmul.f32 %v1812_v57, %v1778_v56 }
0x157f   :  { %v1294_v58 = vmul.f32 0.5, %v1293_v0 }
0x1580   :  { %2521 = vmatmul.msk.f32.gmra.mxu0 %vm69_vm0, %v1874_v43 }
0x1581   :  { %v1295_v61 = vsub.f32 1.5, %v1294_v58 }
0x1583   :  { %v1296_v51 = vmul.f32 %v2682_v49, %v1295_v61 }
0x1585   :  { %v1300_v59 = vsel %vm1299_vm12, %v2682_v49, %v1296_v51 }
0x1586   :  { %v1344_v47 = vmul.f32 %v1300_v59, %v1248_v62 }
0x1588   :  { %2507 = vmatmul.msk.f32.gmra.mxu1 %vm1156_vm15, %v1344_v47 }
0x159f   :  { %v2005_v63 = vpop.permute.xlu1 %2004 }
0x15a0   :  { %v2007_v55 = vmul.f32 %v2005_v63, %v3218_v3  ;;  %v3259_v3 = vmax.f32 %v1140_v4, 0.0 }
0x15a2   :  { %2009 = vrot.lane.b32.xlu1 %v2007_v55, %s2822_s6  ;;  %v1172_v8 = vsel %vm1156_vm15, %v3259_v3, 0.0  ;;  %v1186_v9 = vmul.f32 %v3259_v3, %v3259_v3 }
0x15a4   :  { %v1204_v24 = vsel %vm1156_vm15, %v1186_v9, 0.0 }
0x15cc   :  { %1430 = vadd.xlane.f32.xlu1 %v1429_v1 }
0x15d4   :  { %1170 = vadd.xlane.f32.xlu1 %v1169_v27 }
0x15dc   :  { %1173 = vadd.xlane.f32.xlu1 %v1172_v8 }
0x15e4   :  { %1205 = vadd.xlane.f32.xlu1 %v1204_v24  ;;  %v1175_v24 = vsel %vm1156_vm15, %v3267_v46, 0.0 }
0x15ec   :  { %1208 = vadd.xlane.f32.xlu1 %v1207_v13 }
0x15fd   :  { %v1926_v29 = vpop.f32.mrf.mxu0 }
0x15fe   :  { %v1927_v33 = vadd.f32 %v3208_v21, %v1926_v29 }
0x1614   :  { %v2010_v11 = vpop.permute.xlu1 %2009 }
0x1615   :  { %2460 = vst.msk [vmem:[%s3531_s2] sm:$0xff] %vm1947_vm13, %v2010_v11  ;;  %2529 = vmatmul.msk.f32.vlgmr.msra.gmra.mxu3 %vm1947_vm13, %v2010_v11 }
0x1616   :  { %2406 = vmatpush.msra.mxu3 %v3174_v36 }
0x163f   :  { %v1431_v25 = vpop.xlane.xlu1 %1430 }
0x1640   :  { %v1481_v44 = vmul.f32 0.015625, %v1431_v25 }
0x1642   :  { %v1497_v6 = vmul.f32 %v1481_v44, %v1481_v44  ;;  %v1513_v31 = vsub.f32 %v3223_v48, %v1481_v44  ;;  %v1146_v48 = vadd.f32 %v3227_v60, %v3206_v34 }
0x1644   :  { %v1505_v5 = vsub.f32 %v1489_v35, %v1497_v6  ;;  %v3289_v40 = vmax.f32 %v1146_v48, 0.0  ;;  %v1400_v35 = vpop.f32.mrf.mxu1 }
0x1646   :  { %v1521_v15 = vadd.f32 1e-05, %v1505_v5  ;;  %v1178_v41 = vsel %vm1156_vm15, %v3289_v40, 0.0  ;;  %v1188_v42 = vmul.f32 %v3289_v40, %v3289_v40  ;;  %v3307_v5 = vld [vmem:[#allocation2 + $0xa0] ss:$0 sm:$0xff] }
0x1647   :  { %v1171_v62 = vpop.xlane.xlu1 %1170 }
0x1648   :  { %2683 = vrsqrt.f32 %v1521_v15  ;;  %vm1553_vm2 = vweird.f32 %v1521_v15  ;;  %v1210_v14 = vsel %vm1156_vm15, %v1188_v42, 0.0  ;;  %v1217_v8 = vmul.f32 0.015625, %v1171_v62 }
0x164a   :  { %v1233_v13 = vmul.f32 %v1217_v8, %v1217_v8  ;;  %v1249_v37 = vsub.f32 %v3253_v2, %v1217_v8 }
0x164e   :  { %v2684_v17 = vpop.eup %2683 }
0x164f   :  { %v1548_v18 = vmul.f32 %v2684_v17, %v1521_v15  ;;  %vm1554_vm1 = vweird.f32 %v2684_v17  ;;  %v1174_v59 = vpop.xlane.xlu1 %1173  ;;  %v1401_v15 = vadd.f32 %v3307_v5, %v1400_v35 }
0x1650   :  { %vm1555_vm3 = vmor %vm1553_vm2, %vm1554_vm1  ;;  %v1218_v63 = vmul.f32 0.015625, %v1174_v59 }
0x1651   :  { %v1549_v26 = vmul.f32 %v2684_v17, %v1548_v18 }
0x1652   :  { %v1234_v1 = vmul.f32 %v1218_v63, %v1218_v63 }
0x1653   :  { %v1550_v54 = vmul.f32 0.5, %v1549_v26  ;;  %v3311_v26 = vmax.f32 %v1401_v15, 0.0 }
0x1655   :  { %v1551_v52 = vsub.f32 1.5, %v1550_v54 }
0x1657   :  { %v1552_v30 = vmul.f32 %v2684_v17, %v1551_v52  ;;  %v1206_v47 = vpop.xlane.xlu1 %1205 }
0x1658   :  { %v1226_v50 = vmul.f32 0.015625, %v1206_v47 }
0x1659   :  { %v1556_v36 = vsel %vm1555_vm3, %v2684_v17, %v1552_v30 }
0x165a   :  { %v1609_v32 = vmul.f32 %v1556_v36, %v1513_v31  ;;  %v1242_v27 = vsub.f32 %v1226_v50, %v1234_v1  ;;  %v1432_v36 = vsel %vm1156_vm15, %v3311_v26, 0.0 }
0x165c   :  { %2514 = vmatmul.msk.f32.gmra.mxu2 %vm1156_vm15, %v1609_v32  ;;  %v1258_v23 = vadd.f32 1e-05, %v1242_v27 }
0x165e   :  { %vm1317_vm14 = vweird.f32 %v1258_v23 }
0x1698   :  { %v2030_v20 = vpop.f32.mrf.mxu3 }
0x1699   :  { %v2033_v12 = vadd.f32 %v2030_v20, %v1927_v33  ;;  %v1450_v20 = vmul.f32 %v3311_v26, %v3311_v26 }
0x169b   :  { %2685 = vtanh.f32 %v2033_v12  ;;  %v2530_v38 = vmul.f32 -1.442695, %v2033_v12  ;;  %v1464_v48 = vsel %vm1156_vm15, %v1450_v20, 0.0 }
0x169d   :  { %2687 = vpow2.f32 %v2530_v38  ;;  %v1250_v38 = vsub.f32 %v3259_v3, %v1218_v63 }
0x16a1   :  { %v2686_v28 = vpop.eup %2685 }
0x16a2   :  { %2056 = vrot.lane.b32.xlu0 %v2686_v28, %s2820_s0 }
0x16a3   :  { %v2688_v16 = vpop.eup %2687 }
0x16a4   :  { %v2037_v45 = vadd.f32 1.0, %v2688_v16 }
0x16a6   :  { %2689 = vrcp.f32 %v2037_v45  ;;  %v2049_v56 = vand.u32 2147483648, %v2037_v45  ;;  %vm2043_vm5 = vweird.f32 %v2037_v45  ;;  %v2047_v0 = vand.u32 2147483647, %v2037_v45 }
0x16a8   :  { %v2050_v43 = vor.u32 1.1754944e-38, %v2049_v56  ;;  %vm2048_vm7 = vcmp.eq.f32.partialorder %v2047_v0, 8.507059e+37 }
0x16ac   :  { %v2690_v34 = vpop.eup %2689 }
0x16ad   :  { %v2039_v60 = vmul.f32 %v2690_v34, %v2037_v45  ;;  %vm2044_vm4 = vweird.f32 %v2690_v34 }
0x16ae   :  { %vm2045_vm6 = vmor %vm2043_vm5, %vm2044_vm4 }
0x16af   :  { %v2040_v49 = vsub.f32 1.0, %v2039_v60 }
0x16b1   :  { %v2041_v22 = vmul.f32 %v2690_v34, %v2040_v49 }
0x16b3   :  { %v2042_v53 = vadd.f32 %v2690_v34, %v2041_v22 }
0x16b5   :  { %v2046_v57 = vsel %vm2045_vm6, %v2690_v34, %v2042_v53 }
0x16b6   :  { %v3296_v61 = vsel %vm2048_vm7, %v2050_v43, %v2046_v57 }
0x16b7   :  { %v2054_v2 = vmul.f32 %v3296_v61, %v3238_v19  ;;  %v1209_v19 = vpop.xlane.xlu1 %1208 }
0x16b8   :  { %v1227_v62 = vmul.f32 0.015625, %v1209_v19 }
0x16cc   :  { %1202 = vadd.xlane.f32.xlu0 %v1201_v39 }
0x16d4   :  { %1179 = vadd.xlane.f32.xlu0 %v1178_v41 }
0x16dc   :  { %1211 = vadd.xlane.f32.xlu0 %v1210_v14 }
0x16df   :  { %v1663_v55 = vpop.f32.mrf.mxu2 }
0x16e0   :  { %v1664_v4 = vadd.f32 %v3155_v7, %v1663_v55 }
0x16e2   :  { %2691 = vtanh.f32 %v1664_v4 }
0x16e3   :  { %2693 = vrsqrt.f32 %v1258_v23 }
0x16e8   :  { %v3303_v10 = vpop.eup %2691 }
0x16e9   :  { %v1715_v44 = vmul.f32 %v3303_v10, %v3303_v10  ;;  %v2694_v6 = vpop.eup %2693  ;;  %v1695_v22 = vsel %vm69_vm0, %v3303_v10, 0.0 }
0x16ea   :  { %v1312_v18 = vmul.f32 %v2694_v6, %v1258_v23  ;;  %vm1318_vm11 = vweird.f32 %v2694_v6 }
0x16eb   :  { %v1727_v17 = vsel %vm69_vm0, %v1715_v44, 0.0  ;;  %vm1319_vm12 = vmor %vm1317_vm14, %vm1318_vm11 }
0x16ec   :  { %v1313_v52 = vmul.f32 %v2694_v6, %v1312_v18 }
0x16ee   :  { %v1314_v32 = vmul.f32 0.5, %v1313_v52 }
0x16f0   :  { %v1315_v12 = vsub.f32 1.5, %v1314_v32 }
0x16f2   :  { %v1316_v42 = vmul.f32 %v2694_v6, %v1315_v12 }
0x16f4   :  { %v1320_v14 = vsel %vm1319_vm12, %v2694_v6, %v1316_v42 }
0x16f5   :  { %v1346_v16 = vmul.f32 %v1320_v14, %v1250_v38 }
0x1714   :  { %v2057_v58 = vpop.permute.xlu0 %2056 }
0x1715   :  { %v2059_v51 = vmul.f32 %v2057_v58, %v3296_v61 }
0x1717   :  { %2061 = vrot.lane.b32.xlu2 %v2059_v51, %s2816_s15 }
0x173f   :  { %v1203_v9 = vpop.xlane.xlu0 %1202 }
0x1740   :  { %v1225_v11 = vmul.f32 0.015625, %v1203_v9  ;;  %1176 = vadd.xlane.f32.xlu2 %v1175_v24 }
0x1742   :  { %v1241_v25 = vsub.f32 %v1225_v11, %v1233_v13 }
0x1744   :  { %v1257_v7 = vadd.f32 1e-05, %v1241_v25 }
0x1746   :  { %2695 = vrsqrt.f32 %v1257_v7  ;;  %vm1307_vm9 = vweird.f32 %v1257_v7 }
0x1747   :  { %v1180_v49 = vpop.xlane.xlu0 %1179 }
0x1748   :  { %1728 = vadd.xlane.f32.xlu2 %v1727_v17  ;;  %v1220_v53 = vmul.f32 0.015625, %v1180_v49 }
0x174a   :  { %v1236_v0 = vmul.f32 %v1220_v53, %v1220_v53  ;;  %v1252_v32 = vsub.f32 %v3289_v40, %v1220_v53 }
0x174c   :  { %v2696_v54 = vpop.eup %2695 }
0x174d   :  { %v1302_v30 = vmul.f32 %v2696_v54, %v1257_v7  ;;  %vm1308_vm8 = vweird.f32 %v2696_v54 }
0x174e   :  { %vm1309_vm10 = vmor %vm1307_vm9, %vm1308_vm8 }
0x174f   :  { %v1303_v31 = vmul.f32 %v2696_v54, %v1302_v30  ;;  %v1212_v3 = vpop.xlane.xlu0 %1211 }
0x1750   :  { %1433 = vadd.xlane.f32.xlu2 %v1432_v36  ;;  %v1228_v56 = vmul.f32 0.015625, %v1212_v3 }
0x1751   :  { %v1304_v29 = vmul.f32 0.5, %v1303_v31 }
0x1752   :  { %v1244_v57 = vsub.f32 %v1228_v56, %v1236_v0 }
0x1753   :  { %v1305_v33 = vsub.f32 1.5, %v1304_v29 }
0x1754   :  { %v1260_v43 = vadd.f32 1e-05, %v1244_v57 }
0x1755   :  { %v1306_v28 = vmul.f32 %v2696_v54, %v1305_v33 }
0x1756   :  { %vm1337_vm5 = vweird.f32 %v1260_v43 }
0x1757   :  { %v1310_v39 = vsel %vm1309_vm10, %v2696_v54, %v1306_v28 }
0x1758   :  { %1465 = vadd.xlane.f32.xlu2 %v1464_v48  ;;  %v1345_v41 = vmul.f32 %v1310_v39, %v1249_v37 }
0x175a   :  { %2508 = vmatmul.msk.f32.gmra.mxu1 %vm1156_vm15, %v1345_v41 }
0x1762   :  { %2509 = vmatmul.msk.f32.gmra.mxu1 %vm1156_vm15, %v1346_v16 }
0x1771   :  { %v2062_v45 = vpop.permute.xlu2 %2061 }
0x1772   :  { %v3324_v34 = vadd.f32 %v2062_v45, %v2054_v2 }
0x1774   :  { %2697 = vtanh.f32 %v3324_v34 }
0x1775   :  { %2699 = vrsqrt.f32 %v1260_v43 }
0x177a   :  { %v2698_v60 = vpop.eup %2697 }
0x177b   :  { %2067 = vrot.lane.b32.xlu1 %v2698_v60, %s2821_s5  ;;  %v2700_v50 = vpop.eup %2699 }
0x177c   :  { %v1332_v1 = vmul.f32 %v2700_v50, %v1260_v43  ;;  %vm1338_vm4 = vweird.f32 %v2700_v50 }
0x177d   :  { %vm1339_vm6 = vmor %vm1337_vm5, %vm1338_vm4 }
0x177e   :  { %v1333_v27 = vmul.f32 %v2700_v50, %v1332_v1 }
0x1780   :  { %v1334_v24 = vmul.f32 0.5, %v1333_v27 }
0x1782   :  { %v1335_v44 = vsub.f32 1.5, %v1334_v24 }
0x1784   :  { %v1336_v30 = vmul.f32 %v2700_v50, %v1335_v44 }
0x1786   :  { %v1340_v36 = vsel %vm1339_vm6, %v2700_v50, %v1336_v30 }
0x1787   :  { %v1348_v29 = vmul.f32 %v1340_v36, %v1252_v32 }
0x17a5   :  { %1696 = vadd.xlane.f32.xlu1 %v1695_v22 }
0x17b3   :  { %v1177_v58 = vpop.xlane.xlu2 %1176 }
0x17b4   :  { %v1219_v51 = vmul.f32 0.015625, %v1177_v58 }
0x17b6   :  { %v1235_v59 = vmul.f32 %v1219_v51, %v1219_v51  ;;  %v1251_v6 = vsub.f32 %v3267_v46, %v1219_v51 }
0x17b8   :  { %v1243_v47 = vsub.f32 %v1227_v62, %v1235_v59 }
0x17ba   :  { %v1259_v63 = vadd.f32 1e-05, %v1243_v47 }
0x17bb   :  { %v3330_v55 = vpop.xlane.xlu2 %1728 }
0x17bc   :  { %2701 = vrsqrt.f32 %v1259_v63  ;;  %vm1327_vm2 = vweird.f32 %v1259_v63  ;;  %v1755_v0 = vmul.f32 0.0625, %v3330_v55 }
0x17c2   :  { %v2702_v4 = vpop.eup %2701 }
0x17c3   :  { %v1322_v8 = vmul.f32 %v2702_v4, %v1259_v63  ;;  %v1434_v23 = vpop.xlane.xlu2 %1433  ;;  %vm1328_vm1 = vweird.f32 %v2702_v4 }
0x17c4   :  { %v1482_v11 = vmul.f32 0.015625, %v1434_v23  ;;  %vm1329_vm3 = vmor %vm1327_vm2, %vm1328_vm1 }
0x17c5   :  { %v1323_v9 = vmul.f32 %v2702_v4, %v1322_v8 }
0x17c6   :  { %v1498_v15 = vmul.f32 %v1482_v11, %v1482_v11  ;;  %v1514_v16 = vsub.f32 %v3311_v26, %v1482_v11 }
0x17c7   :  { %v1324_v13 = vmul.f32 0.5, %v1323_v9 }
0x17c9   :  { %v1325_v25 = vsub.f32 1.5, %v1324_v13 }
0x17cb   :  { %v1466_v35 = vpop.xlane.xlu2 %1465  ;;  %v1326_v7 = vmul.f32 %v2702_v4, %v1325_v25 }
0x17cc   :  { %v1490_v17 = vmul.f32 0.015625, %v1466_v35 }
0x17cd   :  { %v1330_v18 = vsel %vm1329_vm3, %v2702_v4, %v1326_v7 }
0x17ce   :  { %v1506_v54 = vsub.f32 %v1490_v17, %v1498_v15  ;;  %v1347_v52 = vmul.f32 %v1330_v18, %v1251_v6  ;;  %v3375_v18 = vld [vmem:[#allocation2 + $0xe8] ss:$0 sm:$0xff] }
0x17d0   :  { %v1522_v31 = vadd.f32 1e-05, %v1506_v54  ;;  %2510 = vmatmul.msk.f32.gmra.mxu1 %vm1156_vm15, %v1347_v52 }
0x17d2   :  { %2703 = vrsqrt.f32 %v1522_v31  ;;  %vm1563_vm8 = vweird.f32 %v1522_v31 }
0x17d7   :  { %v1403_v33 = vpop.f32.mrf.mxu1 }
0x17d8   :  { %v2704_v46 = vpop.eup %2703  ;;  %v1404_v20 = vadd.f32 %v3307_v5, %v1403_v33  ;;  %2511 = vmatmul.msk.f32.gmra.mxu1 %vm1156_vm15, %v1348_v29 }
0x17d9   :  { %v1558_v12 = vmul.f32 %v2704_v46, %v1522_v31  ;;  %vm1564_vm7 = vweird.f32 %v2704_v46 }
0x17da   :  { %v3337_v28 = vmax.f32 %v1404_v20, 0.0  ;;  %vm1565_vm9 = vmor %vm1563_vm8, %vm1564_vm7 }
0x17db   :  { %v1559_v37 = vmul.f32 %v2704_v46, %v1558_v12 }
0x17dc   :  { %v1451_v48 = vmul.f32 %v3337_v28, %v3337_v28  ;;  %v1435_v6 = vsel %vm1156_vm15, %v3337_v28, 0.0 }
0x17dd   :  { %v1560_v39 = vmul.f32 0.5, %v1559_v37 }
0x17de   :  { %v1467_v41 = vsel %vm1156_vm15, %v1451_v48, 0.0 }
0x17df   :  { %v1561_v42 = vsub.f32 1.5, %v1560_v39  ;;  %1468 = vadd.xlane.f32.xlu1 %v1467_v41  ;;  %v1406_v40 = vpop.f32.mrf.mxu1 }
0x17e0   :  { %v1407_v14 = vadd.f32 %v3307_v5, %v1406_v40 }
0x17e1   :  { %v1562_v38 = vmul.f32 %v2704_v46, %v1561_v42 }
0x17e2   :  { %v3344_v2 = vmax.f32 %v1407_v14, 0.0 }
0x17e3   :  { %v1566_v45 = vsel %vm1565_vm9, %v2704_v46, %v1562_v38 }
0x17e4   :  { %v1610_v60 = vmul.f32 %v1566_v45, %v1514_v16  ;;  %v1452_v49 = vmul.f32 %v3344_v2, %v3344_v2 }
0x17e6   :  { %2515 = vmatmul.msk.f32.gmra.mxu2 %vm1156_vm15, %v1610_v60  ;;  %v1470_v22 = vsel %vm1156_vm15, %v1452_v49, 0.0  ;;  %v1438_v49 = vsel %vm1156_vm15, %v3344_v2, 0.0 }
0x17e7   :  { %1471 = vadd.xlane.f32.xlu1 %v1470_v22 }
0x17ed   :  { %v2068_v3 = vpop.permute.xlu1 %2067 }
0x17ee   :  { %v2070_v53 = vmul.f32 %v2068_v3, %v3296_v61 }
0x17f0   :  { %2072 = vrot.lane.b32.xlu0 %v2070_v53, %s2822_s6 }
0x1818   :  { %v1697_v56 = vpop.xlane.xlu1 %1696 }
0x1819   :  { %v1747_v26 = vmul.f32 0.0625, %v1697_v56 }
0x181b   :  { %v1763_v57 = vmul.f32 %v1747_v26, %v1747_v26  ;;  %v1779_v61 = vsub.f32 %v3303_v10, %v1747_v26 }
0x181d   :  { %v1771_v43 = vsub.f32 %v1755_v0, %v1763_v57 }
0x181f   :  { %v1787_v19 = vadd.f32 1e-05, %v1771_v43 }
0x1821   :  { %2705 = vrsqrt.f32 %v1787_v19  ;;  %vm1819_vm11 = vweird.f32 %v1787_v19 }
0x1827   :  { %v2706_v58 = vpop.eup %2705 }
0x1828   :  { %v1814_v51 = vmul.f32 %v2706_v58, %v1787_v19  ;;  %vm1820_vm10 = vweird.f32 %v2706_v58 }
0x1829   :  { %vm1821_vm14 = vmor %vm1819_vm11, %vm1820_vm10 }
0x182a   :  { %v1815_v62 = vmul.f32 %v2706_v58, %v1814_v51 }
0x182c   :  { %v1816_v59 = vmul.f32 0.5, %v1815_v62 }
0x182e   :  { %v1817_v47 = vsub.f32 1.5, %v1816_v59 }
0x1830   :  { %v1818_v63 = vmul.f32 %v2706_v58, %v1817_v47 }
0x1832   :  { %v1822_v50 = vsel %vm1821_vm14, %v2706_v58, %v1818_v63 }
0x1833   :  { %v1875_v1 = vmul.f32 %v1822_v50, %v1779_v61 }
0x1835   :  { %2522 = vmatmul.msk.f32.gmra.mxu0 %vm69_vm0, %v1875_v1 }
0x184d   :  { %v1409_v55 = vpop.f32.mrf.mxu1 }
0x184e   :  { %v1410_v4 = vadd.f32 %v3307_v5, %v1409_v55 }
0x1850   :  { %v3356_v27 = vmax.f32 %v1410_v4, 0.0 }
0x1852   :  { %v1441_v8 = vsel %vm1156_vm15, %v3356_v27, 0.0  ;;  %v1453_v23 = vmul.f32 %v3356_v27, %v3356_v27  ;;  %v1469_v45 = vpop.xlane.xlu1 %1468 }
0x1853   :  { %1442 = vadd.xlane.f32.xlu1 %v1441_v8  ;;  %v1491_v3 = vmul.f32 0.015625, %v1469_v45 }
0x1854   :  { %v1473_v9 = vsel %vm1156_vm15, %v1453_v23, 0.0 }
0x1855   :  { %v1412_v24 = vpop.f32.mrf.mxu1 }
0x1856   :  { %v1413_v7 = vadd.f32 %v3307_v5, %v1412_v24 }
0x1858   :  { %v3373_v15 = vmax.f32 %v1413_v7, 0.0 }
0x185a   :  { %v1454_v52 = vmul.f32 %v3373_v15, %v3373_v15  ;;  %v1472_v4 = vpop.xlane.xlu1 %1471 }
0x185b   :  { %1474 = vadd.xlane.f32.xlu1 %v1473_v9 }
0x185c   :  { %v1476_v5 = vsel %vm1156_vm15, %v1454_v52, 0.0 }
0x1862   :  { %v2073_v10 = vpop.permute.xlu0 %2072 }
0x1863   :  { %2461 = vst.msk [vmem:[%s3531_s2 + $0x8] sm:$0xff] %vm1947_vm13, %v2073_v10  ;;  %2531 = vmatmul.msk.f32.vlgmr.msrb.gmra.mxu1 %vm1947_vm13, %v2073_v10 }
0x1869   :  { %v1666_v17 = vpop.f32.mrf.mxu2 }
0x186a   :  { %v1667_v54 = vadd.f32 %v3375_v18, %v1666_v17  ;;  %v1492_v17 = vmul.f32 0.015625, %v1472_v4 }
0x18b2   :  { %v1929_v13 = vpop.f32.mrf.mxu0 }
0x18b3   :  { %v1930_v11 = vadd.f32 %v3208_v21, %v1929_v13  ;;  %v1444_v21 = vsel %vm1156_vm15, %v3373_v15, 0.0 }
0x18c6   :  { %v1443_v8 = vpop.xlane.xlu1 %1442 }
0x18c7   :  { %v3404_v9 = vmul.f32 0.015625, %v1443_v8 }
0x18c9   :  { %v1501_v24 = vmul.f32 %v3404_v9, %v3404_v9 }
0x18e0   :  { %v2093_v25 = vpop.f32.mrf.mxu1 }
0x18e1   :  { %v2096_v44 = vadd.f32 %v2093_v25, %v1930_v11 }
0x18e3   :  { %2707 = vtanh.f32 %v2096_v44  ;;  %v2532_v32 = vmul.f32 -1.442695, %v2096_v44 }
0x18e4   :  { %2709 = vtanh.f32 %v1667_v54 }
0x18e5   :  { %2711 = vpow2.f32 %v2532_v32 }
0x18e9   :  { %v2708_v35 = vpop.eup %2707 }
0x18ea   :  { %2119 = vrot.lane.b32.xlu0 %v2708_v35, %s2820_s0  ;;  %v3383_v30 = vpop.eup %2709 }
0x18eb   :  { %v1716_v31 = vmul.f32 %v3383_v30, %v3383_v30  ;;  %v2712_v29 = vpop.eup %2711  ;;  %v1698_v0 = vsel %vm69_vm0, %v3383_v30, 0.0 }
0x18ec   :  { %v2100_v33 = vadd.f32 1.0, %v2712_v29 }
0x18ed   :  { %v1730_v36 = vsel %vm69_vm0, %v1716_v31, 0.0 }
0x18ee   :  { %2713 = vrcp.f32 %v2100_v33  ;;  %v2112_v39 = vand.u32 2147483648, %v2100_v33  ;;  %vm2106_vm1 = vweird.f32 %v2100_v33  ;;  %v2110_v41 = vand.u32 2147483647, %v2100_v33 }
0x18f0   :  { %v2113_v40 = vor.u32 1.1754944e-38, %v2112_v39  ;;  %vm2111_vm3 = vcmp.eq.f32.partialorder %v2110_v41, 8.507059e+37 }
0x18f4   :  { %v2714_v46 = vpop.eup %2713 }
0x18f5   :  { %v2102_v20 = vmul.f32 %v2714_v46, %v2100_v33  ;;  %vm2107_vm12 = vweird.f32 %v2714_v46 }
0x18f6   :  { %vm2108_vm2 = vmor %vm2106_vm1, %vm2107_vm12 }
0x18f7   :  { %v2103_v12 = vsub.f32 1.0, %v2102_v20 }
0x18f9   :  { %v2104_v37 = vmul.f32 %v2714_v46, %v2103_v12 }
0x18fb   :  { %v2105_v48 = vadd.f32 %v2714_v46, %v2104_v37 }
0x18fd   :  { %v2109_v42 = vsel %vm2108_vm2, %v2714_v46, %v2105_v48 }
0x18fe   :  { %v3388_v38 = vsel %vm2111_vm3, %v2113_v40, %v2109_v42 }
0x18ff   :  { %v2117_v61 = vmul.f32 %v3388_v38, %v3324_v34 }
0x1914   :  { %1436 = vadd.xlane.f32.xlu0 %v1435_v6 }
0x191c   :  { %1445 = vadd.xlane.f32.xlu0 %v1444_v21 }
0x1924   :  { %1477 = vadd.xlane.f32.xlu0 %v1476_v5 }
0x192c   :  { %1731 = vadd.xlane.f32.xlu0 %v1730_v36 }
0x195c   :  { %v2120_v14 = vpop.permute.xlu0 %2119 }
0x195d   :  { %v2122_v16 = vmul.f32 %v2120_v14, %v3388_v38 }
0x195f   :  { %2124 = vrot.lane.b32.xlu2 %v2122_v16, %s2816_s15 }
0x1987   :  { %v1437_v60 = vpop.xlane.xlu0 %1436 }
0x1988   :  { %v1483_v22 = vmul.f32 0.015625, %v1437_v60  ;;  %1439 = vadd.xlane.f32.xlu2 %v1438_v49 }
0x198a   :  { %v1499_v53 = vmul.f32 %v1483_v22, %v1483_v22  ;;  %v1515_v59 = vsub.f32 %v3337_v28, %v1483_v22  ;;  %v1475_v28 = vpop.xlane.xlu1 %1474 }
0x198b   :  { %v1493_v10 = vmul.f32 0.015625, %v1475_v28 }
0x198c   :  { %v1507_v56 = vsub.f32 %v1491_v3, %v1499_v53 }
0x198d   :  { %v1509_v13 = vsub.f32 %v1493_v10, %v1501_v24 }
0x198e   :  { %v1523_v26 = vadd.f32 1e-05, %v1507_v56 }
0x198f   :  { %v1446_v23 = vpop.xlane.xlu0 %1445  ;;  %v1525_v25 = vadd.f32 1e-05, %v1509_v13 }
0x1990   :  { %2715 = vrsqrt.f32 %v1523_v26  ;;  %1699 = vadd.xlane.f32.xlu2 %v1698_v0  ;;  %vm1573_vm5 = vweird.f32 %v1523_v26  ;;  %v3408_v11 = vmul.f32 0.015625, %v1446_v23 }
0x1991   :  { %vm1593_vm11 = vweird.f32 %v1525_v25 }
0x1992   :  { %v1502_v7 = vmul.f32 %v3408_v11, %v3408_v11  ;;  %v1518_v10 = vsub.f32 %v3373_v15, %v3408_v11 }
0x1996   :  { %v2716_v57 = vpop.eup %2715 }
0x1997   :  { %v1568_v43 = vmul.f32 %v2716_v57, %v1523_v26  ;;  %vm1574_vm4 = vweird.f32 %v2716_v57  ;;  %v1478_v34 = vpop.xlane.xlu0 %1477 }
0x1998   :  { %vm1575_vm6 = vmor %vm1573_vm5, %vm1574_vm4  ;;  %v1494_v44 = vmul.f32 0.015625, %v1478_v34 }
0x1999   :  { %v1569_v19 = vmul.f32 %v2716_v57, %v1568_v43 }
0x199a   :  { %v1510_v54 = vsub.f32 %v1494_v44, %v1502_v7  ;;  %v3433_v44 = vld [vmem:[#allocation2 + $0x108] ss:$0 sm:$0xff] }
0x199b   :  { %v1570_v58 = vmul.f32 0.5, %v1569_v19 }
0x199c   :  { %v1526_v5 = vadd.f32 1e-05, %v1510_v54 }
0x199d   :  { %v1571_v51 = vsub.f32 1.5, %v1570_v58 }
0x199e   :  { %vm1603_vm4 = vweird.f32 %v1526_v5 }
0x199f   :  { %v1572_v62 = vmul.f32 %v2716_v57, %v1571_v51  ;;  %v1732_v32 = vpop.xlane.xlu0 %1731 }
0x19a0   :  { %v1756_v20 = vmul.f32 0.0625, %v1732_v32 }
0x19a1   :  { %v1576_v47 = vsel %vm1575_vm6, %v2716_v57, %v1572_v62 }
0x19a2   :  { %v1611_v63 = vmul.f32 %v1576_v47, %v1515_v59 }
0x19a4   :  { %2516 = vmatmul.msk.f32.gmra.mxu2 %vm1156_vm15, %v1611_v63 }
0x19b9   :  { %v2125_v50 = vpop.permute.xlu2 %2124 }
0x19ba   :  { %v3400_v1 = vadd.f32 %v2125_v50, %v2117_v61 }
0x19bc   :  { %2717 = vtanh.f32 %v3400_v1 }
0x19bd   :  { %2719 = vrsqrt.f32 %v1525_v25 }
0x19c2   :  { %v2718_v55 = vpop.eup %2717 }
0x19c3   :  { %2130 = vrot.lane.b32.xlu1 %v2718_v55, %s2821_s5  ;;  %v2720_v36 = vpop.eup %2719 }
0x19c4   :  { %v1588_v46 = vmul.f32 %v2720_v36, %v1525_v25  ;;  %vm1594_vm10 = vweird.f32 %v2720_v36 }
0x19c5   :  { %vm1595_vm12 = vmor %vm1593_vm11, %vm1594_vm10 }
0x19c6   :  { %v1589_v39 = vmul.f32 %v2720_v36, %v1588_v46 }
0x19c8   :  { %v1590_v16 = vmul.f32 0.5, %v1589_v39 }
0x19ca   :  { %v1591_v3 = vsub.f32 1.5, %v1590_v16 }
0x19cc   :  { %v1592_v51 = vmul.f32 %v2720_v36, %v1591_v3 }
0x19ce   :  { %v1596_v63 = vsel %vm1595_vm12, %v2720_v36, %v1592_v51 }
0x19fb   :  { %v1440_v35 = vpop.xlane.xlu2 %1439 }
0x19fc   :  { %v1484_v6 = vmul.f32 0.015625, %v1440_v35 }
0x19fe   :  { %v1500_v21 = vmul.f32 %v1484_v6, %v1484_v6  ;;  %v1516_v0 = vsub.f32 %v3344_v2, %v1484_v6  ;;  %v1517_v2 = vsub.f32 %v3356_v27, %v3404_v9 }
0x1a00   :  { %v1508_v52 = vsub.f32 %v1492_v17, %v1500_v21  ;;  %v1613_v4 = vmul.f32 %v1596_v63, %v1517_v2 }
0x1a02   :  { %v1524_v31 = vadd.f32 1e-05, %v1508_v52 }
0x1a03   :  { %v1700_v29 = vpop.xlane.xlu2 %1699 }
0x1a04   :  { %2721 = vrsqrt.f32 %v1524_v31  ;;  %v1748_v33 = vmul.f32 0.0625, %v1700_v29  ;;  %vm1583_vm8 = vweird.f32 %v1524_v31 }
0x1a05   :  { %2723 = vrsqrt.f32 %v1526_v5 }
0x1a06   :  { %v1764_v12 = vmul.f32 %v1748_v33, %v1748_v33  ;;  %v1780_v50 = vsub.f32 %v3383_v30, %v1748_v33 }
0x1a08   :  { %v1772_v37 = vsub.f32 %v1756_v20, %v1764_v12 }
0x1a0a   :  { %v2722_v48 = vpop.eup %2721  ;;  %v1788_v41 = vadd.f32 1e-05, %v1772_v37 }
0x1a0b   :  { %v1578_v42 = vmul.f32 %v2722_v48, %v1524_v31  ;;  %v2724_v40 = vpop.eup %2723  ;;  %vm1584_vm7 = vweird.f32 %v2722_v48 }
0x1a0c   :  { %2725 = vrsqrt.f32 %v1788_v41  ;;  %v1598_v45 = vmul.f32 %v2724_v40, %v1526_v5  ;;  %vm1585_vm9 = vmor %vm1583_vm8, %vm1584_vm7  ;;  %vm1829_vm1 = vweird.f32 %v1788_v41  ;;  %vm1604_vm3 = vweird.f32 %v2724_v40 }
0x1a0d   :  { %v1579_v14 = vmul.f32 %v2722_v48, %v1578_v42  ;;  %vm1605_vm5 = vmor %vm1603_vm4, %vm1604_vm3 }
0x1a0e   :  { %v1599_v53 = vmul.f32 %v2724_v40, %v1598_v45 }
0x1a0f   :  { %v1580_v60 = vmul.f32 0.5, %v1579_v14 }
0x1a10   :  { %v1600_v58 = vmul.f32 0.5, %v1599_v53 }
0x1a11   :  { %v1581_v49 = vsub.f32 1.5, %v1580_v60 }
0x1a12   :  { %v2726_v22 = vpop.eup %2725  ;;  %v1601_v47 = vsub.f32 1.5, %v1600_v58 }
0x1a13   :  { %v1824_v56 = vmul.f32 %v2726_v22, %v1788_v41  ;;  %v1582_v26 = vmul.f32 %v2722_v48, %v1581_v49  ;;  %vm1830_vm14 = vweird.f32 %v2726_v22 }
0x1a14   :  { %vm1831_vm2 = vmor %vm1829_vm1, %vm1830_vm14  ;;  %v1602_v23 = vmul.f32 %v2724_v40, %v1601_v47 }
0x1a15   :  { %v1825_v57 = vmul.f32 %v2726_v22, %v1824_v56  ;;  %v1586_v43 = vsel %vm1585_vm9, %v2722_v48, %v1582_v26 }
0x1a16   :  { %v1612_v19 = vmul.f32 %v1586_v43, %v1516_v0  ;;  %v1606_v28 = vsel %vm1605_vm5, %v2724_v40, %v1602_v23 }
0x1a17   :  { %v1826_v62 = vmul.f32 0.5, %v1825_v57  ;;  %v1614_v24 = vmul.f32 %v1606_v28, %v1518_v10 }
0x1a18   :  { %2517 = vmatmul.msk.f32.gmra.mxu2 %vm1156_vm15, %v1612_v19 }
0x1a19   :  { %v1827_v59 = vsub.f32 1.5, %v1826_v62 }
0x1a1b   :  { %v1828_v61 = vmul.f32 %v2726_v22, %v1827_v59 }
0x1a1d   :  { %v1832_v55 = vsel %vm1831_vm2, %v2726_v22, %v1828_v61 }
0x1a1e   :  { %v1876_v8 = vmul.f32 %v1832_v55, %v1780_v50 }
0x1a20   :  { %2518 = vmatmul.msk.f32.gmra.mxu2 %vm1156_vm15, %v1613_v4  ;;  %2523 = vmatmul.msk.f32.gmra.mxu0 %vm69_vm0, %v1876_v8 }
0x1a27   :  { %v1669_v13 = vpop.f32.mrf.mxu2 }
0x1a28   :  { %2519 = vmatmul.msk.f32.gmra.mxu2 %vm1156_vm15, %v1614_v24  ;;  %v1670_v17 = vadd.f32 %v3375_v18, %v1669_v13 }
0x1a35   :  { %v2131_v27 = vpop.permute.xlu1 %2130 }
0x1a36   :  { %v2133_v30 = vmul.f32 %v2131_v27, %v3388_v38 }
0x1a38   :  { %2135 = vrot.lane.b32.xlu2 %v2133_v30, %s2822_s6 }
0x1a92   :  { %v2136_v9 = vpop.permute.xlu2 %2135 }
0x1a93   :  { %2462 = vst.msk [vmem:[%s3531_s2 + $0x10] sm:$0xff] %vm1947_vm13, %v2136_v9  ;;  %2533 = vmatmul.msk.f32.vlgmr.msra.gmra.mxu2 %vm1947_vm13, %v2136_v9 }
0x1a9b   :  { %v1672_v34 = vpop.f32.mrf.mxu2 }
0x1a9c   :  { %v1673_v49 = vadd.f32 %v3375_v18, %v1672_v34 }
0x1a9d   :  { %v1932_v11 = vpop.f32.mrf.mxu0 }
0x1a9e   :  { %v1933_v38 = vadd.f32 %v3433_v44, %v1932_v11 }
0x1aa3   :  { %v3429_v25 = vpop.f32.mrf.mxu2 }
0x1aab   :  { %v3431_v15 = vpop.f32.mrf.mxu2 }
0x1b16   :  { %v2156_v35 = vpop.f32.mrf.mxu2 }
0x1b17   :  { %v2159_v7 = vadd.f32 %v2156_v35, %v1933_v38 }
0x1b19   :  { %2727 = vtanh.f32 %v2159_v7  ;;  %v2534_v5 = vmul.f32 -1.442695, %v2159_v7 }
0x1b1a   :  { %2729 = vtanh.f32 %v1670_v17 }
0x1b1b   :  { %2731 = vpow2.f32 %v2534_v5 }
0x1b1f   :  { %v2728_v6 = vpop.eup %2727 }
0x1b20   :  { %2182 = vrot.lane.b32.xlu0 %v2728_v6, %s2820_s0  ;;  %v3438_v54 = vpop.eup %2729 }
0x1b21   :  { %v1717_v21 = vmul.f32 %v3438_v54, %v3438_v54  ;;  %v2732_v31 = vpop.eup %2731  ;;  %v1701_v22 = vsel %vm69_vm0, %v3438_v54, 0.0 }
0x1b22   :  { %v2163_v36 = vadd.f32 1.0, %v2732_v31 }
0x1b23   :  { %v1733_v52 = vsel %vm69_vm0, %v1717_v21, 0.0 }
0x1b24   :  { %2733 = vrcp.f32 %v2163_v36  ;;  %v2175_v12 = vand.u32 2147483648, %v2163_v36  ;;  %vm2169_vm6 = vweird.f32 %v2163_v36  ;;  %v2173_v37 = vand.u32 2147483647, %v2163_v36 }
0x1b26   :  { %v2176_v39 = vor.u32 1.1754944e-38, %v2175_v12  ;;  %vm2174_vm8 = vcmp.eq.f32.partialorder %v2173_v37, 8.507059e+37 }
0x1b2a   :  { %v2734_v32 = vpop.eup %2733 }
0x1b2b   :  { %v2165_v29 = vmul.f32 %v2734_v32, %v2163_v36  ;;  %vm2170_vm15 = vweird.f32 %v2734_v32 }
0x1b2c   :  { %vm2171_vm7 = vmor %vm2169_vm6, %vm2170_vm15 }
0x1b2d   :  { %v2166_v33 = vsub.f32 1.0, %v2165_v29 }
0x1b2f   :  { %v2167_v46 = vmul.f32 %v2734_v32, %v2166_v33 }
0x1b31   :  { %v2168_v20 = vadd.f32 %v2734_v32, %v2167_v46 }
0x1b33   :  { %v2172_v48 = vsel %vm2171_vm7, %v2734_v32, %v2168_v20  ;;  %v1676_v20 = vadd.f32 %v3375_v18, %v3429_v25 }
0x1b34   :  { %v2177_v42 = vsel %vm2174_vm8, %v2176_v39, %v2172_v48 }
0x1b35   :  { %v2180_v14 = vmul.f32 %v2177_v42, %v3400_v1 }
0x1b4a   :  { %1734 = vadd.xlane.f32.xlu0 %v1733_v52 }
0x1b92   :  { %v2183_v41 = vpop.permute.xlu0 %2182 }
0x1b93   :  { %v2185_v40 = vmul.f32 %v2183_v41, %v2177_v42 }
0x1b95   :  { %2187 = vrot.lane.b32.xlu1 %v2185_v40, %s2816_s15 }
0x1bbd   :  { %v1735_v0 = vpop.xlane.xlu0 %1734 }
0x1bbe   :  { %v1757_v19 = vmul.f32 0.0625, %v1735_v0 }
0x1c07   :  { %v2188_v16 = vpop.permute.xlu1 %2187 }
0x1c08   :  { %v3445_v45 = vadd.f32 %v2188_v16, %v2180_v14 }
0x1c0a   :  { %2735 = vtanh.f32 %v3445_v45 }
0x1c0b   :  { %2737 = vtanh.f32 %v1673_v49 }
0x1c10   :  { %v2736_v60 = vpop.eup %2735 }
0x1c11   :  { %2193 = vrot.lane.b32.xlu1 %v2736_v60, %s2821_s5  ;;  %v3452_v3 = vpop.eup %2737 }
0x1c12   :  { %v1718_v1 = vmul.f32 %v3452_v3, %v3452_v3  ;;  %v1704_v12 = vsel %vm69_vm0, %v3452_v3, 0.0 }
0x1c14   :  { %v1736_v53 = vsel %vm69_vm0, %v1718_v1, 0.0 }
0x1c3b   :  { %1702 = vadd.xlane.f32.xlu1 %v1701_v22 }
0x1c43   :  { %1737 = vadd.xlane.f32.xlu1 %v1736_v53 }
0x1c83   :  { %v2194_v56 = vpop.permute.xlu1 %2193 }
0x1c84   :  { %v2196_v26 = vmul.f32 %v2194_v56, %v2177_v42 }
0x1c86   :  { %2198 = vrot.lane.b32.xlu2 %v2196_v26, %s2822_s6 }
0x1cae   :  { %v1703_v57 = vpop.xlane.xlu1 %1702 }
0x1caf   :  { %v1749_v43 = vmul.f32 0.0625, %v1703_v57 }
0x1cb1   :  { %v1765_v58 = vmul.f32 %v1749_v43, %v1749_v43  ;;  %v1781_v55 = vsub.f32 %v3438_v54, %v1749_v43 }
0x1cb3   :  { %v1773_v51 = vsub.f32 %v1757_v19, %v1765_v58 }
0x1cb5   :  { %v1789_v62 = vadd.f32 1e-05, %v1773_v51 }
0x1cb6   :  { %v1738_v40 = vpop.xlane.xlu1 %1737 }
0x1cb7   :  { %2739 = vrsqrt.f32 %v1789_v62  ;;  %vm1839_vm10 = vweird.f32 %v1789_v62  ;;  %v1758_v16 = vmul.f32 0.0625, %v1738_v40 }
0x1cbd   :  { %v2740_v59 = vpop.eup %2739 }
0x1cbe   :  { %v1834_v47 = vmul.f32 %v2740_v59, %v1789_v62  ;;  %vm1840_vm9 = vweird.f32 %v2740_v59 }
0x1cbf   :  { %vm1841_vm11 = vmor %vm1839_vm10, %vm1840_vm9 }
0x1cc0   :  { %v1835_v63 = vmul.f32 %v2740_v59, %v1834_v47 }
0x1cc2   :  { %v1836_v61 = vmul.f32 0.5, %v1835_v63 }
0x1cc4   :  { %v1837_v2 = vsub.f32 1.5, %v1836_v61 }
0x1cc6   :  { %v1838_v50 = vmul.f32 %v2740_v59, %v1837_v2 }
0x1cc8   :  { %v1842_v4 = vsel %vm1841_vm11, %v2740_v59, %v1838_v50 }
0x1cc9   :  { %v1877_v8 = vmul.f32 %v1842_v4, %v1781_v55 }
0x1ccb   :  { %2524 = vmatmul.msk.f32.gmra.mxu0 %vm69_vm0, %v1877_v8 }
0x1ce0   :  { %v2199_v23 = vpop.permute.xlu2 %2198 }
0x1ce1   :  { %2463 = vst.msk [vmem:[%s3531_s2 + $0x18] sm:$0xff] %vm1947_vm13, %v2199_v23  ;;  %2535 = vmatmul.msk.f32.vlgmr.msrb.gmra.mxu3 %vm1947_vm13, %v2199_v23 }
0x1d48   :  { %v1935_v28 = vpop.f32.mrf.mxu0 }
0x1d49   :  { %v1936_v10 = vadd.f32 %v3433_v44, %v1935_v28 }
0x1d64   :  { %v2219_v24 = vpop.f32.mrf.mxu3 }
0x1d65   :  { %v2222_v27 = vadd.f32 %v2219_v24, %v1936_v10 }
0x1d67   :  { %2741 = vtanh.f32 %v2222_v27  ;;  %v2536_v9 = vmul.f32 -1.442695, %v2222_v27 }
0x1d69   :  { %2743 = vpow2.f32 %v2536_v9 }
0x1d6d   :  { %v2742_v30 = vpop.eup %2741 }
0x1d6e   :  { %2245 = vrot.lane.b32.xlu2 %v2742_v30, %s2820_s0 }
0x1d6f   :  { %v2744_v13 = vpop.eup %2743 }
0x1d70   :  { %v2226_v34 = vadd.f32 1.0, %v2744_v13 }
0x1d72   :  { %2745 = vrcp.f32 %v2226_v34  ;;  %v2238_v17 = vand.u32 2147483648, %v2226_v34  ;;  %vm2232_vm12 = vweird.f32 %v2226_v34  ;;  %v2236_v54 = vand.u32 2147483647, %v2226_v34 }
0x1d74   :  { %v2239_v52 = vor.u32 1.1754944e-38, %v2238_v17  ;;  %vm2237_vm2 = vcmp.eq.f32.partialorder %v2236_v54, 8.507059e+37 }
0x1d78   :  { %v2746_v11 = vpop.eup %2745 }
0x1d79   :  { %v2228_v38 = vmul.f32 %v2746_v11, %v2226_v34  ;;  %vm2233_vm14 = vweird.f32 %v2746_v11 }
0x1d7a   :  { %vm2234_vm1 = vmor %vm2232_vm12, %vm2233_vm14 }
0x1d7b   :  { %v2229_v35 = vsub.f32 1.0, %v2228_v38 }
0x1d7d   :  { %v2230_v7 = vmul.f32 %v2746_v11, %v2229_v35 }
0x1d7f   :  { %v2231_v6 = vadd.f32 %v2746_v11, %v2230_v7 }
0x1d81   :  { %v2235_v21 = vsel %vm2234_vm1, %v2746_v11, %v2231_v6 }
0x1d82   :  { %v2240_v31 = vsel %vm2237_vm2, %v2239_v52, %v2235_v21 }
0x1d83   :  { %v2243_v32 = vmul.f32 %v2240_v31, %v3445_v45 }
0x1dc8   :  { %v2246_v5 = vpop.permute.xlu2 %2245 }
0x1dc9   :  { %v2248_v36 = vmul.f32 %v2246_v5, %v2240_v31 }
0x1dcb   :  { %2250 = vrot.lane.b32.xlu2 %v2248_v36, %s2816_s15 }
0x1e25   :  { %v2251_v29 = vpop.permute.xlu2 %2250 }
0x1e26   :  { %v3469_v33 = vadd.f32 %v2251_v29, %v2243_v32 }
0x1e28   :  { %2747 = vtanh.f32 %v3469_v33 }
0x1e29   :  { %2749 = vtanh.f32 %v1676_v20 }
0x1e2e   :  { %v2748_v46 = vpop.eup %2747 }
0x1e2f   :  { %2256 = vrot.lane.b32.xlu2 %v2748_v46, %s2821_s5  ;;  %v3477_v37 = vpop.eup %2749 }
0x1e30   :  { %v1719_v48 = vmul.f32 %v3477_v37, %v3477_v37  ;;  %v1707_v63 = vsel %vm69_vm0, %v3477_v37, 0.0 }
0x1e32   :  { %v1739_v39 = vsel %vm69_vm0, %v1719_v48, 0.0 }
0x1e58   :  { %1705 = vadd.xlane.f32.xlu2 %v1704_v12 }
0x1e60   :  { %1740 = vadd.xlane.f32.xlu2 %v1739_v39 }
0x1e89   :  { %v2257_v41 = vpop.permute.xlu2 %2256 }
0x1e8a   :  { %v2259_v42 = vmul.f32 %v2257_v41, %v2240_v31 }
0x1e8c   :  { %2261 = vrot.lane.b32.xlu0 %v2259_v42, %s2822_s6 }
0x1ecb   :  { %v1706_v14 = vpop.xlane.xlu2 %1705 }
0x1ecc   :  { %v1750_v25 = vmul.f32 0.0625, %v1706_v14 }
0x1ece   :  { %v1766_v45 = vmul.f32 %v1750_v25, %v1750_v25  ;;  %v1782_v57 = vsub.f32 %v3452_v3, %v1750_v25 }
0x1ed0   :  { %v1774_v60 = vsub.f32 %v1758_v16, %v1766_v45 }
0x1ed2   :  { %v1790_v49 = vadd.f32 1e-05, %v1774_v60  ;;  %v1679_v60 = vadd.f32 %v3375_v18, %v3431_v15 }
0x1ed3   :  { %v1741_v11 = vpop.xlane.xlu2 %1740 }
0x1ed4   :  { %2751 = vrsqrt.f32 %v1790_v49  ;;  %vm1849_vm4 = vweird.f32 %v1790_v49  ;;  %v1759_v7 = vmul.f32 0.0625, %v1741_v11 }
0x1eda   :  { %v2752_v22 = vpop.eup %2751 }
0x1edb   :  { %v1844_v1 = vmul.f32 %v2752_v22, %v1790_v49  ;;  %vm1850_vm3 = vweird.f32 %v2752_v22 }
0x1edc   :  { %vm1851_vm5 = vmor %vm1849_vm4, %vm1850_vm3 }
0x1edd   :  { %v1845_v53 = vmul.f32 %v2752_v22, %v1844_v1 }
0x1edf   :  { %v1846_v56 = vmul.f32 0.5, %v1845_v53 }
0x1ee1   :  { %v1847_v26 = vsub.f32 1.5, %v1846_v56 }
0x1ee3   :  { %v1848_v0 = vmul.f32 %v2752_v22, %v1847_v26 }
0x1ee5   :  { %v1852_v43 = vsel %vm1851_vm5, %v2752_v22, %v1848_v0 }
0x1ee6   :  { %v1878_v19 = vmul.f32 %v1852_v43, %v1782_v57 }
0x1ee8   :  { %2525 = vmatmul.msk.f32.gmra.mxu0 %vm69_vm0, %v1878_v19 }
0x1efe   :  { %v2262_v58 = vpop.permute.xlu0 %2261 }
0x1eff   :  { %2464 = vst.msk [vmem:[%s3531_s2 + $0x20] sm:$0xff] %vm1947_vm13, %v2262_v58  ;;  %2537 = vmatmul.msk.f32.vlgmr.msra.gmra.mxu1 %vm1947_vm13, %v2262_v58 }
0x1f65   :  { %v1938_v51 = vpop.f32.mrf.mxu0 }
0x1f66   :  { %v1939_v62 = vadd.f32 %v3433_v44, %v1938_v51 }
0x1f7c   :  { %v2282_v59 = vpop.f32.mrf.mxu1 }
0x1f7d   :  { %v2285_v47 = vadd.f32 %v2282_v59, %v1939_v62 }
0x1f7f   :  { %2753 = vtanh.f32 %v2285_v47  ;;  %v2538_v61 = vmul.f32 -1.442695, %v2285_v47 }
0x1f81   :  { %2755 = vpow2.f32 %v2538_v61 }
0x1f85   :  { %v2754_v3 = vpop.eup %2753 }
0x1f86   :  { %2308 = vrot.lane.b32.xlu1 %v2754_v3, %s2820_s0 }
0x1f87   :  { %v2756_v2 = vpop.eup %2755 }
0x1f88   :  { %v2289_v50 = vadd.f32 1.0, %v2756_v2 }
0x1f8a   :  { %2757 = vrcp.f32 %v2289_v50  ;;  %v2301_v10 = vand.u32 2147483648, %v2289_v50  ;;  %vm2295_vm6 = vweird.f32 %v2289_v50  ;;  %v2299_v24 = vand.u32 2147483647, %v2289_v50 }
0x1f8c   :  { %v2302_v30 = vor.u32 1.1754944e-38, %v2301_v10  ;;  %vm2300_vm8 = vcmp.eq.f32.partialorder %v2299_v24, 8.507059e+37 }
0x1f90   :  { %v2758_v55 = vpop.eup %2757 }
0x1f91   :  { %v2291_v4 = vmul.f32 %v2758_v55, %v2289_v50  ;;  %vm2296_vm15 = vweird.f32 %v2758_v55 }
0x1f92   :  { %vm2297_vm7 = vmor %vm2295_vm6, %vm2296_vm15 }
0x1f93   :  { %v2292_v8 = vsub.f32 1.0, %v2291_v4 }
0x1f95   :  { %v2293_v23 = vmul.f32 %v2758_v55, %v2292_v8 }
0x1f97   :  { %v2294_v28 = vadd.f32 %v2758_v55, %v2293_v23 }
0x1f99   :  { %v2298_v27 = vsel %vm2297_vm7, %v2758_v55, %v2294_v28 }
0x1f9a   :  { %v2303_v13 = vsel %vm2300_vm8, %v2302_v30, %v2298_v27 }
0x1f9b   :  { %v2306_v12 = vmul.f32 %v2303_v13, %v3469_v33 }
0x1fb0   :  { %1708 = vadd.xlane.f32.xlu1 %v1707_v63 }
0x1ff8   :  { %v2309_v9 = vpop.permute.xlu1 %2308 }
0x1ff9   :  { %v2311_v34 = vmul.f32 %v2309_v9, %v2303_v13 }
0x1ffb   :  { %2313 = vrot.lane.b32.xlu0 %v2311_v34, %s2816_s15 }
0x2023   :  { %v1709_v38 = vpop.xlane.xlu1 %1708 }
0x2024   :  { %v1751_v35 = vmul.f32 0.0625, %v1709_v38 }
0x2026   :  { %v1767_v6 = vmul.f32 %v1751_v35, %v1751_v35  ;;  %v1783_v29 = vsub.f32 %v3477_v37, %v1751_v35 }
0x2028   :  { %v1775_v17 = vsub.f32 %v1759_v7, %v1767_v6 }
0x202a   :  { %v1791_v54 = vadd.f32 1e-05, %v1775_v17 }
0x202c   :  { %2759 = vrsqrt.f32 %v1791_v54  ;;  %vm1859_vm10 = vweird.f32 %v1791_v54 }
0x2032   :  { %v2760_v21 = vpop.eup %2759 }
0x2033   :  { %v1854_v52 = vmul.f32 %v2760_v21, %v1791_v54  ;;  %vm1860_vm9 = vweird.f32 %v2760_v21 }
0x2034   :  { %vm1861_vm11 = vmor %vm1859_vm10, %vm1860_vm9 }
0x2035   :  { %v1855_v5 = vmul.f32 %v2760_v21, %v1854_v52 }
0x2037   :  { %v1856_v31 = vmul.f32 0.5, %v1855_v5 }
0x2039   :  { %v1857_v36 = vsub.f32 1.5, %v1856_v31 }
0x203b   :  { %v1858_v32 = vmul.f32 %v2760_v21, %v1857_v36 }
0x203d   :  { %v1862_v46 = vsel %vm1861_vm11, %v2760_v21, %v1858_v32 }
0x203e   :  { %v1879_v20 = vmul.f32 %v1862_v46, %v1783_v29 }
0x2040   :  { %2526 = vmatmul.msk.f32.gmra.mxu0 %vm69_vm0, %v1879_v20 }
0x206d   :  { %v2314_v48 = vpop.permute.xlu0 %2313 }
0x206e   :  { %v2316_v39 = vadd.f32 %v2314_v48, %v2306_v12 }
0x2070   :  { %2761 = vtanh.f32 %v2316_v39 }
0x2076   :  { %v2762_v41 = vpop.eup %2761 }
0x2077   :  { %2319 = vrot.lane.b32.xlu0 %v2762_v41, %s2821_s5 }
0x20bd   :  { %v1941_v37 = vpop.f32.mrf.mxu0 }
0x20be   :  { %v1942_v33 = vadd.f32 %v3433_v44, %v1941_v37 }
0x20e9   :  { %v2320_v42 = vpop.permute.xlu0 %2319 }
0x20ea   :  { %v2322_v40 = vmul.f32 %v2320_v42, %v2303_v13 }
0x20ec   :  { %2324 = vrot.lane.b32.xlu0 %v2322_v40, %s2822_s6 }
0x215e   :  { %v2325_v14 = vpop.permute.xlu0 %2324 }
0x215f   :  { %2465 = vst.msk [vmem:[%s3531_s2 + $0x28] sm:$0xff] %vm1947_vm13, %v2325_v14  ;;  %2539 = vmatmul.msk.f32.vlgmr.msrb.gmra.mxu2 %vm1947_vm13, %v2325_v14 }
0x21e2   :  { %v2345_v25 = vpop.f32.mrf.mxu2 }
0x21e3   :  { %v2348_v16 = vadd.f32 %v2345_v25, %v1942_v33 }
0x21e5   :  { %2763 = vtanh.f32 %v2348_v16  ;;  %v2540_v53 = vmul.f32 -1.442695, %v2348_v16 }
0x21e6   :  { %2765 = vtanh.f32 %v1679_v60 }
0x21e7   :  { %2767 = vpow2.f32 %v2540_v53 }
0x21eb   :  { %v2764_v45 = vpop.eup %2763 }
0x21ec   :  { %2371 = vrot.lane.b32.xlu2 %v2764_v45, %s2820_s0  ;;  %v2766_v49 = vpop.eup %2765 }
0x21ed   :  { %v1720_v22 = vmul.f32 %v2766_v49, %v2766_v49  ;;  %v2768_v56 = vpop.eup %2767  ;;  %v1710_v55 = vsel %vm69_vm0, %v2766_v49, 0.0 }
0x21ee   :  { %v2352_v26 = vadd.f32 1.0, %v2768_v56 }
0x21ef   :  { %v1742_v1 = vsel %vm69_vm0, %v1720_v22, 0.0 }
0x21f0   :  { %2769 = vrcp.f32 %v2352_v26  ;;  %v2364_v51 = vand.u32 2147483648, %v2352_v26  ;;  %vm2358_vm12 = vweird.f32 %v2352_v26  ;;  %v2362_v18 = vand.u32 2147483647, %v2352_v26 }
0x21f2   :  { %v2365_v62 = vor.u32 1.1754944e-38, %v2364_v51  ;;  %vm2363_vm2 = vcmp.eq.f32.partialorder %v2362_v18, 8.507059e+37 }
0x21f6   :  { %v2770_v0 = vpop.eup %2769 }
0x21f7   :  { %v2354_v57 = vmul.f32 %v2770_v0, %v2352_v26  ;;  %vm2359_vm14 = vweird.f32 %v2770_v0 }
0x21f8   :  { %vm2360_vm1 = vmor %vm2358_vm12, %vm2359_vm14 }
0x21f9   :  { %v2355_v43 = vsub.f32 1.0, %v2354_v57 }
0x21fb   :  { %v2356_v19 = vmul.f32 %v2770_v0, %v2355_v43 }
0x21fd   :  { %v2357_v58 = vadd.f32 %v2770_v0, %v2356_v19 }
0x21ff   :  { %v2361_v15 = vsel %vm2360_vm1, %v2770_v0, %v2357_v58 }
0x2200   :  { %v2366_v47 = vsel %vm2363_vm2, %v2365_v62, %v2361_v15 }
0x2201   :  { %v2369_v63 = vmul.f32 %v2366_v47, %v2316_v39 }
0x2215   :  { %1743 = vadd.xlane.f32.xlu2 %v1742_v1 }
0x2246   :  { %v2372_v59 = vpop.permute.xlu2 %2371 }
0x2247   :  { %v2374_v3 = vmul.f32 %v2372_v59, %v2366_v47 }
0x2249   :  { %2376 = vrot.lane.b32.xlu0 %v2374_v3, %s2816_s15 }
0x2288   :  { %v1744_v23 = vpop.xlane.xlu2 %1743 }
0x2289   :  { %v1760_v24 = vmul.f32 0.0625, %v1744_v23 }
0x22bb   :  { %v2377_v61 = vpop.permute.xlu0 %2376 }
0x22bc   :  { %v2379_v2 = vadd.f32 %v2377_v61, %v2369_v63 }
0x22be   :  { %2771 = vtanh.f32 %v2379_v2 }
0x22c4   :  { %v2772_v50 = vpop.eup %2771 }
0x22c5   :  { %2382 = vrot.lane.b32.xlu0 %v2772_v50, %s2821_s5 }
0x22ef   :  { %1711 = vadd.xlane.f32.xlu0 %v1710_v55 }
0x2337   :  { %v2383_v4 = vpop.permute.xlu0 %2382 }
0x2338   :  { %v2385_v8 = vmul.f32 %v2383_v4, %v2366_v47 }
0x233a   :  { %2387 = vrot.lane.b32.xlu1 %v2385_v8, %s2822_s6 }
0x2362   :  { %v1712_v28 = vpop.xlane.xlu0 %1711 }
0x2363   :  { %v1752_v10 = vmul.f32 0.0625, %v1712_v28 }
0x2365   :  { %v1768_v27 = vmul.f32 %v1752_v10, %v1752_v10  ;;  %v1784_v6 = vsub.f32 %v2766_v49, %v1752_v10 }
0x2367   :  { %v1776_v30 = vsub.f32 %v1760_v24, %v1768_v27 }
0x2369   :  { %v1792_v9 = vadd.f32 1e-05, %v1776_v30 }
0x236b   :  { %2773 = vrsqrt.f32 %v1792_v9  ;;  %vm1869_vm4 = vweird.f32 %v1792_v9 }
0x2371   :  { %v2774_v13 = vpop.eup %2773 }
0x2372   :  { %v1864_v34 = vmul.f32 %v2774_v13, %v1792_v9  ;;  %vm1870_vm3 = vweird.f32 %v2774_v13 }
0x2373   :  { %vm1871_vm5 = vmor %vm1869_vm4, %vm1870_vm3 }
0x2374   :  { %v1865_v11 = vmul.f32 %v2774_v13, %v1864_v34 }
0x2376   :  { %v1866_v38 = vmul.f32 0.5, %v1865_v11 }
0x2378   :  { %v1867_v35 = vsub.f32 1.5, %v1866_v38 }
0x237a   :  { %v1868_v7 = vmul.f32 %v2774_v13, %v1867_v35 }
0x237c   :  { %v1872_v17 = vsel %vm1871_vm5, %v2774_v13, %v1868_v7 }
0x237d   :  { %v1880_v54 = vmul.f32 %v1872_v17, %v1784_v6 }
0x237f   :  { %2527 = vmatmul.msk.f32.gmra.mxu0 %vm69_vm0, %v1880_v54 }
0x23ac   :  { %v2388_v21 = vpop.permute.xlu1 %2387 }
0x23ad   :  { %2466 = vst.msk [vmem:[%s3531_s2 + $0x30] sm:$0xff] %vm1947_vm13, %v2388_v21  ;;  %2541 = vmatmul.msk.f32.vlgmr.msra.gmra.mxu3 %vm1947_vm13, %v2388_v21 }
0x23fc   :  { %v1944_v52 = vpop.f32.mrf.mxu0 }
0x23fd   :  { %v1945_v5 = vadd.f32 %v3433_v44, %v1944_v52 }
0x2430   :  { %v2408_v31 = vpop.f32.mrf.mxu3 }
0x2431   :  { %v2411_v36 = vadd.f32 %v2408_v31, %v1945_v5 }
0x2433   :  { %2775 = vtanh.f32 %v2411_v36  ;;  %v2542_v29 = vmul.f32 -1.442695, %v2411_v36 }
0x2435   :  { %2777 = vpow2.f32 %v2542_v29 }
0x2439   :  { %v2776_v32 = vpop.eup %2775 }
0x243a   :  { %2434 = vrot.lane.b32.xlu1 %v2776_v32, %s2820_s0 }
0x243b   :  { %v2778_v46 = vpop.eup %2777 }
0x243c   :  { %v2415_v20 = vadd.f32 1.0, %v2778_v46 }
0x243e   :  { %2779 = vrcp.f32 %v2415_v20  ;;  %v2427_v40 = vand.u32 2147483648, %v2415_v20  ;;  %vm2421_vm15 = vweird.f32 %v2415_v20  ;;  %v2425_v44 = vand.u32 2147483647, %v2415_v20 }
0x2440   :  { %v2428_v37 = vor.u32 1.1754944e-38, %v2427_v40  ;;  %vm2426_vm7 = vcmp.eq.f32.partialorder %v2425_v44, 8.507059e+37 }
0x2444   :  { %v2780_v12 = vpop.eup %2779 }
0x2445   :  { %v2417_v48 = vmul.f32 %v2780_v12, %v2415_v20  ;;  %vm2422_vm0 = vweird.f32 %v2780_v12 }
0x2446   :  { %vm2423_vm6 = vmor %vm2421_vm15, %vm2422_vm0 }
0x2447   :  { %v2418_v39 = vsub.f32 1.0, %v2417_v48 }
0x2449   :  { %v2419_v41 = vmul.f32 %v2780_v12, %v2418_v39 }
0x244b   :  { %v2420_v42 = vadd.f32 %v2780_v12, %v2419_v41 }
0x244d   :  { %v2424_v14 = vsel %vm2423_vm6, %v2780_v12, %v2420_v42 }
0x244e   :  { %v2429_v25 = vsel %vm2426_vm7, %v2428_v37, %v2424_v14 }
0x244f   :  { %v2432_v45 = vmul.f32 %v2429_v25, %v2379_v2 }
0x24ac   :  { %v2435_v33 = vpop.permute.xlu1 %2434 }
0x24ad   :  { %v2437_v16 = vmul.f32 %v2435_v33, %v2429_v25 }
0x24af   :  { %2439 = vrot.lane.b32.xlu0 %v2437_v16, %s2816_s15 }
0x2521   :  { %v2440_v60 = vpop.permute.xlu0 %2439 }
0x2522   :  { %v2442_v49 = vadd.f32 %v2440_v60, %v2432_v45 }
0x2524   :  { %2781 = vtanh.f32 %v2442_v49 }
0x252a   :  { %v2782_v22 = vpop.eup %2781 }
0x252b   :  { %2445 = vrot.lane.b32.xlu1 %v2782_v22, %s2821_s5 }
0x259d   :  { %v2446_v1 = vpop.permute.xlu1 %2445 }
0x259e   :  { %v2448_v53 = vmul.f32 %v2446_v1, %v2429_v25 }
0x25a0   :  { %2450 = vrot.lane.b32.xlu2 %v2448_v53, %s2822_s6 }
0x25fa   :  { %v2451_v56 = vpop.permute.xlu2 %2450 }
0x25fb   :  { %2467 = vst.msk [vmem:[%s3531_s2 + $0x38] sm:$0xff] %vm1947_vm13, %v2451_v56 }
0x25fc   :  { %2472 = vsyncpa [#allocation3], 1 }

</bundles_post_ra>
